<compile_context>
chip_gen: v7x
topology: tpu7x:2x2x1
jax: 0.10.0
libtpu: 0.0.40
codegen_flags: <defaults>
</compile_context>

<pallas_src>
import jax
import jax.numpy as jnp
from jax.experimental import pallas as pl
from jax.experimental.pallas import tpu as pltpu


# ---------------------------------------------------------------------------
# Fused Pallas kernel: conv3x3+ReLU -> conv3x3+ReLU, one batch element / step
# ---------------------------------------------------------------------------
def _make_fused_extractor_kernel(H, W, Cin, Ch):
    HW = H * W
    taps = [(dy, dx) for dy in range(3) for dx in range(3)]

    def kernel(xp_ref, w1_ref, b1_ref, w2_ref, b2_ref, o_ref, h1p_ref):
        # xp_ref : (1, H+2, W+2, Cin)  zero-padded NHWC input tile
        # w1_ref : (9*Cin, Ch), b1_ref: (1, Ch)
        # w2_ref : (9*Ch,  Ch), b2_ref: (1, Ch)
        # o_ref  : (1, Ch, H*W)        lane-dense, NCHW row-major per batch
        # h1p_ref: (H+2, W+2, Ch)      VMEM scratch: layer-1 output + halo

        # ---- layer 1: 3x3 conv (pad=1) + ReLU as 9 shifted MXU matmuls ----
        acc1 = jnp.zeros((HW, Ch), jnp.float32)
        for t, (dy, dx) in enumerate(taps):
            xs = xp_ref[0, dy:dy + H, dx:dx + W, :].reshape(HW, Cin)
            wt = w1_ref[t * Cin:(t + 1) * Cin, :]
            acc1 = acc1 + jnp.dot(xs, wt, preferred_element_type=jnp.float32)
        h1 = jnp.maximum(acc1 + b1_ref[...], 0.0)

        # Keep h1 on-chip with a zero halo: no HBM round trip between layers.
        h1p_ref[...] = jnp.zeros_like(h1p_ref)
        h1p_ref[1:H + 1, 1:W + 1, :] = h1.reshape(H, W, Ch)

        # ---- layer 2: same pattern, reading taps from the VMEM scratch ----
        acc2 = jnp.zeros((HW, Ch), jnp.float32)
        for t, (dy, dx) in enumerate(taps):
            hs = h1p_ref[dy:dy + H, dx:dx + W, :].reshape(HW, Ch)
            wt = w2_ref[t * Ch:(t + 1) * Ch, :]
            acc2 = acc2 + jnp.dot(hs, wt, preferred_element_type=jnp.float32)
        h2 = jnp.maximum(acc2 + b2_ref[...], 0.0)

        # Lane-dense store: (Ch, H*W) puts H*W (=256) on the lane axis and is
        # exactly the NCHW row-major layout for this batch element.
        o_ref[0] = h2.T.astype(o_ref.dtype)

    return kernel


def spair_feature_extractor(x_nchw, params):
    """Fused 2x(conv3x3 + ReLU) feature extractor.

    x_nchw : (B, Cin, H, W) float32 (PyTorch NCHW convention)
    params : (w1, b1, w2, b2) with w of shape (9*Cin, Ch) / (9*Ch, Ch),
             tap-major row ordering: row = (dy*3 + dx)*C + c.
    returns (B, Ch, H, W)
    """
    w1, b1, w2, b2 = params
    B, Cin, H, W = x_nchw.shape
    Ch = w1.shape[1]
    HW = H * W

    # Glue (tiny): NCHW -> zero-padded NHWC halo tile. All heavy lifting,
    # including patch extraction, happens inside the single Pallas call.
    xp = jnp.pad(jnp.transpose(x_nchw, (0, 2, 3, 1)),
                 ((0, 0), (1, 1), (1, 1), (0, 0)))

    kernel = _make_fused_extractor_kernel(H, W, Cin, Ch)

    flops = 2 * B * HW * 9 * (Cin + Ch) * Ch
    bytes_accessed = 4 * (xp.size + w1.size + w2.size + 2 * Ch + B * Ch * HW)

    out = pl.pallas_call(
        kernel,
        out_shape=jax.ShapeDtypeStruct((B, Ch, HW), x_nchw.dtype),
        grid_spec=pltpu.PrefetchScalarGridSpec(
            num_scalar_prefetch=0,
            grid=(B,),
            in_specs=[
                pl.BlockSpec((1, H + 2, W + 2, Cin), lambda b: (b, 0, 0, 0)),
                pl.BlockSpec((9 * Cin, Ch), lambda b: (0, 0)),   # resident
                pl.BlockSpec((1, Ch), lambda b: (0, 0)),         # resident
                pl.BlockSpec((9 * Ch, Ch), lambda b: (0, 0)),    # resident
                pl.BlockSpec((1, Ch), lambda b: (0, 0)),         # resident
            ],
            out_specs=pl.BlockSpec((1, Ch, HW), lambda b: (b, 0, 0)),
            scratch_shapes=[pltpu.VMEM((H + 2, W + 2, Ch), jnp.float32)],
        ),
        compiler_params=pltpu.CompilerParams(
            dimension_semantics=("parallel",),
        ),
        cost_estimate=pl.CostEstimate(
            flops=int(flops),
            transcendentals=0,
            bytes_accessed=int(bytes_accessed),
        ),
    )(xp, w1, b1.reshape(1, Ch), w2, b2.reshape(1, Ch))

    # (B, Ch, H*W) -> (B, Ch, H, W): free row-major reshape, already NCHW.
    return out.reshape(B, Ch, H, W)


# ---------------------------------------------------------------------------
# SpairEncoder: parameter init + forward
# ---------------------------------------------------------------------------
def init_spair_encoder_params(key, c_in, obj_extractor_hidden_dim=32):
    """Deterministic (He-style) init of the feature-extractor conv weights."""
    k1, k2 = jax.random.split(key, 2)
    h = obj_extractor_hidden_dim
    w1 = jax.random.normal(k1, (9 * c_in, h), jnp.float32) * (2.0 / (9 * c_in)) ** 0.5
    b1 = jnp.zeros((h,), jnp.float32)
    w2 = jax.random.normal(k2, (9 * h, h), jnp.float32) * (2.0 / (9 * h)) ** 0.5
    b2 = jnp.zeros((h,), jnp.float32)
    return (w1, b1, w2, b2)


def spair_encoder_forward(x_nchw, params):
    """Forward pass.

    Input : x_nchw (B, C, H, W) — PyTorch NCHW convention.
    Output: feature map (B, hidden, H, W) from the feature extractor.
    """
    # TODO(synk): the reference SpairEncoder.forward body is literally `return`
    # (None) and `FeatureExtractor` is not defined in the snippet; we implement
    # the constructed feature_extractor (2x [conv3x3 + ReLU]) and return its
    # feature map instead of None so there is real compute to kernelize.
    return spair_feature_extractor(x_nchw, params)


# ---------------------------------------------------------------------------
# Pure-XLA reference (for a correctness sanity check only)
# ---------------------------------------------------------------------------
def _reference_forward(x_nchw, params):
    w1, b1, w2, b2 = params
    Cin = x_nchw.shape[1]
    Ch = w1.shape[1]
    dn = ("NHWC", "HWIO", "NHWC")
    x = jnp.transpose(x_nchw, (0, 2, 3, 1))
    h = jax.lax.conv_general_dilated(
        x, w1.reshape(3, 3, Cin, Ch), (1, 1), "SAME", dimension_numbers=dn)
    h = jnp.maximum(h + b1, 0.0)
    h = jax.lax.conv_general_dilated(
        h, w2.reshape(3, 3, Ch, Ch), (1, 1), "SAME", dimension_numbers=dn)
    h = jnp.maximum(h + b2, 0.0)
    return jnp.transpose(h, (0, 3, 1, 2))


# ---------------------------------------------------------------------------
if __name__ == "__main__":
    key = jax.random.PRNGKey(0)
    k_x, k_p = jax.random.split(key)

    # Small shapes consistent with the module:
    #   input_dims = (4, 16, 16), feature_dim_space = (16, 16), batch = 2
    B, C, H, W = 2, 4, 16, 16
    x = jax.random.normal(k_x, (B, C, H, W), jnp.float32)

    params = init_spair_encoder_params(k_p, c_in=C, obj_extractor_hidden_dim=32)

    fwd = jax.jit(spair_encoder_forward)
    out = fwd(x, params)
    jax.block_until_ready(out)

    assert out.shape == (B, 32, H, W), out.shape

    # Sanity check against the plain-XLA conv reference (loose tol: MXU
    # default-precision f32 matmuls vs XLA conv accumulate differently).
    ref = _reference_forward(x, params)
    err = float(jnp.max(jnp.abs(out - ref)))
    assert err < 1e-1, f"max abs error vs XLA conv reference: {err}"

    print("KERNEL_OK")
</pallas_src>

<mosaic_0001>
module attributes {stable_mosaic.version = 11 : i64} {
  func.func @kernel(%arg0: i32, %arg1: memref<1x18x18x4xf32, #tpu.memory_space<vmem>>, %arg2: memref<36x32xf32, #tpu.memory_space<vmem>>, %arg3: memref<1x32xf32, #tpu.memory_space<vmem>>, %arg4: memref<288x32xf32, #tpu.memory_space<vmem>>, %arg5: memref<1x32xf32, #tpu.memory_space<vmem>>, %arg6: memref<1x32x256xf32, #tpu.memory_space<vmem>>, %arg7: memref<18x18x32xf32, #tpu.memory_space<vmem>>) attributes {dimension_semantics = [#tpu.dimension_semantics<parallel>], iteration_bounds = array<i64: 2>, scalar_prefetch = 0 : i64, scratch_operands = 1 : i64, tpu.core_type = #tpu.core_type<tc>, window_params = [{transform_indices = @transform_0, window_bounds = array<i64: 1, 18, 18, 4>}, {pipeline_mode = #tpu.pipeline_mode<synchronous>, transform_indices = @transform_1, window_bounds = array<i64: 36, 32>}, {pipeline_mode = #tpu.pipeline_mode<synchronous>, transform_indices = @transform_2, window_bounds = array<i64: 1, 32>}, {pipeline_mode = #tpu.pipeline_mode<synchronous>, transform_indices = @transform_3, window_bounds = array<i64: 288, 32>}, {pipeline_mode = #tpu.pipeline_mode<synchronous>, transform_indices = @transform_4, window_bounds = array<i64: 1, 32>}, {transform_indices = @transform_5, window_bounds = array<i64: 1, 32, 256>}]} {
    %cst = arith.constant 0.000000e+00 : f32
    %0 = vector.broadcast %cst : f32 to vector<256x32xf32>
    %c0 = arith.constant 0 : index
    %c0_0 = arith.constant 0 : index
    %c0_1 = arith.constant 0 : index
    %c0_2 = arith.constant 0 : index
    %1 = vector.load %arg1[%c0, %c0_0, %c0_1, %c0_2] : memref<1x18x18x4xf32, #tpu.memory_space<vmem>>, vector<1x16x16x4xf32>
    %2 = vector.shape_cast %1 : vector<1x16x16x4xf32> to vector<16x16x4xf32>
    %3 = vector.shape_cast %2 : vector<16x16x4xf32> to vector<256x4xf32>
    %c0_3 = arith.constant 0 : index
    %c0_4 = arith.constant 0 : index
    %4 = vector.load %arg2[%c0_3, %c0_4] : memref<36x32xf32, #tpu.memory_space<vmem>>, vector<4x32xf32>
    %cst_5 = arith.constant dense<0.000000e+00> : vector<256x32xf32>
    %5 = tpu.matmul %3, %4, %cst_5 {dimension_numbers = #tpu.dot_dimension_numbers<[1], [0], [0], [1], [0, 0, 1, 1], [], []>} : vector<256x4xf32>, vector<4x32xf32>, vector<256x32xf32> -> vector<256x32xf32>
    %6 = arith.addf %0, %5 : vector<256x32xf32>
    %c0_6 = arith.constant 0 : index
    %c0_7 = arith.constant 0 : index
    %c1 = arith.constant 1 : index
    %c0_8 = arith.constant 0 : index
    %7 = vector.load %arg1[%c0_6, %c0_7, %c1, %c0_8] : memref<1x18x18x4xf32, #tpu.memory_space<vmem>>, vector<1x16x16x4xf32>
    %8 = vector.shape_cast %7 : vector<1x16x16x4xf32> to vector<16x16x4xf32>
    %9 = vector.shape_cast %8 : vector<16x16x4xf32> to vector<256x4xf32>
    %c4 = arith.constant 4 : index
    %c0_9 = arith.constant 0 : index
    %10 = vector.load %arg2[%c4, %c0_9] : memref<36x32xf32, #tpu.memory_space<vmem>>, vector<4x32xf32>
    %cst_10 = arith.constant dense<0.000000e+00> : vector<256x32xf32>
    %11 = tpu.matmul %9, %10, %cst_10 {dimension_numbers = #tpu.dot_dimension_numbers<[1], [0], [0], [1], [0, 0, 1, 1], [], []>} : vector<256x4xf32>, vector<4x32xf32>, vector<256x32xf32> -> vector<256x32xf32>
    %12 = arith.addf %6, %11 : vector<256x32xf32>
    %c0_11 = arith.constant 0 : index
    %c0_12 = arith.constant 0 : index
    %c2 = arith.constant 2 : index
    %c0_13 = arith.constant 0 : index
    %13 = vector.load %arg1[%c0_11, %c0_12, %c2, %c0_13] : memref<1x18x18x4xf32, #tpu.memory_space<vmem>>, vector<1x16x16x4xf32>
    %14 = vector.shape_cast %13 : vector<1x16x16x4xf32> to vector<16x16x4xf32>
    %15 = vector.shape_cast %14 : vector<16x16x4xf32> to vector<256x4xf32>
    %c8 = arith.constant 8 : index
    %c0_14 = arith.constant 0 : index
    %16 = vector.load %arg2[%c8, %c0_14] : memref<36x32xf32, #tpu.memory_space<vmem>>, vector<4x32xf32>
    %cst_15 = arith.constant dense<0.000000e+00> : vector<256x32xf32>
    %17 = tpu.matmul %15, %16, %cst_15 {dimension_numbers = #tpu.dot_dimension_numbers<[1], [0], [0], [1], [0, 0, 1, 1], [], []>} : vector<256x4xf32>, vector<4x32xf32>, vector<256x32xf32> -> vector<256x32xf32>
    %18 = arith.addf %12, %17 : vector<256x32xf32>
    %c0_16 = arith.constant 0 : index
    %c1_17 = arith.constant 1 : index
    %c0_18 = arith.constant 0 : index
    %c0_19 = arith.constant 0 : index
    %19 = vector.load %arg1[%c0_16, %c1_17, %c0_18, %c0_19] : memref<1x18x18x4xf32, #tpu.memory_space<vmem>>, vector<1x16x16x4xf32>
    %20 = vector.shape_cast %19 : vector<1x16x16x4xf32> to vector<16x16x4xf32>
    %21 = vector.shape_cast %20 : vector<16x16x4xf32> to vector<256x4xf32>
    %c12 = arith.constant 12 : index
    %c0_20 = arith.constant 0 : index
    %22 = vector.load %arg2[%c12, %c0_20] : memref<36x32xf32, #tpu.memory_space<vmem>>, vector<4x32xf32>
    %cst_21 = arith.constant dense<0.000000e+00> : vector<256x32xf32>
    %23 = tpu.matmul %21, %22, %cst_21 {dimension_numbers = #tpu.dot_dimension_numbers<[1], [0], [0], [1], [0, 0, 1, 1], [], []>} : vector<256x4xf32>, vector<4x32xf32>, vector<256x32xf32> -> vector<256x32xf32>
    %24 = arith.addf %18, %23 : vector<256x32xf32>
    %c0_22 = arith.constant 0 : index
    %c1_23 = arith.constant 1 : index
    %c1_24 = arith.constant 1 : index
    %c0_25 = arith.constant 0 : index
    %25 = vector.load %arg1[%c0_22, %c1_23, %c1_24, %c0_25] : memref<1x18x18x4xf32, #tpu.memory_space<vmem>>, vector<1x16x16x4xf32>
    %26 = vector.shape_cast %25 : vector<1x16x16x4xf32> to vector<16x16x4xf32>
    %27 = vector.shape_cast %26 : vector<16x16x4xf32> to vector<256x4xf32>
    %c16 = arith.constant 16 : index
    %c0_26 = arith.constant 0 : index
    %28 = vector.load %arg2[%c16, %c0_26] : memref<36x32xf32, #tpu.memory_space<vmem>>, vector<4x32xf32>
    %cst_27 = arith.constant dense<0.000000e+00> : vector<256x32xf32>
    %29 = tpu.matmul %27, %28, %cst_27 {dimension_numbers = #tpu.dot_dimension_numbers<[1], [0], [0], [1], [0, 0, 1, 1], [], []>} : vector<256x4xf32>, vector<4x32xf32>, vector<256x32xf32> -> vector<256x32xf32>
    %30 = arith.addf %24, %29 : vector<256x32xf32>
    %c0_28 = arith.constant 0 : index
    %c1_29 = arith.constant 1 : index
    %c2_30 = arith.constant 2 : index
    %c0_31 = arith.constant 0 : index
    %31 = vector.load %arg1[%c0_28, %c1_29, %c2_30, %c0_31] : memref<1x18x18x4xf32, #tpu.memory_space<vmem>>, vector<1x16x16x4xf32>
    %32 = vector.shape_cast %31 : vector<1x16x16x4xf32> to vector<16x16x4xf32>
    %33 = vector.shape_cast %32 : vector<16x16x4xf32> to vector<256x4xf32>
    %c20 = arith.constant 20 : index
    %c0_32 = arith.constant 0 : index
    %34 = vector.load %arg2[%c20, %c0_32] : memref<36x32xf32, #tpu.memory_space<vmem>>, vector<4x32xf32>
    %cst_33 = arith.constant dense<0.000000e+00> : vector<256x32xf32>
    %35 = tpu.matmul %33, %34, %cst_33 {dimension_numbers = #tpu.dot_dimension_numbers<[1], [0], [0], [1], [0, 0, 1, 1], [], []>} : vector<256x4xf32>, vector<4x32xf32>, vector<256x32xf32> -> vector<256x32xf32>
    %36 = arith.addf %30, %35 : vector<256x32xf32>
    %c0_34 = arith.constant 0 : index
    %c2_35 = arith.constant 2 : index
    %c0_36 = arith.constant 0 : index
    %c0_37 = arith.constant 0 : index
    %37 = vector.load %arg1[%c0_34, %c2_35, %c0_36, %c0_37] : memref<1x18x18x4xf32, #tpu.memory_space<vmem>>, vector<1x16x16x4xf32>
    %38 = vector.shape_cast %37 : vector<1x16x16x4xf32> to vector<16x16x4xf32>
    %39 = vector.shape_cast %38 : vector<16x16x4xf32> to vector<256x4xf32>
    %c24 = arith.constant 24 : index
    %c0_38 = arith.constant 0 : index
    %40 = vector.load %arg2[%c24, %c0_38] : memref<36x32xf32, #tpu.memory_space<vmem>>, vector<4x32xf32>
    %cst_39 = arith.constant dense<0.000000e+00> : vector<256x32xf32>
    %41 = tpu.matmul %39, %40, %cst_39 {dimension_numbers = #tpu.dot_dimension_numbers<[1], [0], [0], [1], [0, 0, 1, 1], [], []>} : vector<256x4xf32>, vector<4x32xf32>, vector<256x32xf32> -> vector<256x32xf32>
    %42 = arith.addf %36, %41 : vector<256x32xf32>
    %c0_40 = arith.constant 0 : index
    %c2_41 = arith.constant 2 : index
    %c1_42 = arith.constant 1 : index
    %c0_43 = arith.constant 0 : index
    %43 = vector.load %arg1[%c0_40, %c2_41, %c1_42, %c0_43] : memref<1x18x18x4xf32, #tpu.memory_space<vmem>>, vector<1x16x16x4xf32>
    %44 = vector.shape_cast %43 : vector<1x16x16x4xf32> to vector<16x16x4xf32>
    %45 = vector.shape_cast %44 : vector<16x16x4xf32> to vector<256x4xf32>
    %c28 = arith.constant 28 : index
    %c0_44 = arith.constant 0 : index
    %46 = vector.load %arg2[%c28, %c0_44] : memref<36x32xf32, #tpu.memory_space<vmem>>, vector<4x32xf32>
    %cst_45 = arith.constant dense<0.000000e+00> : vector<256x32xf32>
    %47 = tpu.matmul %45, %46, %cst_45 {dimension_numbers = #tpu.dot_dimension_numbers<[1], [0], [0], [1], [0, 0, 1, 1], [], []>} : vector<256x4xf32>, vector<4x32xf32>, vector<256x32xf32> -> vector<256x32xf32>
    %48 = arith.addf %42, %47 : vector<256x32xf32>
    %c0_46 = arith.constant 0 : index
    %c2_47 = arith.constant 2 : index
    %c2_48 = arith.constant 2 : index
    %c0_49 = arith.constant 0 : index
    %49 = vector.load %arg1[%c0_46, %c2_47, %c2_48, %c0_49] : memref<1x18x18x4xf32, #tpu.memory_space<vmem>>, vector<1x16x16x4xf32>
    %50 = vector.shape_cast %49 : vector<1x16x16x4xf32> to vector<16x16x4xf32>
    %51 = vector.shape_cast %50 : vector<16x16x4xf32> to vector<256x4xf32>
    %c32 = arith.constant 32 : index
    %c0_50 = arith.constant 0 : index
    %52 = vector.load %arg2[%c32, %c0_50] : memref<36x32xf32, #tpu.memory_space<vmem>>, vector<4x32xf32>
    %cst_51 = arith.constant dense<0.000000e+00> : vector<256x32xf32>
    %53 = tpu.matmul %51, %52, %cst_51 {dimension_numbers = #tpu.dot_dimension_numbers<[1], [0], [0], [1], [0, 0, 1, 1], [], []>} : vector<256x4xf32>, vector<4x32xf32>, vector<256x32xf32> -> vector<256x32xf32>
    %54 = arith.addf %48, %53 : vector<256x32xf32>
    %c0_52 = arith.constant 0 : index
    %c0_53 = arith.constant 0 : index
    %55 = vector.load %arg3[%c0_52, %c0_53] : memref<1x32xf32, #tpu.memory_space<vmem>>, vector<1x32xf32>
    %56 = vector.broadcast %55 : vector<1x32xf32> to vector<256x32xf32>
    %57 = arith.addf %54, %56 : vector<256x32xf32>
    %cst_54 = arith.constant 0.000000e+00 : f32
    %58 = vector.broadcast %cst_54 : f32 to vector<256x32xf32>
    %59 = arith.maximumf %57, %58 : vector<256x32xf32>
    %cst_55 = arith.constant 0.000000e+00 : f32
    %60 = vector.broadcast %cst_55 : f32 to vector<18x18x32xf32>
    %c0_56 = arith.constant 0 : index
    %c0_57 = arith.constant 0 : index
    %c0_58 = arith.constant 0 : index
    %61 = vector.load %arg7[%c0_56, %c0_57, %c0_58] : memref<18x18x32xf32, #tpu.memory_space<vmem>>, vector<18x18x32xf32>
    tpu.vector_store %arg7[%c0_56, %c0_57, %c0_58], %60 {strides = array<i32>} : memref<18x18x32xf32, #tpu.memory_space<vmem>>, vector<18x18x32xf32>,
    %62 = vector.shape_cast %59 : vector<256x32xf32> to vector<16x16x32xf32>
    %c1_59 = arith.constant 1 : index
    %c1_60 = arith.constant 1 : index
    %c0_61 = arith.constant 0 : index
    %63 = vector.load %arg7[%c1_59, %c1_60, %c0_61] : memref<18x18x32xf32, #tpu.memory_space<vmem>>, vector<16x16x32xf32>
    tpu.vector_store %arg7[%c1_59, %c1_60, %c0_61], %62 {strides = array<i32>} : memref<18x18x32xf32, #tpu.memory_space<vmem>>, vector<16x16x32xf32>,
    %cst_62 = arith.constant 0.000000e+00 : f32
    %64 = vector.broadcast %cst_62 : f32 to vector<256x32xf32>
    %c0_63 = arith.constant 0 : index
    %c0_64 = arith.constant 0 : index
    %c0_65 = arith.constant 0 : index
    %65 = vector.load %arg7[%c0_63, %c0_64, %c0_65] : memref<18x18x32xf32, #tpu.memory_space<vmem>>, vector<16x16x32xf32>
    %66 = vector.shape_cast %65 : vector<16x16x32xf32> to vector<256x32xf32>
    %c0_66 = arith.constant 0 : index
    %c0_67 = arith.constant 0 : index
    %67 = vector.load %arg4[%c0_66, %c0_67] : memref<288x32xf32, #tpu.memory_space<vmem>>, vector<32x32xf32>
    %cst_68 = arith.constant dense<0.000000e+00> : vector<256x32xf32>
    %68 = tpu.matmul %66, %67, %cst_68 {dimension_numbers = #tpu.dot_dimension_numbers<[1], [0], [0], [1], [0, 0, 1, 1], [], []>} : vector<256x32xf32>, vector<32x32xf32>, vector<256x32xf32> -> vector<256x32xf32>
    %69 = arith.addf %64, %68 : vector<256x32xf32>
    %c0_69 = arith.constant 0 : index
    %c1_70 = arith.constant 1 : index
    %c0_71 = arith.constant 0 : index
    %70 = vector.load %arg7[%c0_69, %c1_70, %c0_71] : memref<18x18x32xf32, #tpu.memory_space<vmem>>, vector<16x16x32xf32>
    %71 = vector.shape_cast %70 : vector<16x16x32xf32> to vector<256x32xf32>
    %c32_72 = arith.constant 32 : index
    %c0_73 = arith.constant 0 : index
    %72 = vector.load %arg4[%c32_72, %c0_73] : memref<288x32xf32, #tpu.memory_space<vmem>>, vector<32x32xf32>
    %cst_74 = arith.constant dense<0.000000e+00> : vector<256x32xf32>
    %73 = tpu.matmul %71, %72, %cst_74 {dimension_numbers = #tpu.dot_dimension_numbers<[1], [0], [0], [1], [0, 0, 1, 1], [], []>} : vector<256x32xf32>, vector<32x32xf32>, vector<256x32xf32> -> vector<256x32xf32>
    %74 = arith.addf %69, %73 : vector<256x32xf32>
    %c0_75 = arith.constant 0 : index
    %c2_76 = arith.constant 2 : index
    %c0_77 = arith.constant 0 : index
    %75 = vector.load %arg7[%c0_75, %c2_76, %c0_77] : memref<18x18x32xf32, #tpu.memory_space<vmem>>, vector<16x16x32xf32>
    %76 = vector.shape_cast %75 : vector<16x16x32xf32> to vector<256x32xf32>
    %c64 = arith.constant 64 : index
    %c0_78 = arith.constant 0 : index
    %77 = vector.load %arg4[%c64, %c0_78] : memref<288x32xf32, #tpu.memory_space<vmem>>, vector<32x32xf32>
    %cst_79 = arith.constant dense<0.000000e+00> : vector<256x32xf32>
    %78 = tpu.matmul %76, %77, %cst_79 {dimension_numbers = #tpu.dot_dimension_numbers<[1], [0], [0], [1], [0, 0, 1, 1], [], []>} : vector<256x32xf32>, vector<32x32xf32>, vector<256x32xf32> -> vector<256x32xf32>
    %79 = arith.addf %74, %78 : vector<256x32xf32>
    %c1_80 = arith.constant 1 : index
    %c0_81 = arith.constant 0 : index
    %c0_82 = arith.constant 0 : index
    %80 = vector.load %arg7[%c1_80, %c0_81, %c0_82] : memref<18x18x32xf32, #tpu.memory_space<vmem>>, vector<16x16x32xf32>
    %81 = vector.shape_cast %80 : vector<16x16x32xf32> to vector<256x32xf32>
    %c96 = arith.constant 96 : index
    %c0_83 = arith.constant 0 : index
    %82 = vector.load %arg4[%c96, %c0_83] : memref<288x32xf32, #tpu.memory_space<vmem>>, vector<32x32xf32>
    %cst_84 = arith.constant dense<0.000000e+00> : vector<256x32xf32>
    %83 = tpu.matmul %81, %82, %cst_84 {dimension_numbers = #tpu.dot_dimension_numbers<[1], [0], [0], [1], [0, 0, 1, 1], [], []>} : vector<256x32xf32>, vector<32x32xf32>, vector<256x32xf32> -> vector<256x32xf32>
    %84 = arith.addf %79, %83 : vector<256x32xf32>
    %c1_85 = arith.constant 1 : index
    %c1_86 = arith.constant 1 : index
    %c0_87 = arith.constant 0 : index
    %85 = vector.load %arg7[%c1_85, %c1_86, %c0_87] : memref<18x18x32xf32, #tpu.memory_space<vmem>>, vector<16x16x32xf32>
    %86 = vector.shape_cast %85 : vector<16x16x32xf32> to vector<256x32xf32>
    %c128 = arith.constant 128 : index
    %c0_88 = arith.constant 0 : index
    %87 = vector.load %arg4[%c128, %c0_88] : memref<288x32xf32, #tpu.memory_space<vmem>>, vector<32x32xf32>
    %cst_89 = arith.constant dense<0.000000e+00> : vector<256x32xf32>
    %88 = tpu.matmul %86, %87, %cst_89 {dimension_numbers = #tpu.dot_dimension_numbers<[1], [0], [0], [1], [0, 0, 1, 1], [], []>} : vector<256x32xf32>, vector<32x32xf32>, vector<256x32xf32> -> vector<256x32xf32>
    %89 = arith.addf %84, %88 : vector<256x32xf32>
    %c1_90 = arith.constant 1 : index
    %c2_91 = arith.constant 2 : index
    %c0_92 = arith.constant 0 : index
    %90 = vector.load %arg7[%c1_90, %c2_91, %c0_92] : memref<18x18x32xf32, #tpu.memory_space<vmem>>, vector<16x16x32xf32>
    %91 = vector.shape_cast %90 : vector<16x16x32xf32> to vector<256x32xf32>
    %c160 = arith.constant 160 : index
    %c0_93 = arith.constant 0 : index
    %92 = vector.load %arg4[%c160, %c0_93] : memref<288x32xf32, #tpu.memory_space<vmem>>, vector<32x32xf32>
    %cst_94 = arith.constant dense<0.000000e+00> : vector<256x32xf32>
    %93 = tpu.matmul %91, %92, %cst_94 {dimension_numbers = #tpu.dot_dimension_numbers<[1], [0], [0], [1], [0, 0, 1, 1], [], []>} : vector<256x32xf32>, vector<32x32xf32>, vector<256x32xf32> -> vector<256x32xf32>
    %94 = arith.addf %89, %93 : vector<256x32xf32>
    %c2_95 = arith.constant 2 : index
    %c0_96 = arith.constant 0 : index
    %c0_97 = arith.constant 0 : index
    %95 = vector.load %arg7[%c2_95, %c0_96, %c0_97] : memref<18x18x32xf32, #tpu.memory_space<vmem>>, vector<16x16x32xf32>
    %96 = vector.shape_cast %95 : vector<16x16x32xf32> to vector<256x32xf32>
    %c192 = arith.constant 192 : index
    %c0_98 = arith.constant 0 : index
    %97 = vector.load %arg4[%c192, %c0_98] : memref<288x32xf32, #tpu.memory_space<vmem>>, vector<32x32xf32>
    %cst_99 = arith.constant dense<0.000000e+00> : vector<256x32xf32>
    %98 = tpu.matmul %96, %97, %cst_99 {dimension_numbers = #tpu.dot_dimension_numbers<[1], [0], [0], [1], [0, 0, 1, 1], [], []>} : vector<256x32xf32>, vector<32x32xf32>, vector<256x32xf32> -> vector<256x32xf32>
    %99 = arith.addf %94, %98 : vector<256x32xf32>
    %c2_100 = arith.constant 2 : index
    %c1_101 = arith.constant 1 : index
    %c0_102 = arith.constant 0 : index
    %100 = vector.load %arg7[%c2_100, %c1_101, %c0_102] : memref<18x18x32xf32, #tpu.memory_space<vmem>>, vector<16x16x32xf32>
    %101 = vector.shape_cast %100 : vector<16x16x32xf32> to vector<256x32xf32>
    %c224 = arith.constant 224 : index
    %c0_103 = arith.constant 0 : index
    %102 = vector.load %arg4[%c224, %c0_103] : memref<288x32xf32, #tpu.memory_space<vmem>>, vector<32x32xf32>
    %cst_104 = arith.constant dense<0.000000e+00> : vector<256x32xf32>
    %103 = tpu.matmul %101, %102, %cst_104 {dimension_numbers = #tpu.dot_dimension_numbers<[1], [0], [0], [1], [0, 0, 1, 1], [], []>} : vector<256x32xf32>, vector<32x32xf32>, vector<256x32xf32> -> vector<256x32xf32>
    %104 = arith.addf %99, %103 : vector<256x32xf32>
    %c2_105 = arith.constant 2 : index
    %c2_106 = arith.constant 2 : index
    %c0_107 = arith.constant 0 : index
    %105 = vector.load %arg7[%c2_105, %c2_106, %c0_107] : memref<18x18x32xf32, #tpu.memory_space<vmem>>, vector<16x16x32xf32>
    %106 = vector.shape_cast %105 : vector<16x16x32xf32> to vector<256x32xf32>
    %c256 = arith.constant 256 : index
    %c0_108 = arith.constant 0 : index
    %107 = vector.load %arg4[%c256, %c0_108] : memref<288x32xf32, #tpu.memory_space<vmem>>, vector<32x32xf32>
    %cst_109 = arith.constant dense<0.000000e+00> : vector<256x32xf32>
    %108 = tpu.matmul %106, %107, %cst_109 {dimension_numbers = #tpu.dot_dimension_numbers<[1], [0], [0], [1], [0, 0, 1, 1], [], []>} : vector<256x32xf32>, vector<32x32xf32>, vector<256x32xf32> -> vector<256x32xf32>
    %109 = arith.addf %104, %108 : vector<256x32xf32>
    %c0_110 = arith.constant 0 : index
    %c0_111 = arith.constant 0 : index
    %110 = vector.load %arg5[%c0_110, %c0_111] : memref<1x32xf32, #tpu.memory_space<vmem>>, vector<1x32xf32>
    %111 = vector.broadcast %110 : vector<1x32xf32> to vector<256x32xf32>
    %112 = arith.addf %109, %111 : vector<256x32xf32>
    %cst_112 = arith.constant 0.000000e+00 : f32
    %113 = vector.broadcast %cst_112 : f32 to vector<256x32xf32>
    %114 = arith.maximumf %112, %113 : vector<256x32xf32>
    %115 = tpu.transpose %114, [1, 0] : vector<256x32xf32> -> vector<32x256xf32>
    %c0_113 = arith.constant 0 : index
    %c0_114 = arith.constant 0 : index
    %c0_115 = arith.constant 0 : index
    %116 = vector.load %arg6[%c0_113, %c0_114, %c0_115] : memref<1x32x256xf32, #tpu.memory_space<vmem>>, vector<1x32x256xf32>
    %117 = vector.shape_cast %116 : vector<1x32x256xf32> to vector<32x256xf32>
    %118 = vector.shape_cast %115 : vector<32x256xf32> to vector<1x32x256xf32>
    tpu.vector_store %arg6[%c0_113, %c0_114, %c0_115], %118 {strides = array<i32>} : memref<1x32x256xf32, #tpu.memory_space<vmem>>, vector<1x32x256xf32>,
    return
  }
  func.func @transform_0(%arg0: i32) -> (i32, i32, i32, i32) {
    %c0_i32 = arith.constant 0 : i32
    %c0_i32_0 = arith.constant 0 : i32
    %c0_i32_1 = arith.constant 0 : i32
    %c0_i32_2 = arith.constant 0 : i32
    return %arg0, %c0_i32, %c0_i32_0, %c0_i32_1 : i32, i32, i32, i32
  }
  func.func @transform_1(%arg0: i32) -> (i32, i32) {
    %c0_i32 = arith.constant 0 : i32
    %c0_i32_0 = arith.constant 0 : i32
    %c0_i32_1 = arith.constant 0 : i32
    return %c0_i32, %c0_i32_0 : i32, i32
  }
  func.func @transform_2(%arg0: i32) -> (i32, i32) {
    %c0_i32 = arith.constant 0 : i32
    %c0_i32_0 = arith.constant 0 : i32
    %c0_i32_1 = arith.constant 0 : i32
    return %c0_i32, %c0_i32_0 : i32, i32
  }
  func.func @transform_3(%arg0: i32) -> (i32, i32) {
    %c0_i32 = arith.constant 0 : i32
    %c0_i32_0 = arith.constant 0 : i32
    %c0_i32_1 = arith.constant 0 : i32
    return %c0_i32, %c0_i32_0 : i32, i32
  }
  func.func @transform_4(%arg0: i32) -> (i32, i32) {
    %c0_i32 = arith.constant 0 : i32
    %c0_i32_0 = arith.constant 0 : i32
    %c0_i32_1 = arith.constant 0 : i32
    return %c0_i32, %c0_i32_0 : i32, i32
  }
  func.func @transform_5(%arg0: i32) -> (i32, i32, i32) {
    %c0_i32 = arith.constant 0 : i32
    %c0_i32_0 = arith.constant 0 : i32
    %c0_i32_1 = arith.constant 0 : i32
    return %arg0, %c0_i32, %c0_i32_0 : i32, i32, i32
  }
}

</mosaic_0001>

<bundles_post_ra>
// kernel: spair_encoder_forward.1
= control target key start
LH: loop header
LB: loop body
LE: loop exit
PB: predicated region body
PF: predicated region fallthrough
CT: control target
= control target key end

     0   :  { %s10460_s18 = smov 0   ;;  %s12421_s0 = inlined_call_operand.vmem [shape: f32[2,18,18,4], index: 0, kind: input, shape index: {}]   ;;  %s12422_s1 = inlined_call_operand.vmem [shape: f32[36,32], index: 1, kind: input, shape index: {}]   ;;  %s12423_s2 = inlined_call_operand.vmem [shape: f32[1,32], index: 2, kind: input, shape index: {}]   ;;  %s12424_s3 = inlined_call_operand.vmem [shape: f32[288,32], index: 3, kind: input, shape index: {}]   ;;  %s12425_s4 = inlined_call_operand.vmem [shape: f32[1,32], index: 4, kind: input, shape index: {}]   ;;  %s12426_s5 = inlined_call_operand.vmem [shape: f32[2,32,256], index: 5, kind: output, shape index: {}]  }
   0x1 LB: > { %s7462_s19 = sadd.s32 4294967295, %s10427_s18   ;;  %p7466_p0 = scmp.ge.s32.totalorder %s10427_s18, 1  ;;  %s10427_s18 = sphi %s10460_s18, %s15_s18  }
   0x2   : > { %p187_p1 = scmp.lt.s32.totalorder %s10427_s18, 3 }
   0x4   : > { %p188_p2 = pnand %p7466_p0, %p187_p1 }
   0x6   : > { %191 = sbr.rel (%p188_p2) target bundleno = 1658 (0x67a), region = 40 }
   0xd   : > { %v290_v0 = vld [vmem:[%s12422_s1 + $0x4] sm:$0xf]  ;;  %vm388_vm0 = vcmask 1043456   ;;  %p215_p3 = scmp.lt.s32.totalorder %s7462_s19, 1  ;;  %v257_v1 = vld [vmem:[%s12422_s1] sm:$0xf] }
   0xe   : > { %8873 = vmatprep.subr.msk.mxu0 %vm388_vm0, %v290_v0  ;;  %vm291_vm1 = vcmask 31744   ;;  %v10494_v5 = vld [vmem:[%s12422_s1 + $0x8] sm:$0xf]  ;;  %v10656_v38 = vld [vmem:[%s12422_s1 + $0xc] sm:$0xf]  ;;  %vm3737_vm2 = vcmask 261120  }
   0xf   : > { %8874 = vmatpush3.msk.msra.mxu0 %vm388_vm0, %v290_v0  ;;  %s12729_s19 = smov (!%p215_p3, %s7462_s19), 1  ;;  %vm3740_vm3 = vcmask 254976  }
  0x10   : > { %8923 = vmatprep.subr.msk.mxu0 %vm388_vm0, %v257_v1  ;;  %s10411_s24 = smul.u32 432, %s12729_s19  ;;  %s8251_s26 = sshll.u32 %s12729_s19, 6 }
  0x11   : > { %s224_s29 = scalar_lea.vmem %s12426_s5, %s8251_s26 }
  0x12   : > { %s10483_s27 = scalar_lea.vmem %s12421_s0, %s10411_s24 }
  0x13   : > { %v258_v2 = vld [vmem:[%s10483_s27 + $0x1] sm:$0xff]  ;;  %v259_v3 = vld [vmem:[%s10483_s27 + $0x9] sm:$0xff]  ;;  %v10488_v4 = vld [vmem:[%s10483_s27 + $0x19] sm:$0xff] }
  0x14   : > { %8875 = vmatprep.mubr.msk.f32.mxu0 %vm291_vm1, %v258_v2  ;;  %v10501_v6 = vld [vmem:[%s10483_s27 + $0x21] sm:$0xff]  ;;  %v10504_v7 = vld [vmem:[%s10483_s27 + $0x31] sm:$0xff]  ;;  %v10513_v8 = vld [vmem:[%s10483_s27 + $0x39] sm:$0xff] }
  0x15   : > { %8876 = vmatmul.mubr.msk.f32.vlgmr.msra.gmra.mrb[0].mxu0 %vm291_vm1, %v259_v3  ;;  %v10516_v9 = vld [vmem:[%s10483_s27 + $0x49] sm:$0xff]  ;;  %v10523_v10 = vld [vmem:[%s10483_s27 + $0x51] sm:$0xff]  ;;  %v10526_v11 = vld [vmem:[%s10483_s27 + $0x61] sm:$0xff] }
  0x16   : > { %8924 = vmatpush3.msk.msra.mxu0 %vm388_vm0, %v257_v1  ;;  %8878 = vmatprep.mubr.msk.f32.mxu0 %vm291_vm1, %v10488_v4  ;;  %v10533_v12 = vld [vmem:[%s10483_s27 + $0x69] sm:$0xff]  ;;  %v10536_v13 = vld [vmem:[%s10483_s27 + $0x79] sm:$0xff]  ;;  %v10543_v14 = vld [vmem:[%s10483_s27 + $0x81] sm:$0xff] }
  0x17   : > { %8973 = vmatprep.subr.msk.mxu0 %vm388_vm0, %v10494_v5  ;;  %v10546_v15 = vld [vmem:[%s10483_s27 + $0x91] sm:$0xff]  ;;  %v10553_v16 = vld [vmem:[%s10483_s27 + $0x99] sm:$0xff]  ;;  %v10556_v17 = vld [vmem:[%s10483_s27 + $0xa9] sm:$0xff] }
  0x18   : > { %v10563_v18 = vld [vmem:[%s10483_s27 + $0xb1] sm:$0xff]  ;;  %v10566_v19 = vld [vmem:[%s10483_s27 + $0xc1] sm:$0xff]  ;;  %v10573_v20 = vld [vmem:[%s10483_s27 + $0xc9] sm:$0xff] }
  0x19   : > { %8879 = vmatmul.mubr.msk.f32.gmra.mrb[2].mxu0 %vm291_vm1, %v10501_v6  ;;  %v10576_v21 = vld [vmem:[%s10483_s27 + $0xd9] sm:$0xff]  ;;  %v10583_v22 = vld [vmem:[%s10483_s27 + $0xe1] sm:$0xff]  ;;  %v10586_v23 = vld [vmem:[%s10483_s27 + $0xf1] sm:$0xff] }
  0x1a   : > { %8881 = vmatprep.mubr.msk.f32.mxu0 %vm291_vm1, %v10504_v7  ;;  %v10593_v24 = vld [vmem:[%s10483_s27 + $0xf9] sm:$0xff]  ;;  %v10596_v25 = vld [vmem:[%s10483_s27 + $0x109] sm:$0xff]  ;;  %v10603_v26 = vld [vmem:[%s10483_s27 + $0x111] sm:$0xff] }
  0x1b   : > { %v10606_v27 = vld [vmem:[%s10483_s27 + $0x121] sm:$0xff]  ;;  %v10613_v28 = vld [vmem:[%s10483_s27 + $0x129] sm:$0xff]  ;;  %v10616_v29 = vld [vmem:[%s10483_s27 + $0x139] sm:$0xff] }
  0x1c   : > { %12557 = vst [vmem:[#allocation3_spill] sm:$0xff] %v10606_v27  ;;  %12558 = vst [vmem:[#allocation4_spill] sm:$0xff] %v10613_v28  ;;  %v10623_v30 = vld [vmem:[%s10483_s27 + $0x141] sm:$0xff]  ;;  %v10626_v31 = vld [vmem:[%s10483_s27 + $0x151] sm:$0xff] }
  0x1d   : > { %8882 = vmatmul.mubr.msk.f32.gmra.mrb[4].mxu0 %vm291_vm1, %v10513_v8  ;;  %12559 = vst [vmem:[#allocation5_spill] sm:$0xff] %v10616_v29  ;;  %12560 = vst [vmem:[#allocation6_spill] sm:$0xff] %v10623_v30  ;;  %v10633_v32 = vld [vmem:[%s10483_s27 + $0x159] sm:$0xff]  ;;  %v10636_v33 = vld [vmem:[%s10483_s27 + $0x169] sm:$0xff] }
  0x1e   : > { %8884 = vmatprep.mubr.msk.f32.mxu0 %vm291_vm1, %v10516_v9  ;;  %12561 = vst [vmem:[#allocation7_spill] sm:$0xff] %v10626_v31  ;;  %12562 = vst [vmem:[#allocation8_spill] sm:$0xff] %v10633_v32  ;;  %v10643_v34 = vld [vmem:[%s10483_s27 + $0x171] sm:$0xff]  ;;  %v225_v35 = vld [vmem:[%s10483_s27] sm:$0xff] }
  0x1f   : > { %12563 = vst [vmem:[#allocation9_spill] sm:$0xff] %v10636_v33  ;;  %12564 = vst [vmem:[#allocation10_spill] sm:$0xff] %v10643_v34  ;;  %v226_v36 = vld [vmem:[%s10483_s27 + $0x8] sm:$0xff]  ;;  %v10651_v37 = vld [vmem:[%s10483_s27 + $0x18] sm:$0xff] }
  0x20   : > { %v10664_v39 = vld [vmem:[%s10483_s27 + $0x20] sm:$0xff]  ;;  %v10667_v40 = vld [vmem:[%s10483_s27 + $0x30] sm:$0xff]  ;;  %v10676_v41 = vld [vmem:[%s10483_s27 + $0x38] sm:$0xff] }
  0x21   : > { %8885 = vmatmul.mubr.msk.f32.gmra.mrb[6].mxu0 %vm291_vm1, %v10523_v10  ;;  %v10679_v42 = vld [vmem:[%s10483_s27 + $0x48] sm:$0xff]  ;;  %v10686_v43 = vld [vmem:[%s10483_s27 + $0x50] sm:$0xff]  ;;  %v10689_v44 = vld [vmem:[%s10483_s27 + $0x60] sm:$0xff] }
  0x22   : > { %8887 = vmatprep.mubr.msk.f32.mxu0 %vm291_vm1, %v10526_v11  ;;  %v10696_v45 = vld [vmem:[%s10483_s27 + $0x68] sm:$0xff]  ;;  %v10699_v46 = vld [vmem:[%s10483_s27 + $0x78] sm:$0xff]  ;;  %v10706_v47 = vld [vmem:[%s10483_s27 + $0x80] sm:$0xff] }
  0x23   : > { %v10709_v48 = vld [vmem:[%s10483_s27 + $0x90] sm:$0xff]  ;;  %v10716_v49 = vld [vmem:[%s10483_s27 + $0x98] sm:$0xff]  ;;  %v10719_v50 = vld [vmem:[%s10483_s27 + $0xa8] sm:$0xff] }
  0x24   : > { %v10726_v51 = vld [vmem:[%s10483_s27 + $0xb0] sm:$0xff]  ;;  %v10729_v52 = vld [vmem:[%s10483_s27 + $0xc0] sm:$0xff]  ;;  %v10736_v53 = vld [vmem:[%s10483_s27 + $0xc8] sm:$0xff] }
  0x25   : > { %8888 = vmatmul.mubr.msk.f32.gmra.mrb[8].mxu0 %vm291_vm1, %v10533_v12  ;;  %v10739_v54 = vld [vmem:[%s10483_s27 + $0xd8] sm:$0xff]  ;;  %v10746_v55 = vld [vmem:[%s10483_s27 + $0xe0] sm:$0xff]  ;;  %v10749_v56 = vld [vmem:[%s10483_s27 + $0xf0] sm:$0xff] }
  0x26   : > { %8890 = vmatprep.mubr.msk.f32.mxu0 %vm291_vm1, %v10536_v13  ;;  %v10756_v57 = vld [vmem:[%s10483_s27 + $0xf8] sm:$0xff]  ;;  %v10759_v58 = vld [vmem:[%s10483_s27 + $0x108] sm:$0xff]  ;;  %v10766_v59 = vld [vmem:[%s10483_s27 + $0x110] sm:$0xff] }
  0x27   : > { %v10769_v60 = vld [vmem:[%s10483_s27 + $0x120] sm:$0xff]  ;;  %v10776_v61 = vld [vmem:[%s10483_s27 + $0x128] sm:$0xff]  ;;  %v10779_v62 = vld [vmem:[%s10483_s27 + $0x138] sm:$0xff] }
  0x28   : > { %v10786_v63 = vld [vmem:[%s10483_s27 + $0x140] sm:$0xff]  ;;  %v10789_v0 = vld [vmem:[%s10483_s27 + $0x150] sm:$0xff]  ;;  %v10796_v1 = vld [vmem:[%s10483_s27 + $0x158] sm:$0xff] }
  0x29   : > { %8891 = vmatmul.mubr.msk.f32.gmra.mrb[10].mxu0 %vm291_vm1, %v10543_v14  ;;  %v10799_v2 = vld [vmem:[%s10483_s27 + $0x168] sm:$0xff]  ;;  %v10806_v3 = vld [vmem:[%s10483_s27 + $0x170] sm:$0xff] }
  0x2a   : > { %8893 = vmatprep.mubr.msk.f32.mxu0 %vm291_vm1, %v10546_v15 }
  0x2d   : > { %8894 = vmatmul.mubr.msk.f32.gmra.mrb[12].mxu0 %vm291_vm1, %v10553_v16 }
  0x2e   : > { %8896 = vmatprep.mubr.msk.f32.mxu0 %vm291_vm1, %v10556_v17 }
  0x31   : > { %8897 = vmatmul.mubr.msk.f32.gmra.mrb[14].mxu0 %vm291_vm1, %v10563_v18 }
  0x32   : > { %8899 = vmatprep.mubr.msk.f32.mxu0 %vm291_vm1, %v10566_v19 }
  0x35   : > { %8900 = vmatmul.mubr.msk.f32.gmra.mrb[16].mxu0 %vm291_vm1, %v10573_v20 }
  0x36   : > { %8902 = vmatprep.mubr.msk.f32.mxu0 %vm291_vm1, %v10576_v21 }
  0x39   : > { %8903 = vmatmul.mubr.msk.f32.gmra.mrb[18].mxu0 %vm291_vm1, %v10583_v22 }
  0x3a   : > { %8905 = vmatprep.mubr.msk.f32.mxu0 %vm291_vm1, %v10586_v23 }
  0x3d   : > { %8906 = vmatmul.mubr.msk.f32.gmra.mrb[20].mxu0 %vm291_vm1, %v10593_v24 }
  0x3e   : > { %8908 = vmatprep.mubr.msk.f32.mxu0 %vm291_vm1, %v10596_v25 }
  0x41   : > { %8909 = vmatmul.mubr.msk.f32.gmra.mrb[22].mxu0 %vm291_vm1, %v10603_v26 }
  0x42   : > { %8911 = vmatprep.mubr.msk.f32.mxu0 %vm291_vm1, %v10606_v27 }
  0x45   : > { %8912 = vmatmul.mubr.msk.f32.gmra.mrb[24].mxu0 %vm291_vm1, %v10613_v28 }
  0x46   : > { %8914 = vmatprep.mubr.msk.f32.mxu0 %vm291_vm1, %v10616_v29 }
  0x49   : > { %8915 = vmatmul.mubr.msk.f32.gmra.mrb[26].mxu0 %vm291_vm1, %v10623_v30 }
  0x4a   : > { %8917 = vmatprep.mubr.msk.f32.mxu0 %vm291_vm1, %v10626_v31 }
  0x4d   : > { %8918 = vmatmul.mubr.msk.f32.gmra.mrb[28].mxu0 %vm291_vm1, %v10633_v32  ;;  %v10852_v32 = vld [vmem:[%s10483_s27 + $0x62] sm:$0xff] }
  0x4e   : > { %8920 = vmatprep.mubr.msk.f32.mxu0 %vm291_vm1, %v10636_v33  ;;  %v10830_v33 = vld [vmem:[%s10483_s27 + $0x32] sm:$0xff]  ;;  %12571 = vst [vmem:[#allocation17_spill] sm:$0xff] %v10852_v32 }
  0x4f   : > { %12567 = vst [vmem:[#allocation13_spill] sm:$0xff] %v10830_v33 }
  0x51   : > { %8921 = vmatmul.mubr.msk.f32.gmra.mrb[30].mxu0 %vm291_vm1, %v10643_v34  ;;  %v10819_v34 = vld [vmem:[%s12422_s1 + $0x10] sm:$0xf] }
  0x52   : > { %8925 = vmatprep.mubr.msk.f32.mxu0 %vm291_vm1, %v225_v35  ;;  %v942_v35 = vld [vmem:[%s10483_s27 + $0xa] sm:$0xff] }
  0x55   : > { %8926 = vmatmul.mubr.msk.f32.vlgmr.msra.gmra.mrb[0].mxu0 %vm291_vm1, %v226_v36  ;;  %v10814_v36 = vld [vmem:[%s10483_s27 + $0x1a] sm:$0xff] }
  0x56   : > { %8974 = vmatpush3.msk.msra.mxu0 %vm388_vm0, %v10494_v5  ;;  %8928 = vmatprep.mubr.msk.f32.mxu0 %vm291_vm1, %v10651_v37  ;;  %v941_v5 = vld [vmem:[%s10483_s27 + $0x2] sm:$0xff]  ;;  %12565 = vst [vmem:[#allocation11_spill] sm:$0xff] %v10814_v36 }
  0x57   : > { %9023 = vmatprep.subr.msk.mxu0 %vm388_vm0, %v10656_v38 }
  0x59   : > { %8929 = vmatmul.mubr.msk.f32.gmra.mrb[2].mxu0 %vm291_vm1, %v10664_v39 }
  0x5a   : > { %8931 = vmatprep.mubr.msk.f32.mxu0 %vm291_vm1, %v10667_v40 }
  0x5d   : > { %8932 = vmatmul.mubr.msk.f32.gmra.mrb[4].mxu0 %vm291_vm1, %v10676_v41 }
  0x5e   : > { %8934 = vmatprep.mubr.msk.f32.mxu0 %vm291_vm1, %v10679_v42 }
  0x61   : > { %8935 = vmatmul.mubr.msk.f32.gmra.mrb[6].mxu0 %vm291_vm1, %v10686_v43 }
  0x62   : > { %8937 = vmatprep.mubr.msk.f32.mxu0 %vm291_vm1, %v10689_v44 }
  0x65   : > { %8938 = vmatmul.mubr.msk.f32.gmra.mrb[8].mxu0 %vm291_vm1, %v10696_v45 }
  0x66   : > { %8940 = vmatprep.mubr.msk.f32.mxu0 %vm291_vm1, %v10699_v46 }
  0x69   : > { %8941 = vmatmul.mubr.msk.f32.gmra.mrb[10].mxu0 %vm291_vm1, %v10706_v47 }
  0x6a   : > { %8943 = vmatprep.mubr.msk.f32.mxu0 %vm291_vm1, %v10709_v48 }
  0x6d   : > { %8944 = vmatmul.mubr.msk.f32.gmra.mrb[12].mxu0 %vm291_vm1, %v10716_v49 }
  0x6e   : > { %8946 = vmatprep.mubr.msk.f32.mxu0 %vm291_vm1, %v10719_v50 }
  0x71   : > { %8947 = vmatmul.mubr.msk.f32.gmra.mrb[14].mxu0 %vm291_vm1, %v10726_v51 }
  0x72   : > { %8949 = vmatprep.mubr.msk.f32.mxu0 %vm291_vm1, %v10729_v52 }
  0x75   : > { %8950 = vmatmul.mubr.msk.f32.gmra.mrb[16].mxu0 %vm291_vm1, %v10736_v53 }
  0x76   : > { %8952 = vmatprep.mubr.msk.f32.mxu0 %vm291_vm1, %v10739_v54 }
  0x79   : > { %8953 = vmatmul.mubr.msk.f32.gmra.mrb[18].mxu0 %vm291_vm1, %v10746_v55 }
  0x7a   : > { %8955 = vmatprep.mubr.msk.f32.mxu0 %vm291_vm1, %v10749_v56 }
  0x7d   : > { %8956 = vmatmul.mubr.msk.f32.gmra.mrb[20].mxu0 %vm291_vm1, %v10756_v57 }
  0x7e   : > { %8958 = vmatprep.mubr.msk.f32.mxu0 %vm291_vm1, %v10759_v58 }
  0x81   : > { %8959 = vmatmul.mubr.msk.f32.gmra.mrb[22].mxu0 %vm291_vm1, %v10766_v59 }
  0x82   : > { %8961 = vmatprep.mubr.msk.f32.mxu0 %vm291_vm1, %v10769_v60 }
  0x85   : > { %8962 = vmatmul.mubr.msk.f32.gmra.mrb[24].mxu0 %vm291_vm1, %v10776_v61 }
  0x86   : > { %8964 = vmatprep.mubr.msk.f32.mxu0 %vm291_vm1, %v10779_v62 }
  0x89   : > { %8965 = vmatmul.mubr.msk.f32.gmra.mrb[26].mxu0 %vm291_vm1, %v10786_v63 }
  0x8a   : > { %8967 = vmatprep.mubr.msk.f32.mxu0 %vm291_vm1, %v10789_v0 }
  0x8d   : > { %8968 = vmatmul.mubr.msk.f32.gmra.mrb[28].mxu0 %vm291_vm1, %v10796_v1 }
  0x8e   : > { %8970 = vmatprep.mubr.msk.f32.mxu0 %vm291_vm1, %v10799_v2 }
  0x91   : > { %8971 = vmatmul.mubr.msk.f32.gmra.mrb[30].mxu0 %vm291_vm1, %v10806_v3 }
  0x92   : > { %8975 = vmatprep.mubr.msk.f32.mxu0 %vm291_vm1, %v941_v5  ;;  %v10827_v5 = vld [vmem:[%s10483_s27 + $0x22] sm:$0xff] }
  0x93   : > { %12566 = vst [vmem:[#allocation12_spill] sm:$0xff] %v10827_v5 }
  0x95   : > { %8976 = vmatmul.mubr.msk.f32.vlgmr.msra.gmra.mrb[0].mxu0 %vm291_vm1, %v942_v35  ;;  %v10842_v35 = vld [vmem:[%s10483_s27 + $0x4a] sm:$0xff] }
  0x96   : > { %9024 = vmatpush3.msk.msra.mxu0 %vm388_vm0, %v10656_v38  ;;  %8978 = vmatprep.mubr.msk.f32.mxu0 %vm291_vm1, %v10814_v36  ;;  %v10839_v38 = vld [vmem:[%s10483_s27 + $0x3a] sm:$0xff]  ;;  %12569 = vst [vmem:[#allocation15_spill] sm:$0xff] %v10842_v35  ;;  %v10849_v36 = vld [vmem:[%s10483_s27 + $0x52] sm:$0xff] }
  0x97   : > { %9073 = vmatprep.subr.msk.mxu0 %vm388_vm0, %v10819_v34  ;;  %12568 = vst [vmem:[#allocation14_spill] sm:$0xff] %v10839_v38  ;;  %12570 = vst [vmem:[#allocation16_spill] sm:$0xff] %v10849_v36 }
  0x99   : > { %8979 = vmatmul.mubr.msk.f32.gmra.mrb[2].mxu0 %vm291_vm1, %v10827_v5  ;;  %v10862_v5 = vld [vmem:[%s10483_s27 + $0x7a] sm:$0xff] }
  0x9a   : > { %8981 = vmatprep.mubr.msk.f32.mxu0 %vm291_vm1, %v10830_v33  ;;  %v10859_v33 = vld [vmem:[%s10483_s27 + $0x6a] sm:$0xff]  ;;  %12573 = vst [vmem:[#allocation19_spill] sm:$0xff] %v10862_v5 }
  0x9b   : > { %12572 = vst [vmem:[#allocation18_spill] sm:$0xff] %v10859_v33 }
  0x9d   : > { %8982 = vmatmul.mubr.msk.f32.gmra.mrb[4].mxu0 %vm291_vm1, %v10839_v38  ;;  %v10872_v38 = vld [vmem:[%s10483_s27 + $0x92] sm:$0xff] }
  0x9e   : > { %8984 = vmatprep.mubr.msk.f32.mxu0 %vm291_vm1, %v10842_v35  ;;  %v10869_v35 = vld [vmem:[%s10483_s27 + $0x82] sm:$0xff]  ;;  %12575 = vst [vmem:[#allocation21_spill] sm:$0xff] %v10872_v38 }
  0x9f   : > { %12574 = vst [vmem:[#allocation20_spill] sm:$0xff] %v10869_v35 }
  0xa1   : > { %8985 = vmatmul.mubr.msk.f32.gmra.mrb[6].mxu0 %vm291_vm1, %v10849_v36  ;;  %v10882_v36 = vld [vmem:[%s10483_s27 + $0xaa] sm:$0xff] }
  0xa2   : > { %8987 = vmatprep.mubr.msk.f32.mxu0 %vm291_vm1, %v10852_v32  ;;  %v10879_v32 = vld [vmem:[%s10483_s27 + $0x9a] sm:$0xff]  ;;  %12577 = vst [vmem:[#allocation23_spill] sm:$0xff] %v10882_v36 }
  0xa3   : > { %12576 = vst [vmem:[#allocation22_spill] sm:$0xff] %v10879_v32 }
  0xa5   : > { %8988 = vmatmul.mubr.msk.f32.gmra.mrb[8].mxu0 %vm291_vm1, %v10859_v33  ;;  %v10892_v33 = vld [vmem:[%s10483_s27 + $0xc2] sm:$0xff] }
  0xa6   : > { %8990 = vmatprep.mubr.msk.f32.mxu0 %vm291_vm1, %v10862_v5  ;;  %v10889_v5 = vld [vmem:[%s10483_s27 + $0xb2] sm:$0xff]  ;;  %12579 = vst [vmem:[#allocation25_spill] sm:$0xff] %v10892_v33 }
  0xa7   : > { %12578 = vst [vmem:[#allocation24_spill] sm:$0xff] %v10889_v5 }
  0xa9   : > { %8991 = vmatmul.mubr.msk.f32.gmra.mrb[10].mxu0 %vm291_vm1, %v10869_v35  ;;  %v10902_v35 = vld [vmem:[%s10483_s27 + $0xda] sm:$0xff] }
  0xaa   : > { %8993 = vmatprep.mubr.msk.f32.mxu0 %vm291_vm1, %v10872_v38  ;;  %v10899_v38 = vld [vmem:[%s10483_s27 + $0xca] sm:$0xff]  ;;  %12581 = vst [vmem:[#allocation27_spill] sm:$0xff] %v10902_v35 }
  0xab   : > { %12580 = vst [vmem:[#allocation26_spill] sm:$0xff] %v10899_v38 }
  0xad   : > { %8994 = vmatmul.mubr.msk.f32.gmra.mrb[12].mxu0 %vm291_vm1, %v10879_v32  ;;  %v10912_v32 = vld [vmem:[%s10483_s27 + $0xf2] sm:$0xff] }
  0xae   : > { %8996 = vmatprep.mubr.msk.f32.mxu0 %vm291_vm1, %v10882_v36  ;;  %v10909_v36 = vld [vmem:[%s10483_s27 + $0xe2] sm:$0xff]  ;;  %12583 = vst [vmem:[#allocation29_spill] sm:$0xff] %v10912_v32 }
  0xaf   : > { %12582 = vst [vmem:[#allocation28_spill] sm:$0xff] %v10909_v36 }
  0xb1   : > { %8997 = vmatmul.mubr.msk.f32.gmra.mrb[14].mxu0 %vm291_vm1, %v10889_v5  ;;  %v10922_v5 = vld [vmem:[%s10483_s27 + $0x10a] sm:$0xff] }
  0xb2   : > { %8999 = vmatprep.mubr.msk.f32.mxu0 %vm291_vm1, %v10892_v33  ;;  %v10919_v33 = vld [vmem:[%s10483_s27 + $0xfa] sm:$0xff]  ;;  %12585 = vst [vmem:[#allocation31_spill] sm:$0xff] %v10922_v5 }
  0xb3   : > { %12584 = vst [vmem:[#allocation30_spill] sm:$0xff] %v10919_v33 }
  0xb5   : > { %9000 = vmatmul.mubr.msk.f32.gmra.mrb[16].mxu0 %vm291_vm1, %v10899_v38  ;;  %v10932_v38 = vld [vmem:[%s10483_s27 + $0x122] sm:$0xff] }
  0xb6   : > { %9002 = vmatprep.mubr.msk.f32.mxu0 %vm291_vm1, %v10902_v35  ;;  %v10929_v35 = vld [vmem:[%s10483_s27 + $0x112] sm:$0xff]  ;;  %12587 = vst [vmem:[#allocation33_spill] sm:$0xff] %v10932_v38 }
  0xb7   : > { %12586 = vst [vmem:[#allocation32_spill] sm:$0xff] %v10929_v35 }
  0xb9   : > { %9003 = vmatmul.mubr.msk.f32.gmra.mrb[18].mxu0 %vm291_vm1, %v10909_v36  ;;  %v10942_v36 = vld [vmem:[%s10483_s27 + $0x13a] sm:$0xff] }
  0xba   : > { %9005 = vmatprep.mubr.msk.f32.mxu0 %vm291_vm1, %v10912_v32  ;;  %v10939_v32 = vld [vmem:[%s10483_s27 + $0x12a] sm:$0xff]  ;;  %12588 = vst [vmem:[#allocation34_spill] sm:$0xff] %v10942_v36 }
  0xbd   : > { %9006 = vmatmul.mubr.msk.f32.gmra.mrb[20].mxu0 %vm291_vm1, %v10919_v33  ;;  %v10952_v33 = vld [vmem:[%s10483_s27 + $0x152] sm:$0xff] }
  0xbe   : > { %9008 = vmatprep.mubr.msk.f32.mxu0 %vm291_vm1, %v10922_v5  ;;  %v10949_v5 = vld [vmem:[%s10483_s27 + $0x142] sm:$0xff]  ;;  %12589 = vst [vmem:[#allocation35_spill] sm:$0xff] %v10952_v33 }
  0xc1   : > { %9009 = vmatmul.mubr.msk.f32.gmra.mrb[22].mxu0 %vm291_vm1, %v10929_v35  ;;  %v10962_v35 = vld [vmem:[%s10483_s27 + $0x16a] sm:$0xff] }
  0xc2   : > { %9011 = vmatprep.mubr.msk.f32.mxu0 %vm291_vm1, %v10932_v38  ;;  %v10959_v38 = vld [vmem:[%s10483_s27 + $0x15a] sm:$0xff]  ;;  %12590 = vst [vmem:[#allocation36_spill] sm:$0xff] %v10962_v35 }
  0xc5   : > { %9012 = vmatmul.mubr.msk.f32.gmra.mrb[24].mxu0 %vm291_vm1, %v10939_v32 }
  0xc6   : > { %9014 = vmatprep.mubr.msk.f32.mxu0 %vm291_vm1, %v10942_v36  ;;  %v10969_v36 = vld [vmem:[%s10483_s27 + $0x172] sm:$0xff] }
  0xc9   : > { %9015 = vmatmul.mubr.msk.f32.gmra.mrb[26].mxu0 %vm291_vm1, %v10949_v5 }
  0xca   : > { %9017 = vmatprep.mubr.msk.f32.mxu0 %vm291_vm1, %v10952_v33  ;;  %v2141_v33 = vld [vmem:[%s12422_s1 + $0x14] sm:$0xf] }
  0xcd   : > { %9018 = vmatmul.mubr.msk.f32.gmra.mrb[28].mxu0 %vm291_vm1, %v10959_v38 }
  0xce   : > { %9020 = vmatprep.mubr.msk.f32.mxu0 %vm291_vm1, %v10962_v35 }
  0xd1   : > { %9021 = vmatmul.mubr.msk.f32.gmra.mrb[30].mxu0 %vm291_vm1, %v10969_v36 }
  0xd2   : > { %9025 = vmatprep.mubr.msk.f32.mxu0 %vm291_vm1, %v10651_v37  ;;  %v11045_v37 = vld [vmem:[%s10483_s27 + $0x188] sm:$0xff] }
  0xd5   : > { %9026 = vmatmul.mubr.msk.f32.vlgmr.msra.gmra.mrb[0].mxu0 %vm291_vm1, %v10664_v39  ;;  %v2531_v39 = vld [vmem:[%s12422_s1 + $0x18] sm:$0xf] }
  0xd6   : > { %9074 = vmatpush3.msk.msra.mxu0 %vm388_vm0, %v10819_v34  ;;  %9028 = vmatprep.mubr.msk.f32.mxu0 %vm291_vm1, %v10667_v40  ;;  %v11038_v34 = vld [vmem:[%s10483_s27 + $0x180] sm:$0xff] }
  0xd7   : > { %9123 = vmatprep.subr.msk.mxu0 %vm388_vm0, %v2141_v33 }
  0xd9   : > { %9029 = vmatmul.mubr.msk.f32.gmra.mrb[2].mxu0 %vm291_vm1, %v10676_v41 }
  0xda   : > { %9031 = vmatprep.mubr.msk.f32.mxu0 %vm291_vm1, %v10679_v42 }
  0xdd   : > { %9032 = vmatmul.mubr.msk.f32.gmra.mrb[4].mxu0 %vm291_vm1, %v10686_v43 }
  0xde   : > { %9034 = vmatprep.mubr.msk.f32.mxu0 %vm291_vm1, %v10689_v44 }
  0xe1   : > { %9035 = vmatmul.mubr.msk.f32.gmra.mrb[6].mxu0 %vm291_vm1, %v10696_v45 }
  0xe2   : > { %9037 = vmatprep.mubr.msk.f32.mxu0 %vm291_vm1, %v10699_v46 }
  0xe5   : > { %9038 = vmatmul.mubr.msk.f32.gmra.mrb[8].mxu0 %vm291_vm1, %v10706_v47 }
  0xe6   : > { %9040 = vmatprep.mubr.msk.f32.mxu0 %vm291_vm1, %v10709_v48 }
  0xe9   : > { %9041 = vmatmul.mubr.msk.f32.gmra.mrb[10].mxu0 %vm291_vm1, %v10716_v49 }
  0xea   : > { %9043 = vmatprep.mubr.msk.f32.mxu0 %vm291_vm1, %v10719_v50 }
  0xed   : > { %9044 = vmatmul.mubr.msk.f32.gmra.mrb[12].mxu0 %vm291_vm1, %v10726_v51 }
  0xee   : > { %9046 = vmatprep.mubr.msk.f32.mxu0 %vm291_vm1, %v10729_v52 }
  0xf1   : > { %9047 = vmatmul.mubr.msk.f32.gmra.mrb[14].mxu0 %vm291_vm1, %v10736_v53 }
  0xf2   : > { %9049 = vmatprep.mubr.msk.f32.mxu0 %vm291_vm1, %v10739_v54 }
  0xf5   : > { %9050 = vmatmul.mubr.msk.f32.gmra.mrb[16].mxu0 %vm291_vm1, %v10746_v55 }
  0xf6   : > { %9052 = vmatprep.mubr.msk.f32.mxu0 %vm291_vm1, %v10749_v56 }
  0xf9   : > { %9053 = vmatmul.mubr.msk.f32.gmra.mrb[18].mxu0 %vm291_vm1, %v10756_v57 }
  0xfa   : > { %9055 = vmatprep.mubr.msk.f32.mxu0 %vm291_vm1, %v10759_v58 }
  0xfd   : > { %9056 = vmatmul.mubr.msk.f32.gmra.mrb[20].mxu0 %vm291_vm1, %v10766_v59 }
  0xfe   : > { %9058 = vmatprep.mubr.msk.f32.mxu0 %vm291_vm1, %v10769_v60 }
 0x101   : > { %9059 = vmatmul.mubr.msk.f32.gmra.mrb[22].mxu0 %vm291_vm1, %v10776_v61 }
 0x102   : > { %9061 = vmatprep.mubr.msk.f32.mxu0 %vm291_vm1, %v10779_v62 }
 0x105   : > { %9062 = vmatmul.mubr.msk.f32.gmra.mrb[24].mxu0 %vm291_vm1, %v10786_v63 }
 0x106   : > { %9064 = vmatprep.mubr.msk.f32.mxu0 %vm291_vm1, %v10789_v0 }
 0x109   : > { %9065 = vmatmul.mubr.msk.f32.gmra.mrb[26].mxu0 %vm291_vm1, %v10796_v1 }
 0x10a   : > { %9067 = vmatprep.mubr.msk.f32.mxu0 %vm291_vm1, %v10799_v2 }
 0x10d   : > { %9068 = vmatmul.mubr.msk.f32.gmra.mrb[28].mxu0 %vm291_vm1, %v10806_v3 }
 0x10e   : > { %9070 = vmatprep.mubr.msk.f32.mxu0 %vm291_vm1, %v11038_v34 }
 0x111   : > { %9071 = vmatmul.mubr.msk.f32.gmra.mrb[30].mxu0 %vm291_vm1, %v11045_v37 }
 0x112   : > { %9075 = vmatprep.mubr.msk.f32.mxu0 %vm291_vm1, %v10488_v4  ;;  %v12591_v4 = vld [vmem:[#allocation8_spill] sm:$0xff] }
 0x115   : > { %9076 = vmatmul.mubr.msk.f32.vlgmr.msra.gmra.mrb[0].mxu0 %vm291_vm1, %v10501_v6  ;;  %v12592_v6 = vld [vmem:[#allocation9_spill] sm:$0xff] }
 0x116   : > { %9124 = vmatpush3.msk.msra.mxu0 %vm388_vm0, %v2141_v33  ;;  %9078 = vmatprep.mubr.msk.f32.mxu0 %vm291_vm1, %v10504_v7  ;;  %v11113_v33 = vld [vmem:[%s10483_s27 + $0x181] sm:$0xff] }
 0x117   : > { %9173 = vmatprep.subr.msk.mxu0 %vm388_vm0, %v2531_v39  ;;  %12593 = vst [vmem:[#allocation37_spill] sm:$0xff] %v11113_v33 }
 0x119   : > { %9079 = vmatmul.mubr.msk.f32.gmra.mrb[2].mxu0 %vm291_vm1, %v10513_v8 }
 0x11a   : > { %9081 = vmatprep.mubr.msk.f32.mxu0 %vm291_vm1, %v10516_v9 }
 0x11d   : > { %9082 = vmatmul.mubr.msk.f32.gmra.mrb[4].mxu0 %vm291_vm1, %v10523_v10 }
 0x11e   : > { %9084 = vmatprep.mubr.msk.f32.mxu0 %vm291_vm1, %v10526_v11 }
 0x121   : > { %9085 = vmatmul.mubr.msk.f32.gmra.mrb[6].mxu0 %vm291_vm1, %v10533_v12 }
 0x122   : > { %9087 = vmatprep.mubr.msk.f32.mxu0 %vm291_vm1, %v10536_v13 }
 0x125   : > { %9088 = vmatmul.mubr.msk.f32.gmra.mrb[8].mxu0 %vm291_vm1, %v10543_v14 }
 0x126   : > { %9090 = vmatprep.mubr.msk.f32.mxu0 %vm291_vm1, %v10546_v15 }
 0x129   : > { %9091 = vmatmul.mubr.msk.f32.gmra.mrb[10].mxu0 %vm291_vm1, %v10553_v16 }
 0x12a   : > { %9093 = vmatprep.mubr.msk.f32.mxu0 %vm291_vm1, %v10556_v17 }
 0x12d   : > { %9094 = vmatmul.mubr.msk.f32.gmra.mrb[12].mxu0 %vm291_vm1, %v10563_v18 }
 0x12e   : > { %9096 = vmatprep.mubr.msk.f32.mxu0 %vm291_vm1, %v10566_v19 }
 0x131   : > { %9097 = vmatmul.mubr.msk.f32.gmra.mrb[14].mxu0 %vm291_vm1, %v10573_v20 }
 0x132   : > { %9099 = vmatprep.mubr.msk.f32.mxu0 %vm291_vm1, %v10576_v21 }
 0x135   : > { %9100 = vmatmul.mubr.msk.f32.gmra.mrb[16].mxu0 %vm291_vm1, %v10583_v22 }
 0x136   : > { %9102 = vmatprep.mubr.msk.f32.mxu0 %vm291_vm1, %v10586_v23 }
 0x139   : > { %9103 = vmatmul.mubr.msk.f32.gmra.mrb[18].mxu0 %vm291_vm1, %v10593_v24 }
 0x13a   : > { %9105 = vmatprep.mubr.msk.f32.mxu0 %vm291_vm1, %v10596_v25 }
 0x13d   : > { %9106 = vmatmul.mubr.msk.f32.gmra.mrb[20].mxu0 %vm291_vm1, %v10603_v26 }
 0x13e   : > { %9108 = vmatprep.mubr.msk.f32.mxu0 %vm291_vm1, %v10606_v27  ;;  %v12594_v27 = vld [vmem:[#allocation10_spill] sm:$0xff] }
 0x141   : > { %9109 = vmatmul.mubr.msk.f32.gmra.mrb[22].mxu0 %vm291_vm1, %v10613_v28  ;;  %v12606_v28 = vld [vmem:[#allocation21_spill] sm:$0xff] }
 0x142   : > { %9111 = vmatprep.mubr.msk.f32.mxu0 %vm291_vm1, %v10616_v29  ;;  %v11120_v29 = vld [vmem:[%s10483_s27 + $0x189] sm:$0xff] }
 0x143   : > { %12595 = vst [vmem:[#allocation38_spill] sm:$0xff] %v11120_v29 }
 0x145   : > { %9112 = vmatmul.mubr.msk.f32.gmra.mrb[24].mxu0 %vm291_vm1, %v10623_v30  ;;  %v12602_v30 = vld [vmem:[#allocation17_spill] sm:$0xff] }
 0x146   : > { %9114 = vmatprep.mubr.msk.f32.mxu0 %vm291_vm1, %v10626_v31  ;;  %v12596_v31 = vld [vmem:[#allocation11_spill] sm:$0xff] }
 0x149   : > { %9115 = vmatmul.mubr.msk.f32.gmra.mrb[26].mxu0 %vm291_vm1, %v12591_v4  ;;  %v12597_v4 = vld [vmem:[#allocation12_spill] sm:$0xff] }
 0x14a   : > { %9117 = vmatprep.mubr.msk.f32.mxu0 %vm291_vm1, %v12592_v6  ;;  %v2920_v6 = vld [vmem:[%s12422_s1 + $0x1c] sm:$0xf] }
 0x14d   : > { %9118 = vmatmul.mubr.msk.f32.gmra.mrb[28].mxu0 %vm291_vm1, %v12594_v27  ;;  %v12598_v27 = vld [vmem:[#allocation13_spill] sm:$0xff] }
 0x14e   : > { %9120 = vmatprep.mubr.msk.f32.mxu0 %vm291_vm1, %v11113_v33  ;;  %v12599_v33 = vld [vmem:[#allocation14_spill] sm:$0xff] }
 0x151   : > { %9121 = vmatmul.mubr.msk.f32.gmra.mrb[30].mxu0 %vm291_vm1, %v11120_v29  ;;  %v12600_v29 = vld [vmem:[#allocation15_spill] sm:$0xff] }
 0x152   : > { %9125 = vmatprep.mubr.msk.f32.mxu0 %vm291_vm1, %v12596_v31  ;;  %v12601_v31 = vld [vmem:[#allocation16_spill] sm:$0xff] }
 0x155   : > { %9126 = vmatmul.mubr.msk.f32.vlgmr.msra.gmra.mrb[0].mxu0 %vm291_vm1, %v12597_v4  ;;  %v12603_v4 = vld [vmem:[#allocation18_spill] sm:$0xff] }
 0x156   : > { %9174 = vmatpush3.msk.msra.mxu0 %vm388_vm0, %v2531_v39  ;;  %9128 = vmatprep.mubr.msk.f32.mxu0 %vm291_vm1, %v12598_v27  ;;  %v12604_v39 = vld [vmem:[#allocation19_spill] sm:$0xff]  ;;  %v12605_v27 = vld [vmem:[#allocation20_spill] sm:$0xff] }
 0x157   : > { %9223 = vmatprep.subr.msk.mxu0 %vm388_vm0, %v2920_v6 }
 0x159   : > { %9129 = vmatmul.mubr.msk.f32.gmra.mrb[2].mxu0 %vm291_vm1, %v12599_v33  ;;  %v12607_v33 = vld [vmem:[#allocation22_spill] sm:$0xff] }
 0x15a   : > { %9131 = vmatprep.mubr.msk.f32.mxu0 %vm291_vm1, %v12600_v29  ;;  %v12608_v29 = vld [vmem:[#allocation23_spill] sm:$0xff] }
 0x15d   : > { %9132 = vmatmul.mubr.msk.f32.gmra.mrb[4].mxu0 %vm291_vm1, %v12601_v31  ;;  %v12609_v31 = vld [vmem:[#allocation24_spill] sm:$0xff] }
 0x15e   : > { %9134 = vmatprep.mubr.msk.f32.mxu0 %vm291_vm1, %v12602_v30  ;;  %v12610_v30 = vld [vmem:[#allocation25_spill] sm:$0xff] }
 0x161   : > { %9135 = vmatmul.mubr.msk.f32.gmra.mrb[6].mxu0 %vm291_vm1, %v12603_v4 }
 0x162   : > { %9137 = vmatprep.mubr.msk.f32.mxu0 %vm291_vm1, %v12604_v39  ;;  %v12611_v39 = vld [vmem:[#allocation26_spill] sm:$0xff] }
 0x165   : > { %9138 = vmatmul.mubr.msk.f32.gmra.mrb[8].mxu0 %vm291_vm1, %v12605_v27  ;;  %v12612_v27 = vld [vmem:[#allocation27_spill] sm:$0xff] }
 0x166   : > { %9140 = vmatprep.mubr.msk.f32.mxu0 %vm291_vm1, %v12606_v28  ;;  %v12613_v28 = vld [vmem:[#allocation28_spill] sm:$0xff] }
 0x169   : > { %9141 = vmatmul.mubr.msk.f32.gmra.mrb[10].mxu0 %vm291_vm1, %v12607_v33  ;;  %v12614_v33 = vld [vmem:[#allocation29_spill] sm:$0xff] }
 0x16a   : > { %9143 = vmatprep.mubr.msk.f32.mxu0 %vm291_vm1, %v12608_v29  ;;  %v12615_v29 = vld [vmem:[#allocation30_spill] sm:$0xff] }
 0x16d   : > { %9144 = vmatmul.mubr.msk.f32.gmra.mrb[12].mxu0 %vm291_vm1, %v12609_v31  ;;  %v12616_v31 = vld [vmem:[#allocation31_spill] sm:$0xff] }
 0x16e   : > { %9146 = vmatprep.mubr.msk.f32.mxu0 %vm291_vm1, %v12610_v30  ;;  %v12617_v30 = vld [vmem:[#allocation32_spill] sm:$0xff] }
 0x171   : > { %9147 = vmatmul.mubr.msk.f32.gmra.mrb[14].mxu0 %vm291_vm1, %v12611_v39  ;;  %v12618_v39 = vld [vmem:[#allocation33_spill] sm:$0xff] }
 0x172   : > { %9149 = vmatprep.mubr.msk.f32.mxu0 %vm291_vm1, %v12612_v27  ;;  %v12619_v27 = vld [vmem:[#allocation34_spill] sm:$0xff] }
 0x175   : > { %9150 = vmatmul.mubr.msk.f32.gmra.mrb[16].mxu0 %vm291_vm1, %v12613_v28 }
 0x176   : > { %9152 = vmatprep.mubr.msk.f32.mxu0 %vm291_vm1, %v12614_v33  ;;  %v12620_v33 = vld [vmem:[#allocation35_spill] sm:$0xff] }
 0x179   : > { %9153 = vmatmul.mubr.msk.f32.gmra.mrb[18].mxu0 %vm291_vm1, %v12615_v29 }
 0x17a   : > { %9155 = vmatprep.mubr.msk.f32.mxu0 %vm291_vm1, %v12616_v31 }
 0x17d   : > { %9156 = vmatmul.mubr.msk.f32.gmra.mrb[20].mxu0 %vm291_vm1, %v12617_v30  ;;  %v11188_v30 = vld [vmem:[%s10483_s27 + $0x182] sm:$0xff] }
 0x17e   : > { %9158 = vmatprep.mubr.msk.f32.mxu0 %vm291_vm1, %v12618_v39 }
 0x181   : > { %9159 = vmatmul.mubr.msk.f32.gmra.mrb[22].mxu0 %vm291_vm1, %v10939_v32 }
 0x182   : > { %9161 = vmatprep.mubr.msk.f32.mxu0 %vm291_vm1, %v12619_v27  ;;  %v11195_v27 = vld [vmem:[%s10483_s27 + $0x18a] sm:$0xff] }
 0x185   : > { %9162 = vmatmul.mubr.msk.f32.gmra.mrb[24].mxu0 %vm291_vm1, %v10949_v5 }
 0x186   : > { %9164 = vmatprep.mubr.msk.f32.mxu0 %vm291_vm1, %v12620_v33 }
 0x189   : > { %9165 = vmatmul.mubr.msk.f32.gmra.mrb[26].mxu0 %vm291_vm1, %v10959_v38 }
 0x18a   : > { %9167 = vmatprep.mubr.msk.f32.mxu0 %vm291_vm1, %v10962_v35  ;;  %v3309_v35 = vld [vmem:[%s12422_s1 + $0x20] sm:$0xf] }
 0x18d   : > { %9168 = vmatmul.mubr.msk.f32.gmra.mrb[28].mxu0 %vm291_vm1, %v10969_v36 }
 0x18e   : > { %9170 = vmatprep.mubr.msk.f32.mxu0 %vm291_vm1, %v11188_v30 }
 0x191   : > { %9171 = vmatmul.mubr.msk.f32.gmra.mrb[30].mxu0 %vm291_vm1, %v11195_v27 }
 0x192   : > { %9175 = vmatprep.mubr.msk.f32.mxu0 %vm291_vm1, %v10667_v40  ;;  %v7794_v40 = vld [vmem:[%s10483_s27 + $0x198] sm:$0xff] }
 0x195   : > { %9176 = vmatmul.mubr.msk.f32.vlgmr.msra.gmra.mrb[0].mxu0 %vm291_vm1, %v10676_v41  ;;  %v7795_v41 = vld [vmem:[%s10483_s27 + $0x1a0] sm:$0xff] }
 0x196   : > { %9224 = vmatpush3.msk.msra.mxu0 %vm388_vm0, %v2920_v6  ;;  %9178 = vmatprep.mubr.msk.f32.mxu0 %vm291_vm1, %v10679_v42  ;;  %v12639_v42 = vld [vmem:[#allocation22_spill] sm:$0xff] }
 0x197   : > { %9273 = vmatprep.subr.msk.mxu0 %vm388_vm0, %v3309_v35 }
 0x199   : > { %9179 = vmatmul.mubr.msk.f32.gmra.mrb[2].mxu0 %vm291_vm1, %v10686_v43  ;;  %v12640_v43 = vld [vmem:[#allocation23_spill] sm:$0xff] }
 0x19a   : > { %9181 = vmatprep.mubr.msk.f32.mxu0 %vm291_vm1, %v10689_v44  ;;  %v12641_v44 = vld [vmem:[#allocation24_spill] sm:$0xff] }
 0x19d   : > { %9182 = vmatmul.mubr.msk.f32.gmra.mrb[4].mxu0 %vm291_vm1, %v10696_v45  ;;  %v12642_v45 = vld [vmem:[#allocation25_spill] sm:$0xff] }
 0x19e   : > { %9184 = vmatprep.mubr.msk.f32.mxu0 %vm291_vm1, %v10699_v46  ;;  %v12643_v46 = vld [vmem:[#allocation26_spill] sm:$0xff] }
 0x1a1   : > { %9185 = vmatmul.mubr.msk.f32.gmra.mrb[6].mxu0 %vm291_vm1, %v10706_v47  ;;  %v12644_v47 = vld [vmem:[#allocation27_spill] sm:$0xff] }
 0x1a2   : > { %9187 = vmatprep.mubr.msk.f32.mxu0 %vm291_vm1, %v10709_v48  ;;  %v12645_v48 = vld [vmem:[#allocation29_spill] sm:$0xff] }
 0x1a5   : > { %9188 = vmatmul.mubr.msk.f32.gmra.mrb[8].mxu0 %vm291_vm1, %v10716_v49  ;;  %v12646_v49 = vld [vmem:[#allocation32_spill] sm:$0xff] }
 0x1a6   : > { %9190 = vmatprep.mubr.msk.f32.mxu0 %vm291_vm1, %v10719_v50  ;;  %v7925_v50 = vld [vmem:[%s10483_s27 + $0x1a2] sm:$0xff] }
 0x1a9   : > { %9191 = vmatmul.mubr.msk.f32.gmra.mrb[10].mxu0 %vm291_vm1, %v10726_v51  ;;  %v3894_v51 = vld [vmem:[%s12424_s3 + $0x20] sm:$0xff] }
 0x1aa   : > { %9193 = vmatprep.mubr.msk.f32.mxu0 %vm291_vm1, %v10729_v52  ;;  %v3895_v52 = vld [vmem:[%s12424_s3 + $0x28] sm:$0xff] }
 0x1ad   : > { %9194 = vmatmul.mubr.msk.f32.gmra.mrb[12].mxu0 %vm291_vm1, %v10736_v53  ;;  %v9827_v53 = vpack.c.bf16 %v3895_v52, %v3894_v51 }
 0x1ae   : > { %9196 = vmatprep.mubr.msk.f32.mxu0 %vm291_vm1, %v10739_v54  ;;  %v3897_v54 = vld [vmem:[%s12424_s3 + $0x38] sm:$0xff] }
 0x1af   : > { %9828 = vmatprep.subr.bf16.mxu1 %v9827_v53 }
 0x1b0   : > { %9830 = vmatpush3.bf16.msra.mxu1 %v9827_v53 }
 0x1b1   : > { %9197 = vmatmul.mubr.msk.f32.gmra.mrb[14].mxu0 %vm291_vm1, %v10746_v55 }
 0x1b2   : > { %9199 = vmatprep.mubr.msk.f32.mxu0 %vm291_vm1, %v10749_v56 }
 0x1b5   : > { %9200 = vmatmul.mubr.msk.f32.gmra.mrb[16].mxu0 %vm291_vm1, %v10756_v57 }
 0x1b6   : > { %9202 = vmatprep.mubr.msk.f32.mxu0 %vm291_vm1, %v10759_v58  ;;  %v3858_v58 = vld [vmem:[%s12424_s3] sm:$0xff] }
 0x1b9   : > { %9203 = vmatmul.mubr.msk.f32.gmra.mrb[18].mxu0 %vm291_vm1, %v10766_v59  ;;  %v3859_v59 = vld [vmem:[%s12424_s3 + $0x8] sm:$0xff] }
 0x1ba   : > { %9205 = vmatprep.mubr.msk.f32.mxu0 %vm291_vm1, %v10769_v60  ;;  %v9835_v60 = vpack.c.bf16 %v3859_v59, %v3858_v58 }
 0x1bd   : > { %9206 = vmatmul.mubr.msk.f32.gmra.mrb[20].mxu0 %vm291_vm1, %v10776_v61  ;;  %v3860_v61 = vld [vmem:[%s12424_s3 + $0x10] sm:$0xff] }
 0x1be   : > { %9208 = vmatprep.mubr.msk.f32.mxu0 %vm291_vm1, %v10779_v62  ;;  %v3861_v62 = vld [vmem:[%s12424_s3 + $0x18] sm:$0xff] }
 0x1c1   : > { %9209 = vmatmul.mubr.msk.f32.gmra.mrb[22].mxu0 %vm291_vm1, %v10786_v63  ;;  %v9839_v63 = vpack.c.bf16 %v3861_v62, %v3860_v61 }
 0x1c2   : > { %9211 = vmatprep.mubr.msk.f32.mxu0 %vm291_vm1, %v10789_v0  ;;  %v4572_v0 = vld [vmem:[%s12424_s3 + $0x40] sm:$0xff] }
 0x1c5   : > { %9212 = vmatmul.mubr.msk.f32.gmra.mrb[24].mxu0 %vm291_vm1, %v10796_v1  ;;  %v4573_v1 = vld [vmem:[%s12424_s3 + $0x48] sm:$0xff] }
 0x1c6   : > { %9214 = vmatprep.mubr.msk.f32.mxu0 %vm291_vm1, %v10799_v2  ;;  %v11483_v2 = vpack.c.bf16 %v4573_v1, %v4572_v0 }
 0x1c9   : > { %9215 = vmatmul.mubr.msk.f32.gmra.mrb[26].mxu0 %vm291_vm1, %v10806_v3  ;;  %v11489_v3 = vld [vmem:[%s12423_s2] ss:$0 sm:$0xff] }
 0x1ca   : > { %9217 = vmatprep.mubr.msk.f32.mxu0 %vm291_vm1, %v11038_v34 }
 0x1cd   : > { %9218 = vmatmul.mubr.msk.f32.gmra.mrb[28].mxu0 %vm291_vm1, %v11045_v37 }
 0x1ce   : > { %9220 = vmatprep.mubr.msk.f32.mxu0 %vm291_vm1, %v7794_v40 }
 0x1d1   : > { %9221 = vmatmul.mubr.msk.f32.gmra.mrb[30].mxu0 %vm291_vm1, %v7795_v41 }
 0x1d2   : > { %9225 = vmatprep.mubr.msk.f32.mxu0 %vm291_vm1, %v10504_v7  ;;  %v12621_v7 = vld [vmem:[#allocation3_spill] sm:$0xff] }
 0x1d5   : > { %9226 = vmatmul.mubr.msk.f32.vlgmr.msra.gmra.mrb[0].mxu0 %vm291_vm1, %v10513_v8  ;;  %v12622_v8 = vld [vmem:[#allocation4_spill] sm:$0xff] }
 0x1d6   : > { %9274 = vmatpush3.msk.msra.mxu0 %vm388_vm0, %v3309_v35  ;;  %9228 = vmatprep.mubr.msk.f32.mxu0 %vm291_vm1, %v10516_v9  ;;  %v12623_v9 = vld [vmem:[#allocation5_spill] sm:$0xff] }
 0x1d9   : > { %9229 = vmatmul.mubr.msk.f32.gmra.mrb[2].mxu0 %vm291_vm1, %v10523_v10  ;;  %v12624_v10 = vld [vmem:[#allocation6_spill] sm:$0xff] }
 0x1da   : > { %9231 = vmatprep.mubr.msk.f32.mxu0 %vm291_vm1, %v10526_v11  ;;  %v12625_v11 = vld [vmem:[#allocation7_spill] sm:$0xff] }
 0x1dd   : > { %9232 = vmatmul.mubr.msk.f32.gmra.mrb[4].mxu0 %vm291_vm1, %v10533_v12  ;;  %v12626_v12 = vld [vmem:[#allocation8_spill] sm:$0xff] }
 0x1de   : > { %9234 = vmatprep.mubr.msk.f32.mxu0 %vm291_vm1, %v10536_v13  ;;  %v12627_v13 = vld [vmem:[#allocation9_spill] sm:$0xff] }
 0x1e1   : > { %9235 = vmatmul.mubr.msk.f32.gmra.mrb[6].mxu0 %vm291_vm1, %v10543_v14  ;;  %v12628_v14 = vld [vmem:[#allocation10_spill] sm:$0xff] }
 0x1e2   : > { %9237 = vmatprep.mubr.msk.f32.mxu0 %vm291_vm1, %v10546_v15  ;;  %v12629_v15 = vld [vmem:[#allocation37_spill] sm:$0xff] }
 0x1e5   : > { %9238 = vmatmul.mubr.msk.f32.gmra.mrb[8].mxu0 %vm291_vm1, %v10553_v16  ;;  %v7859_v16 = vld [vmem:[%s10483_s27 + $0x199] sm:$0xff] }
 0x1e6   : > { %9240 = vmatprep.mubr.msk.f32.mxu0 %vm291_vm1, %v10556_v17  ;;  %v12630_v17 = vld [vmem:[#allocation38_spill] sm:$0xff] }
 0x1e9   : > { %9241 = vmatmul.mubr.msk.f32.gmra.mrb[10].mxu0 %vm291_vm1, %v10563_v18  ;;  %v7860_v18 = vld [vmem:[%s10483_s27 + $0x1a1] sm:$0xff] }
 0x1ea   : > { %9243 = vmatprep.mubr.msk.f32.mxu0 %vm291_vm1, %v10566_v19  ;;  %v12631_v19 = vld [vmem:[#allocation13_spill] sm:$0xff] }
 0x1ed   : > { %9244 = vmatmul.mubr.msk.f32.gmra.mrb[12].mxu0 %vm291_vm1, %v10573_v20  ;;  %v12632_v20 = vld [vmem:[#allocation14_spill] sm:$0xff] }
 0x1ee   : > { %9246 = vmatprep.mubr.msk.f32.mxu0 %vm291_vm1, %v10576_v21  ;;  %v12633_v21 = vld [vmem:[#allocation15_spill] sm:$0xff] }
 0x1f1   : > { %9247 = vmatmul.mubr.msk.f32.gmra.mrb[14].mxu0 %vm291_vm1, %v10583_v22  ;;  %v12634_v22 = vld [vmem:[#allocation16_spill] sm:$0xff] }
 0x1f2   : > { %9249 = vmatprep.mubr.msk.f32.mxu0 %vm291_vm1, %v10586_v23  ;;  %v12635_v23 = vld [vmem:[#allocation17_spill] sm:$0xff] }
 0x1f5   : > { %9250 = vmatmul.mubr.msk.f32.gmra.mrb[16].mxu0 %vm291_vm1, %v10593_v24  ;;  %v12636_v24 = vld [vmem:[#allocation19_spill] sm:$0xff] }
 0x1f6   : > { %9252 = vmatprep.mubr.msk.f32.mxu0 %vm291_vm1, %v10596_v25  ;;  %v12637_v25 = vld [vmem:[#allocation20_spill] sm:$0xff] }
 0x1f9   : > { %9253 = vmatmul.mubr.msk.f32.gmra.mrb[18].mxu0 %vm291_vm1, %v10603_v26  ;;  %v12638_v26 = vld [vmem:[#allocation21_spill] sm:$0xff] }
 0x1fa   : > { %9255 = vmatprep.mubr.msk.f32.mxu0 %vm291_vm1, %v12621_v7 }
 0x1fd   : > { %9256 = vmatmul.mubr.msk.f32.gmra.mrb[20].mxu0 %vm291_vm1, %v12622_v8 }
 0x1fe   : > { %9258 = vmatprep.mubr.msk.f32.mxu0 %vm291_vm1, %v12623_v9 }
 0x201   : > { %9259 = vmatmul.mubr.msk.f32.gmra.mrb[22].mxu0 %vm291_vm1, %v12624_v10 }
 0x202   : > { %9261 = vmatprep.mubr.msk.f32.mxu0 %vm291_vm1, %v12625_v11 }
 0x205   : > { %9262 = vmatmul.mubr.msk.f32.gmra.mrb[24].mxu0 %vm291_vm1, %v12626_v12 }
 0x206   : > { %9264 = vmatprep.mubr.msk.f32.mxu0 %vm291_vm1, %v12627_v13 }
 0x209   : > { %9265 = vmatmul.mubr.msk.f32.gmra.mrb[26].mxu0 %vm291_vm1, %v12628_v14 }
 0x20a   : > { %9267 = vmatprep.mubr.msk.f32.mxu0 %vm291_vm1, %v12629_v15 }
 0x20d   : > { %9268 = vmatmul.mubr.msk.f32.gmra.mrb[28].mxu0 %vm291_vm1, %v12630_v17 }
 0x20e   : > { %9270 = vmatprep.mubr.msk.f32.mxu0 %vm291_vm1, %v7859_v16 }
 0x211   : > { %9271 = vmatmul.mubr.msk.f32.gmra.mrb[30].mxu0 %vm291_vm1, %v7860_v18 }
 0x212   : > { %9275 = vmatprep.mubr.msk.f32.mxu0 %vm291_vm1, %v12631_v19 }
 0x215   : > { %9276 = vmatmul.mubr.msk.f32.vlgmr.msra.gmra.mrb[0].mxu0 %vm291_vm1, %v12632_v20 }
 0x216   : > { %9278 = vmatprep.mubr.msk.f32.mxu0 %vm291_vm1, %v12633_v21 }
 0x219   : > { %9279 = vmatmul.mubr.msk.f32.gmra.mrb[2].mxu0 %vm291_vm1, %v12634_v22 }
 0x21a   : > { %9281 = vmatprep.mubr.msk.f32.mxu0 %vm291_vm1, %v12635_v23 }
 0x21d   : > { %9282 = vmatmul.mubr.msk.f32.gmra.mrb[4].mxu0 %vm291_vm1, %v12603_v4 }
 0x21e   : > { %9284 = vmatprep.mubr.msk.f32.mxu0 %vm291_vm1, %v12636_v24 }
 0x221   : > { %9285 = vmatmul.mubr.msk.f32.gmra.mrb[6].mxu0 %vm291_vm1, %v12637_v25 }
 0x222   : > { %9287 = vmatprep.mubr.msk.f32.mxu0 %vm291_vm1, %v12638_v26 }
 0x225   : > { %9288 = vmatmul.mubr.msk.f32.gmra.mrb[8].mxu0 %vm291_vm1, %v12639_v42 }
 0x226   : > { %9290 = vmatprep.mubr.msk.f32.mxu0 %vm291_vm1, %v12640_v43 }
 0x229   : > { %9291 = vmatmul.mubr.msk.f32.gmra.mrb[10].mxu0 %vm291_vm1, %v12641_v44 }
 0x22a   : > { %9293 = vmatprep.mubr.msk.f32.mxu0 %vm291_vm1, %v12642_v45 }
 0x22d   : > { %9294 = vmatmul.mubr.msk.f32.gmra.mrb[12].mxu0 %vm291_vm1, %v12643_v46 }
 0x22e   : > { %9296 = vmatprep.mubr.msk.f32.mxu0 %vm291_vm1, %v12644_v47 }
 0x231   : > { %9297 = vmatmul.mubr.msk.f32.gmra.mrb[14].mxu0 %vm291_vm1, %v12613_v28  ;;  %v12647_v28 = vld [vmem:[#allocation34_spill] sm:$0xff] }
 0x232   : > { %9299 = vmatprep.mubr.msk.f32.mxu0 %vm291_vm1, %v12645_v48 }
 0x235   : > { %9300 = vmatmul.mubr.msk.f32.gmra.mrb[16].mxu0 %vm291_vm1, %v12615_v29  ;;  %v12648_v29 = vld [vmem:[#allocation36_spill] sm:$0xff] }
 0x236   : > { %9302 = vmatprep.mubr.msk.f32.mxu0 %vm291_vm1, %v12616_v31 }
 0x239   : > { %9303 = vmatmul.mubr.msk.f32.gmra.mrb[18].mxu0 %vm291_vm1, %v12646_v49 }
 0x23a   : > { %9305 = vmatprep.mubr.msk.f32.mxu0 %vm291_vm1, %v12618_v39 }
 0x23d   : > { %9306 = vmatmul.mubr.msk.f32.gmra.mrb[20].mxu0 %vm291_vm1, %v10939_v32  ;;  %v7924_v32 = vld [vmem:[%s10483_s27 + $0x19a] sm:$0xff] }
 0x23e   : > { %9308 = vmatprep.mubr.msk.f32.mxu0 %vm291_vm1, %v12647_v28 }
 0x241   : > { %9309 = vmatmul.mubr.msk.f32.gmra.mrb[22].mxu0 %vm291_vm1, %v10949_v5 }
 0x242   : > { %9311 = vmatprep.mubr.msk.f32.mxu0 %vm291_vm1, %v12620_v33 }
 0x245   : > { %9312 = vmatmul.mubr.msk.f32.gmra.mrb[24].mxu0 %vm291_vm1, %v10959_v38 }
 0x246   : > { %9314 = vmatprep.mubr.msk.f32.mxu0 %vm291_vm1, %v12648_v29 }
 0x249   : > { %9315 = vmatmul.mubr.msk.f32.gmra.mrb[26].mxu0 %vm291_vm1, %v10969_v36 }
 0x24a   : > { %9317 = vmatprep.mubr.msk.f32.mxu0 %vm291_vm1, %v11188_v30  ;;  %v10429_v30 = vmov 0.0  }
 0x24b   : > { %3743 = vst.msk [vmem:[#allocation2 + $0x20] sm:$0xff] %vm3737_vm2, %v10429_v30  ;;  %3738 = vst.msk [vmem:[#allocation2] sm:$0xff] %vm3737_vm2, %v10429_v30 }
 0x24c   : > { %3739 = vst.msk [vmem:[#allocation2 + $0x8] sm:$0xff] %vm3737_vm2, %v10429_v30  ;;  %3742 = vst.msk [vmem:[#allocation2 + $0x18] sm:$0xff] %vm3737_vm2, %v10429_v30 }
 0x24d   : > { %9318 = vmatmul.mubr.msk.f32.gmra.mrb[28].mxu0 %vm291_vm1, %v11195_v27  ;;  %3745 = vst.msk [vmem:[#allocation2 + $0x30] sm:$0xff] %vm3737_vm2, %v10429_v30  ;;  %3746 = vst.msk [vmem:[#allocation2 + $0x38] sm:$0xff] %vm3737_vm2, %v10429_v30  ;;  %v3896_v27 = vld [vmem:[%s12424_s3 + $0x30] sm:$0xff] }
 0x24e   : > { %9320 = vmatprep.mubr.msk.f32.mxu0 %vm291_vm1, %v7924_v32  ;;  %3748 = vst.msk [vmem:[#allocation2 + $0x48] sm:$0xff] %vm3737_vm2, %v10429_v30  ;;  %3749 = vst.msk [vmem:[#allocation2 + $0x50] sm:$0xff] %vm3737_vm2, %v10429_v30  ;;  %v9831_v55 = vpack.c.bf16 %v3897_v54, %v3896_v27 }
 0x24f   : > { %3751 = vst.msk [vmem:[#allocation2 + $0x60] sm:$0xff] %vm3737_vm2, %v10429_v30  ;;  %3752 = vst.msk [vmem:[#allocation2 + $0x68] sm:$0xff] %vm3737_vm2, %v10429_v30 }
 0x250   : > { %3754 = vst.msk [vmem:[#allocation2 + $0x78] sm:$0xff] %vm3737_vm2, %v10429_v30  ;;  %3755 = vst.msk [vmem:[#allocation2 + $0x80] sm:$0xff] %vm3737_vm2, %v10429_v30  ;;  %9832 = vmatprep.subr.bf16.mxu1 %v9831_v55 }
 0x251   : > { %9321 = vmatmul.mubr.msk.f32.gmra.mrb[30].mxu0 %vm291_vm1, %v7925_v50  ;;  %3757 = vst.msk [vmem:[#allocation2 + $0x90] sm:$0xff] %vm3737_vm2, %v10429_v30  ;;  %3758 = vst.msk [vmem:[#allocation2 + $0x98] sm:$0xff] %vm3737_vm2, %v10429_v30  ;;  %9834 = vmatpush3.bf16.msra.mxu1 %v9831_v55 }
 0x252   : > { %3760 = vst.msk [vmem:[#allocation2 + $0xa8] sm:$0xff] %vm3737_vm2, %v10429_v30  ;;  %3761 = vst.msk [vmem:[#allocation2 + $0xb0] sm:$0xff] %vm3737_vm2, %v10429_v30  ;;  %9836 = vmatprep.subr.bf16.mxu1 %v9835_v60 }
 0x253   : > { %3763 = vst.msk [vmem:[#allocation2 + $0xc0] sm:$0xff] %vm3737_vm2, %v10429_v30  ;;  %3764 = vst.msk [vmem:[#allocation2 + $0xc8] sm:$0xff] %vm3737_vm2, %v10429_v30  ;;  %v3862_v56 = vld [vmem:[#allocation2 + $0x1] sm:$0xff] }
 0x254   : > { %3766 = vst.msk [vmem:[#allocation2 + $0xd8] sm:$0xff] %vm3737_vm2, %v10429_v30  ;;  %3767 = vst.msk [vmem:[#allocation2 + $0xe0] sm:$0xff] %vm3737_vm2, %v10429_v30  ;;  %9331 = vmatprep.mubr.msk.f32.mxu1 %vm3737_vm2, %v3862_v56 }
 0x255   : > { %3769 = vst.msk [vmem:[#allocation2 + $0xf0] sm:$0xff] %vm3737_vm2, %v10429_v30  ;;  %3770 = vst.msk [vmem:[#allocation2 + $0xf8] sm:$0xff] %vm3737_vm2, %v10429_v30 }
 0x256   : > { %3772 = vst.msk [vmem:[#allocation2 + $0x108] sm:$0xff] %vm3737_vm2, %v10429_v30  ;;  %3773 = vst.msk [vmem:[#allocation2 + $0x110] sm:$0xff] %vm3737_vm2, %v10429_v30 }
 0x257   : > { %3775 = vst.msk [vmem:[#allocation2 + $0x120] sm:$0xff] %vm3737_vm2, %v10429_v30  ;;  %3776 = vst.msk [vmem:[#allocation2 + $0x128] sm:$0xff] %vm3737_vm2, %v10429_v30 }
 0x258   : > { %3778 = vst.msk [vmem:[#allocation2 + $0x138] sm:$0xff] %vm3737_vm2, %v10429_v30  ;;  %3779 = vst.msk [vmem:[#allocation2 + $0x140] sm:$0xff] %vm3737_vm2, %v10429_v30 }
 0x259   : > { %3781 = vst.msk [vmem:[#allocation2 + $0x150] sm:$0xff] %vm3737_vm2, %v10429_v30  ;;  %3782 = vst.msk [vmem:[#allocation2 + $0x158] sm:$0xff] %vm3737_vm2, %v10429_v30 }
 0x25a   : > { %3784 = vst.msk [vmem:[#allocation2 + $0x168] sm:$0xff] %vm3737_vm2, %v10429_v30  ;;  %3785 = vst.msk [vmem:[#allocation2 + $0x170] sm:$0xff] %vm3737_vm2, %v10429_v30 }
 0x25b   : > { %3787 = vst.msk [vmem:[#allocation2 + $0x180] sm:$0xff] %vm3737_vm2, %v10429_v30  ;;  %3788 = vst.msk [vmem:[#allocation2 + $0x188] sm:$0xff] %vm3737_vm2, %v10429_v30 }
 0x25c   : > { %3790 = vst.msk [vmem:[#allocation2 + $0x198] sm:$0xff] %vm3737_vm2, %v10429_v30  ;;  %3791 = vst.msk [vmem:[#allocation2 + $0x1a0] sm:$0xff] %vm3737_vm2, %v10429_v30 }
 0x25d   : > { %3744 = vst.msk [vmem:[#allocation2 + $0x28] sm:$0x3] %vm3740_vm3, %v10429_v30  ;;  %3741 = vst.msk [vmem:[#allocation2 + $0x10] sm:$0x3] %vm3740_vm3, %v10429_v30 }
 0x25e   : > { %3747 = vst.msk [vmem:[#allocation2 + $0x40] sm:$0x3] %vm3740_vm3, %v10429_v30  ;;  %3750 = vst.msk [vmem:[#allocation2 + $0x58] sm:$0x3] %vm3740_vm3, %v10429_v30 }
 0x25f   : > { %3753 = vst.msk [vmem:[#allocation2 + $0x70] sm:$0x3] %vm3740_vm3, %v10429_v30  ;;  %3756 = vst.msk [vmem:[#allocation2 + $0x88] sm:$0x3] %vm3740_vm3, %v10429_v30 }
 0x260   : > { %3759 = vst.msk [vmem:[#allocation2 + $0xa0] sm:$0x3] %vm3740_vm3, %v10429_v30  ;;  %3762 = vst.msk [vmem:[#allocation2 + $0xb8] sm:$0x3] %vm3740_vm3, %v10429_v30 }
 0x261   : > { %3765 = vst.msk [vmem:[#allocation2 + $0xd0] sm:$0x3] %vm3740_vm3, %v10429_v30  ;;  %3768 = vst.msk [vmem:[#allocation2 + $0xe8] sm:$0x3] %vm3740_vm3, %v10429_v30 }
 0x262   : > { %3771 = vst.msk [vmem:[#allocation2 + $0x100] sm:$0x3] %vm3740_vm3, %v10429_v30  ;;  %3774 = vst.msk [vmem:[#allocation2 + $0x118] sm:$0x3] %vm3740_vm3, %v10429_v30 }
 0x263   : > { %3777 = vst.msk [vmem:[#allocation2 + $0x130] sm:$0x3] %vm3740_vm3, %v10429_v30  ;;  %3780 = vst.msk [vmem:[#allocation2 + $0x148] sm:$0x3] %vm3740_vm3, %v10429_v30 }
 0x264   : > { %3783 = vst.msk [vmem:[#allocation2 + $0x160] sm:$0x3] %vm3740_vm3, %v10429_v30  ;;  %3786 = vst.msk [vmem:[#allocation2 + $0x178] sm:$0x3] %vm3740_vm3, %v10429_v30  ;;  %v3863_v57 = vld [vmem:[#allocation2 + $0x9] sm:$0xff] }
 0x265   : > { %3789 = vst.msk [vmem:[#allocation2 + $0x190] sm:$0x3] %vm3740_vm3, %v10429_v30  ;;  %3792 = vst.msk [vmem:[#allocation2 + $0x1a8] sm:$0x3] %vm3740_vm3, %v10429_v30  ;;  %9332 = vmatmul.mubr.msk.f32.vlgmr.msra.gmra.mrb[0].mxu1 %vm3737_vm2, %v3863_v57 }
 0x266   : > { %9838 = vmatpush3.bf16.msra.mxu1 %v9835_v60 }
 0x267   : > { %9840 = vmatprep.subr.bf16.mxu1 %v9839_v63 }
 0x26a   : > { %9842 = vmatpush3.bf16.msra.mxu1 %v9839_v63 }
 0x26b   : > { %9844 = vmatprep.subr.bf16.mxu1 %v11483_v2 }
 0x2e8   : > { %v9277_v36 = vpop.f32.mrb[0].mxu0 }
 0x2e9   : > { %v3674_v5 = vadd.f32 %v9277_v36, %v11489_v3  ;;  %v3475_v38 = vpop.f32.mrb[1].mxu0 }
 0x2ea   : > { %v3673_v35 = vadd.f32 %v11489_v3, %v3475_v38 }
 0x2eb   : > { %v3706_v34 = vmax.f32 %v3674_v5, 0.0 }
 0x2ec   : > { %v3705_v37 = vmax.f32 %v3673_v35, 0.0  ;;  %v9280_v6 = vpop.f32.mrb[2].mxu0 }
 0x2ed   : > { %3795 = vst.msk [vmem:[#allocation2 + $0x21] sm:$0xff] %vm3737_vm2, %v3706_v34  ;;  %v3676_v33 = vadd.f32 %v9280_v6, %v11489_v3  ;;  %v3485_v31 = vpop.f32.mrb[3].mxu0 }
 0x2ee   : > { %3794 = vst.msk [vmem:[#allocation2 + $0x19] sm:$0xff] %vm3737_vm2, %v3705_v37  ;;  %v3675_v4 = vadd.f32 %v11489_v3, %v3485_v31 }
 0x2ef   : > { %v3708_v39 = vmax.f32 %v3676_v33, 0.0 }
 0x2f0   : > { %v3707_v40 = vmax.f32 %v3675_v4, 0.0  ;;  %v9283_v41 = vpop.f32.mrb[4].mxu0 }
 0x2f1   : > { %3797 = vst.msk [vmem:[#allocation2 + $0x39] sm:$0xff] %vm3737_vm2, %v3708_v39  ;;  %v3678_v7 = vadd.f32 %v9283_v41, %v11489_v3  ;;  %v3495_v8 = vpop.f32.mrb[5].mxu0 }
 0x2f2   : > { %3796 = vst.msk [vmem:[#allocation2 + $0x31] sm:$0xff] %vm3737_vm2, %v3707_v40  ;;  %v3677_v9 = vadd.f32 %v11489_v3, %v3495_v8 }
 0x2f3   : > { %v3710_v10 = vmax.f32 %v3678_v7, 0.0 }
 0x2f4   : > { %v3709_v11 = vmax.f32 %v3677_v9, 0.0  ;;  %v9286_v12 = vpop.f32.mrb[6].mxu0  ;;  %v11509_v17 = vld [vmem:[#allocation2 + $0x21] sm:$0xff] }
 0x2f5   : > { %3799 = vst.msk [vmem:[#allocation2 + $0x51] sm:$0xff] %vm3737_vm2, %v3710_v10  ;;  %v3680_v13 = vadd.f32 %v9286_v12, %v11489_v3  ;;  %v3505_v14 = vpop.f32.mrb[7].mxu0  ;;  %v11503_v15 = vld [vmem:[#allocation2 + $0x19] sm:$0xff] }
 0x2f6   : > { %3798 = vst.msk [vmem:[#allocation2 + $0x49] sm:$0xff] %vm3737_vm2, %v3709_v11  ;;  %v3679_v16 = vadd.f32 %v11489_v3, %v3505_v14  ;;  %9334 = vmatprep.mubr.msk.f32.mxu1 %vm3737_vm2, %v11503_v15 }
 0x2f7   : > { %v3712_v18 = vmax.f32 %v3680_v13, 0.0  ;;  %9335 = vmatmul.mubr.msk.f32.gmra.mrb[2].mxu1 %vm3737_vm2, %v11509_v17 }
 0x2f8   : > { %v3711_v19 = vmax.f32 %v3679_v16, 0.0  ;;  %v9289_v20 = vpop.f32.mrb[8].mxu0  ;;  %v11521_v25 = vld [vmem:[#allocation2 + $0x39] sm:$0xff] }
 0x2f9   : > { %3801 = vst.msk [vmem:[#allocation2 + $0x69] sm:$0xff] %vm3737_vm2, %v3712_v18  ;;  %v3682_v21 = vadd.f32 %v9289_v20, %v11489_v3  ;;  %v3515_v22 = vpop.f32.mrb[9].mxu0  ;;  %v11515_v23 = vld [vmem:[#allocation2 + $0x31] sm:$0xff] }
 0x2fa   : > { %3800 = vst.msk [vmem:[#allocation2 + $0x61] sm:$0xff] %vm3737_vm2, %v3711_v19  ;;  %v3681_v24 = vadd.f32 %v11489_v3, %v3515_v22  ;;  %9337 = vmatprep.mubr.msk.f32.mxu1 %vm3737_vm2, %v11515_v23 }
 0x2fb   : > { %v3714_v26 = vmax.f32 %v3682_v21, 0.0  ;;  %9338 = vmatmul.mubr.msk.f32.gmra.mrb[4].mxu1 %vm3737_vm2, %v11521_v25 }
 0x2fc   : > { %v3713_v42 = vmax.f32 %v3681_v24, 0.0  ;;  %v9292_v43 = vpop.f32.mrb[10].mxu0  ;;  %v11533_v48 = vld [vmem:[#allocation2 + $0x51] sm:$0xff] }
 0x2fd   : > { %3803 = vst.msk [vmem:[#allocation2 + $0x81] sm:$0xff] %vm3737_vm2, %v3714_v26  ;;  %v3684_v44 = vadd.f32 %v9292_v43, %v11489_v3  ;;  %v3525_v45 = vpop.f32.mrb[11].mxu0  ;;  %v11527_v46 = vld [vmem:[#allocation2 + $0x49] sm:$0xff] }
 0x2fe   : > { %3802 = vst.msk [vmem:[#allocation2 + $0x79] sm:$0xff] %vm3737_vm2, %v3713_v42  ;;  %v3683_v47 = vadd.f32 %v11489_v3, %v3525_v45  ;;  %9340 = vmatprep.mubr.msk.f32.mxu1 %vm3737_vm2, %v11527_v46 }
 0x2ff   : > { %v3716_v49 = vmax.f32 %v3684_v44, 0.0  ;;  %9341 = vmatmul.mubr.msk.f32.gmra.mrb[6].mxu1 %vm3737_vm2, %v11533_v48 }
 0x300   : > { %v3715_v28 = vmax.f32 %v3683_v47, 0.0  ;;  %v9295_v29 = vpop.f32.mrb[12].mxu0  ;;  %v11545_v53 = vld [vmem:[#allocation2 + $0x69] sm:$0xff] }
 0x301   : > { %3805 = vst.msk [vmem:[#allocation2 + $0x99] sm:$0xff] %vm3737_vm2, %v3716_v49  ;;  %v3686_v32 = vadd.f32 %v9295_v29, %v11489_v3  ;;  %v3535_v50 = vpop.f32.mrb[13].mxu0  ;;  %v11539_v51 = vld [vmem:[#allocation2 + $0x61] sm:$0xff] }
 0x302   : > { %3804 = vst.msk [vmem:[#allocation2 + $0x91] sm:$0xff] %vm3737_vm2, %v3715_v28  ;;  %v3685_v52 = vadd.f32 %v11489_v3, %v3535_v50  ;;  %9343 = vmatprep.mubr.msk.f32.mxu1 %vm3737_vm2, %v11539_v51 }
 0x303   : > { %v3718_v30 = vmax.f32 %v3686_v32, 0.0  ;;  %9344 = vmatmul.mubr.msk.f32.gmra.mrb[8].mxu1 %vm3737_vm2, %v11545_v53 }
 0x304   : > { %v3717_v27 = vmax.f32 %v3685_v52, 0.0  ;;  %v9298_v54 = vpop.f32.mrb[14].mxu0  ;;  %v11557_v59 = vld [vmem:[#allocation2 + $0x81] sm:$0xff] }
 0x305   : > { %3807 = vst.msk [vmem:[#allocation2 + $0xb1] sm:$0xff] %vm3737_vm2, %v3718_v30  ;;  %v3688_v55 = vadd.f32 %v9298_v54, %v11489_v3  ;;  %v3545_v56 = vpop.f32.mrb[15].mxu0  ;;  %v11551_v57 = vld [vmem:[#allocation2 + $0x79] sm:$0xff] }
 0x306   : > { %3806 = vst.msk [vmem:[#allocation2 + $0xa9] sm:$0xff] %vm3737_vm2, %v3717_v27  ;;  %v3687_v58 = vadd.f32 %v11489_v3, %v3545_v56  ;;  %9346 = vmatprep.mubr.msk.f32.mxu1 %vm3737_vm2, %v11551_v57 }
 0x307   : > { %v3720_v60 = vmax.f32 %v3688_v55, 0.0  ;;  %9347 = vmatmul.mubr.msk.f32.gmra.mrb[10].mxu1 %vm3737_vm2, %v11557_v59 }
 0x308   : > { %v3719_v61 = vmax.f32 %v3687_v58, 0.0  ;;  %v9301_v62 = vpop.f32.mrb[16].mxu0  ;;  %v11569_v5 = vld [vmem:[#allocation2 + $0x99] sm:$0xff] }
 0x309   : > { %3809 = vst.msk [vmem:[#allocation2 + $0xc9] sm:$0xff] %vm3737_vm2, %v3720_v60  ;;  %v3690_v63 = vadd.f32 %v9301_v62, %v11489_v3  ;;  %v3555_v0 = vpop.f32.mrb[17].mxu0  ;;  %v11563_v1 = vld [vmem:[#allocation2 + $0x91] sm:$0xff] }
 0x30a   : > { %3808 = vst.msk [vmem:[#allocation2 + $0xc1] sm:$0xff] %vm3737_vm2, %v3719_v61  ;;  %v3689_v36 = vadd.f32 %v11489_v3, %v3555_v0  ;;  %9349 = vmatprep.mubr.msk.f32.mxu1 %vm3737_vm2, %v11563_v1 }
 0x30b   : > { %v3722_v38 = vmax.f32 %v3690_v63, 0.0  ;;  %9350 = vmatmul.mubr.msk.f32.gmra.mrb[12].mxu1 %vm3737_vm2, %v11569_v5 }
 0x30c   : > { %v3721_v35 = vmax.f32 %v3689_v36, 0.0  ;;  %v9304_v34 = vpop.f32.mrb[18].mxu0  ;;  %v11581_v4 = vld [vmem:[#allocation2 + $0xb1] sm:$0xff] }
 0x30d   : > { %3811 = vst.msk [vmem:[#allocation2 + $0xe1] sm:$0xff] %vm3737_vm2, %v3722_v38  ;;  %v3692_v37 = vadd.f32 %v9304_v34, %v11489_v3  ;;  %v3565_v6 = vpop.f32.mrb[19].mxu0  ;;  %v11575_v33 = vld [vmem:[#allocation2 + $0xa9] sm:$0xff] }
 0x30e   : > { %3810 = vst.msk [vmem:[#allocation2 + $0xd9] sm:$0xff] %vm3737_vm2, %v3721_v35  ;;  %v3691_v31 = vadd.f32 %v11489_v3, %v3565_v6  ;;  %9352 = vmatprep.mubr.msk.f32.mxu1 %vm3737_vm2, %v11575_v33 }
 0x30f   : > { %v3724_v39 = vmax.f32 %v3692_v37, 0.0  ;;  %9353 = vmatmul.mubr.msk.f32.gmra.mrb[14].mxu1 %vm3737_vm2, %v11581_v4 }
 0x310   : > { %v3723_v40 = vmax.f32 %v3691_v31, 0.0  ;;  %v9307_v41 = vpop.f32.mrb[20].mxu0  ;;  %v11593_v11 = vld [vmem:[#allocation2 + $0xc9] sm:$0xff] }
 0x311   : > { %3813 = vst.msk [vmem:[#allocation2 + $0xf9] sm:$0xff] %vm3737_vm2, %v3724_v39  ;;  %v3694_v7 = vadd.f32 %v9307_v41, %v11489_v3  ;;  %v3575_v8 = vpop.f32.mrb[21].mxu0  ;;  %v11587_v9 = vld [vmem:[#allocation2 + $0xc1] sm:$0xff] }
 0x312   : > { %3812 = vst.msk [vmem:[#allocation2 + $0xf1] sm:$0xff] %vm3737_vm2, %v3723_v40  ;;  %v3693_v10 = vadd.f32 %v11489_v3, %v3575_v8  ;;  %9355 = vmatprep.mubr.msk.f32.mxu1 %vm3737_vm2, %v11587_v9  ;;  %v3826_v8 = vld [vmem:[#allocation2] sm:$0xff] }
 0x313   : > { %v3726_v12 = vmax.f32 %v3694_v7, 0.0  ;;  %9356 = vmatmul.mubr.msk.f32.gmra.mrb[16].mxu1 %vm3737_vm2, %v11593_v11 }
 0x314   : > { %v3725_v13 = vmax.f32 %v3693_v10, 0.0  ;;  %v9310_v14 = vpop.f32.mrb[22].mxu0  ;;  %v11605_v21 = vld [vmem:[#allocation2 + $0xe1] sm:$0xff] }
 0x315   : > { %3815 = vst.msk [vmem:[#allocation2 + $0x111] sm:$0xff] %vm3737_vm2, %v3726_v12  ;;  %v3696_v16 = vadd.f32 %v9310_v14, %v11489_v3  ;;  %v3585_v18 = vpop.f32.mrb[23].mxu0  ;;  %v11599_v19 = vld [vmem:[#allocation2 + $0xd9] sm:$0xff]  ;;  %v4574_v12 = vld [vmem:[%s12424_s3 + $0x50] sm:$0xff]  ;;  %v3827_v14 = vld [vmem:[#allocation2 + $0x8] sm:$0xff] }
 0x316   : > { %3814 = vst.msk [vmem:[#allocation2 + $0x109] sm:$0xff] %vm3737_vm2, %v3725_v13  ;;  %v3695_v20 = vadd.f32 %v11489_v3, %v3585_v18  ;;  %9358 = vmatprep.mubr.msk.f32.mxu1 %vm3737_vm2, %v11599_v19  ;;  %v4575_v13 = vld [vmem:[%s12424_s3 + $0x58] sm:$0xff]  ;;  %v4961_v18 = vld [vmem:[%s12424_s3 + $0x60] sm:$0xff] }
 0x317   : > { %v3728_v22 = vmax.f32 %v3696_v16, 0.0  ;;  %9359 = vmatmul.mubr.msk.f32.gmra.mrb[18].mxu1 %vm3737_vm2, %v11605_v21  ;;  %v9847_v16 = vpack.c.bf16 %v4575_v13, %v4574_v12 }
 0x318   : > { %v3727_v24 = vmax.f32 %v3695_v20, 0.0  ;;  %v9313_v26 = vpop.f32.mrb[24].mxu0  ;;  %v11617_v47 = vld [vmem:[#allocation2 + $0xf9] sm:$0xff]  ;;  %v4962_v20 = vld [vmem:[%s12424_s3 + $0x68] sm:$0xff] }
 0x319   : > { %3817 = vst.msk [vmem:[#allocation2 + $0x129] sm:$0xff] %vm3737_vm2, %v3728_v22  ;;  %v3698_v42 = vadd.f32 %v9313_v26, %v11489_v3  ;;  %v3595_v43 = vpop.f32.mrb[25].mxu0  ;;  %v11611_v44 = vld [vmem:[#allocation2 + $0xf1] sm:$0xff]  ;;  %v11696_v26 = vld [vmem:[#allocation2 + $0x20] sm:$0xff] }
 0x31a   : > { %3816 = vst.msk [vmem:[#allocation2 + $0x121] sm:$0xff] %vm3737_vm2, %v3727_v24  ;;  %v3697_v45 = vadd.f32 %v11489_v3, %v3595_v43  ;;  %9361 = vmatprep.mubr.msk.f32.mxu1 %vm3737_vm2, %v11611_v44  ;;  %v11689_v22 = vld [vmem:[#allocation2 + $0x18] sm:$0xff]  ;;  %v11694_v24 = vpack.c.bf16 %v4962_v20, %v4961_v18  ;;  %v11709_v43 = vld [vmem:[#allocation2 + $0x48] sm:$0xff]  ;;  %v4963_v18 = vld [vmem:[%s12424_s3 + $0x70] sm:$0xff] }
 0x31b   : > { %v3730_v49 = vmax.f32 %v3698_v42, 0.0  ;;  %9362 = vmatmul.mubr.msk.f32.gmra.mrb[20].mxu1 %vm3737_vm2, %v11617_v47  ;;  %v11700_v42 = vld [vmem:[#allocation2 + $0x30] sm:$0xff]  ;;  %v4964_v20 = vld [vmem:[%s12424_s3 + $0x78] sm:$0xff] }
 0x31c   : > { %v3729_v28 = vmax.f32 %v3697_v45, 0.0  ;;  %v9316_v29 = vpop.f32.mrb[26].mxu0  ;;  %v11629_v27 = vld [vmem:[#allocation2 + $0x111] sm:$0xff] }
 0x31d   : > { %3819 = vst.msk [vmem:[#allocation2 + $0x141] sm:$0xff] %vm3737_vm2, %v3730_v49  ;;  %v3700_v32 = vadd.f32 %v9316_v29, %v11489_v3  ;;  %v3605_v50 = vpop.f32.mrb[27].mxu0  ;;  %v11623_v52 = vld [vmem:[#allocation2 + $0x109] sm:$0xff]  ;;  %v11717_v49 = vld [vmem:[#allocation2 + $0x60] sm:$0xff]  ;;  %v11725_v29 = vld [vmem:[#allocation2 + $0x78] sm:$0xff] }
 0x31e   : > { %3818 = vst.msk [vmem:[#allocation2 + $0x139] sm:$0xff] %vm3737_vm2, %v3729_v28  ;;  %v3699_v30 = vadd.f32 %v11489_v3, %v3605_v50  ;;  %9364 = vmatprep.mubr.msk.f32.mxu1 %vm3737_vm2, %v11623_v52  ;;  %v11713_v45 = vld [vmem:[#allocation2 + $0x50] sm:$0xff]  ;;  %v11721_v28 = vld [vmem:[#allocation2 + $0x68] sm:$0xff] }
 0x31f   : > { %v3732_v54 = vmax.f32 %v3700_v32, 0.0  ;;  %9365 = vmatmul.mubr.msk.f32.gmra.mrb[22].mxu1 %vm3737_vm2, %v11629_v27  ;;  %v11729_v32 = vld [vmem:[#allocation2 + $0x80] sm:$0xff]  ;;  %v11733_v50 = vld [vmem:[#allocation2 + $0x90] sm:$0xff] }
 0x320   : > { %v3731_v55 = vmax.f32 %v3699_v30, 0.0  ;;  %v9319_v56 = vpop.f32.mrb[28].mxu0  ;;  %v11641_v63 = vld [vmem:[#allocation2 + $0x129] sm:$0xff]  ;;  %v11737_v30 = vld [vmem:[#allocation2 + $0x98] sm:$0xff] }
 0x321   : > { %3821 = vst.msk [vmem:[#allocation2 + $0x159] sm:$0xff] %vm3737_vm2, %v3732_v54  ;;  %v3702_v58 = vadd.f32 %v9319_v56, %v11489_v3  ;;  %v3615_v60 = vpop.f32.mrb[29].mxu0  ;;  %v11635_v61 = vld [vmem:[#allocation2 + $0x121] sm:$0xff] }
 0x322   : > { %3820 = vst.msk [vmem:[#allocation2 + $0x151] sm:$0xff] %vm3737_vm2, %v3731_v55  ;;  %v3701_v62 = vadd.f32 %v11489_v3, %v3615_v60  ;;  %9367 = vmatprep.mubr.msk.f32.mxu1 %vm3737_vm2, %v11635_v61  ;;  %v11741_v54 = vld [vmem:[#allocation2 + $0xa8] sm:$0xff]  ;;  %v11745_v55 = vld [vmem:[#allocation2 + $0xb0] sm:$0xff]  ;;  %v11749_v56 = vld [vmem:[#allocation2 + $0xc0] sm:$0xff] }
 0x323   : > { %v3734_v0 = vmax.f32 %v3702_v58, 0.0  ;;  %9368 = vmatmul.mubr.msk.f32.gmra.mrb[24].mxu1 %vm3737_vm2, %v11641_v63  ;;  %v11753_v58 = vld [vmem:[#allocation2 + $0xc8] sm:$0xff]  ;;  %v11757_v60 = vld [vmem:[#allocation2 + $0xd8] sm:$0xff] }
 0x324   : > { %v3733_v36 = vmax.f32 %v3701_v62, 0.0  ;;  %v9322_v38 = vpop.f32.mrb[30].mxu0  ;;  %v11653_v31 = vld [vmem:[#allocation2 + $0x141] sm:$0xff] }
 0x325   : > { %3823 = vst.msk [vmem:[#allocation2 + $0x171] sm:$0xff] %vm3737_vm2, %v3734_v0  ;;  %v3704_v35 = vadd.f32 %v9322_v38, %v11489_v3  ;;  %v3625_v34 = vpop.f32.mrb[31].mxu0  ;;  %v11647_v37 = vld [vmem:[#allocation2 + $0x139] sm:$0xff]  ;;  %12649 = vst [vmem:[#allocation11_spill] sm:$0xff] %v11653_v31  ;;  %v11765_v0 = vld [vmem:[#allocation2 + $0xf0] sm:$0xff] }
 0x326   : > { %3822 = vst.msk [vmem:[#allocation2 + $0x169] sm:$0xff] %vm3737_vm2, %v3733_v36  ;;  %v3703_v6 = vadd.f32 %v11489_v3, %v3625_v34  ;;  %9370 = vmatprep.mubr.msk.f32.mxu1 %vm3737_vm2, %v11647_v37  ;;  %v11761_v62 = vld [vmem:[#allocation2 + $0xe0] sm:$0xff]  ;;  %v11769_v36 = vld [vmem:[#allocation2 + $0xf8] sm:$0xff]  ;;  %v11773_v38 = vld [vmem:[#allocation2 + $0x108] sm:$0xff] }
 0x327   : > { %v3736_v39 = vmax.f32 %v3704_v35, 0.0  ;;  %9371 = vmatmul.mubr.msk.f32.gmra.mrb[26].mxu1 %vm3737_vm2, %v11653_v31  ;;  %v11777_v35 = vld [vmem:[#allocation2 + $0x110] sm:$0xff]  ;;  %v11781_v34 = vld [vmem:[#allocation2 + $0x120] sm:$0xff] }
 0x328   : > { %v3735_v40 = vmax.f32 %v3703_v6, 0.0  ;;  %v11663_v3 = vld [vmem:[#allocation2 + $0x159] sm:$0xff]  ;;  %v11785_v6 = vld [vmem:[#allocation2 + $0x128] sm:$0xff] }
 0x329   : > { %3825 = vst.msk [vmem:[#allocation2 + $0x189] sm:$0xff] %vm3737_vm2, %v3736_v39  ;;  %v11658_v41 = vld [vmem:[#allocation2 + $0x151] sm:$0xff]  ;;  %12651 = vst [vmem:[#allocation18_spill] sm:$0xff] %v11663_v3  ;;  %v11827_v31 = vld [vmem:[#allocation2 + $0x1a] sm:$0xff] }
 0x32a   : > { %12650 = vst [vmem:[#allocation12_spill] sm:$0xff] %v11658_v41  ;;  %3824 = vst.msk [vmem:[#allocation2 + $0x181] sm:$0xff] %vm3737_vm2, %v3735_v40  ;;  %9373 = vmatprep.mubr.msk.f32.mxu1 %vm3737_vm2, %v11658_v41  ;;  %v11789_v39 = vld [vmem:[#allocation2 + $0x138] sm:$0xff]  ;;  %v11793_v40 = vld [vmem:[#allocation2 + $0x140] sm:$0xff] }
 0x32b   : > { %9374 = vmatmul.mubr.msk.f32.gmra.mrb[28].mxu1 %vm3737_vm2, %v11663_v3  ;;  %v11801_v12 = vld [vmem:[#allocation2 + $0x158] sm:$0xff]  ;;  %v5350_v3 = vld [vmem:[%s12424_s3 + $0x80] sm:$0xff]  ;;  %v5351_v41 = vld [vmem:[%s12424_s3 + $0x88] sm:$0xff] }
 0x32c   : > { %v11671_v10 = vld [vmem:[#allocation2 + $0x171] sm:$0xff] }
 0x32d   : > { %v11667_v7 = vld [vmem:[#allocation2 + $0x169] sm:$0xff]  ;;  %12653 = vst [vmem:[#allocation30_spill] sm:$0xff] %v11671_v10 }
 0x32e   : > { %12652 = vst [vmem:[#allocation28_spill] sm:$0xff] %v11667_v7  ;;  %9376 = vmatprep.mubr.msk.f32.mxu1 %vm3737_vm2, %v11667_v7  ;;  %v11805_v13 = vld [vmem:[#allocation2 + $0x168] sm:$0xff]  ;;  %v9855_v7 = vpack.c.bf16 %v4964_v20, %v4963_v18  ;;  %v11838_v20 = vld [vmem:[#allocation2 + $0x32] sm:$0xff] }
 0x32f   : > { %9377 = vmatmul.mubr.msk.f32.gmra.mrb[30].mxu1 %vm3737_vm2, %v11671_v10  ;;  %v4541_v10 = vld [vmem:[#allocation2 + $0xa] sm:$0xff]  ;;  %v11834_v18 = vld [vmem:[#allocation2 + $0x22] sm:$0xff]  ;;  %12654 = vst [vmem:[#allocation31_spill] sm:$0xff] %v11838_v20 }
 0x330   : > { %9387 = vmatprep.mubr.msk.f32.mxu1 %vm3737_vm2, %v3826_v8  ;;  %v11797_v8 = vld [vmem:[#allocation2 + $0x150] sm:$0xff] }
 0x333   : > { %9388 = vmatmul.mubr.msk.f32.vlgmr.msra.gmra.mrb[0].mxu1 %vm3737_vm2, %v3827_v14  ;;  %v4540_v14 = vld [vmem:[#allocation2 + $0x2] sm:$0xff] }
 0x334   : > { %9846 = vmatpush3.bf16.msra.mxu1 %v11483_v2  ;;  %9390 = vmatprep.mubr.msk.f32.mxu1 %vm3737_vm2, %v11689_v22  ;;  %v11705_v2 = vld [vmem:[#allocation2 + $0x38] sm:$0xff] }
 0x335   : > { %9848 = vmatprep.subr.bf16.mxu1 %v9847_v16 }
 0x337   : > { %9391 = vmatmul.mubr.msk.f32.gmra.mrb[2].mxu1 %vm3737_vm2, %v11696_v26 }
 0x338   : > { %9393 = vmatprep.mubr.msk.f32.mxu1 %vm3737_vm2, %v11700_v42  ;;  %9850 = vmatpush3.bf16.msra.mxu1 %v9847_v16  ;;  %v11809_v16 = vld [vmem:[#allocation2 + $0x170] sm:$0xff] }
 0x339   : > { %9852 = vmatprep.subr.bf16.mxu1 %v11694_v24 }
 0x33b   : > { %9394 = vmatmul.mubr.msk.f32.gmra.mrb[4].mxu1 %vm3737_vm2, %v11705_v2 }
 0x33c   : > { %9396 = vmatprep.mubr.msk.f32.mxu1 %vm3737_vm2, %v11709_v43 }
 0x33f   : > { %9397 = vmatmul.mubr.msk.f32.gmra.mrb[6].mxu1 %vm3737_vm2, %v11713_v45 }
 0x340   : > { %9399 = vmatprep.mubr.msk.f32.mxu1 %vm3737_vm2, %v11717_v49 }
 0x343   : > { %9400 = vmatmul.mubr.msk.f32.gmra.mrb[8].mxu1 %vm3737_vm2, %v11721_v28 }
 0x344   : > { %9402 = vmatprep.mubr.msk.f32.mxu1 %vm3737_vm2, %v11725_v29 }
 0x347   : > { %9403 = vmatmul.mubr.msk.f32.gmra.mrb[10].mxu1 %vm3737_vm2, %v11729_v32 }
 0x348   : > { %9405 = vmatprep.mubr.msk.f32.mxu1 %vm3737_vm2, %v11733_v50 }
 0x34b   : > { %9406 = vmatmul.mubr.msk.f32.gmra.mrb[12].mxu1 %vm3737_vm2, %v11737_v30 }
 0x34c   : > { %9408 = vmatprep.mubr.msk.f32.mxu1 %vm3737_vm2, %v11741_v54 }
 0x34f   : > { %9409 = vmatmul.mubr.msk.f32.gmra.mrb[14].mxu1 %vm3737_vm2, %v11745_v55 }
 0x350   : > { %9411 = vmatprep.mubr.msk.f32.mxu1 %vm3737_vm2, %v11749_v56 }
 0x353   : > { %9412 = vmatmul.mubr.msk.f32.gmra.mrb[16].mxu1 %vm3737_vm2, %v11753_v58 }
 0x354   : > { %9414 = vmatprep.mubr.msk.f32.mxu1 %vm3737_vm2, %v11757_v60 }
 0x357   : > { %9415 = vmatmul.mubr.msk.f32.gmra.mrb[18].mxu1 %vm3737_vm2, %v11761_v62 }
 0x358   : > { %9417 = vmatprep.mubr.msk.f32.mxu1 %vm3737_vm2, %v11765_v0 }
 0x35b   : > { %9418 = vmatmul.mubr.msk.f32.gmra.mrb[20].mxu1 %vm3737_vm2, %v11769_v36 }
 0x35c   : > { %9420 = vmatprep.mubr.msk.f32.mxu1 %vm3737_vm2, %v11773_v38 }
 0x35f   : > { %9421 = vmatmul.mubr.msk.f32.gmra.mrb[22].mxu1 %vm3737_vm2, %v11777_v35 }
 0x360   : > { %9423 = vmatprep.mubr.msk.f32.mxu1 %vm3737_vm2, %v11781_v34 }
 0x363   : > { %9424 = vmatmul.mubr.msk.f32.gmra.mrb[24].mxu1 %vm3737_vm2, %v11785_v6 }
 0x364   : > { %9426 = vmatprep.mubr.msk.f32.mxu1 %vm3737_vm2, %v11789_v39 }
 0x367   : > { %9427 = vmatmul.mubr.msk.f32.gmra.mrb[26].mxu1 %vm3737_vm2, %v11793_v40 }
 0x368   : > { %9429 = vmatprep.mubr.msk.f32.mxu1 %vm3737_vm2, %v11797_v8 }
 0x36b   : > { %9430 = vmatmul.mubr.msk.f32.gmra.mrb[28].mxu1 %vm3737_vm2, %v11801_v12 }
 0x36c   : > { %9432 = vmatprep.mubr.msk.f32.mxu1 %vm3737_vm2, %v11805_v13 }
 0x36f   : > { %9433 = vmatmul.mubr.msk.f32.gmra.mrb[30].mxu1 %vm3737_vm2, %v11809_v16 }
 0x370   : > { %9443 = vmatprep.mubr.msk.f32.mxu1 %vm3737_vm2, %v4540_v14  ;;  %v11832_v14 = vpack.c.bf16 %v5351_v41, %v5350_v3  ;;  %v11847_v41 = vld [vmem:[#allocation2 + $0x4a] sm:$0xff]  ;;  %v11851_v3 = vld [vmem:[#allocation2 + $0x52] sm:$0xff] }
 0x371   : > { %12656 = vst [vmem:[#allocation35_spill] sm:$0xff] %v11847_v41  ;;  %12657 = vst [vmem:[#allocation3_spill] sm:$0xff] %v11851_v3 }
 0x373   : > { %9444 = vmatmul.mubr.msk.f32.vlgmr.msra.gmra.mrb[0].mxu1 %vm3737_vm2, %v4541_v10  ;;  %v11843_v10 = vld [vmem:[#allocation2 + $0x3a] sm:$0xff] }
 0x374   : > { %9854 = vmatpush3.bf16.msra.mxu1 %v11694_v24  ;;  %9446 = vmatprep.mubr.msk.f32.mxu1 %vm3737_vm2, %v11827_v31  ;;  %12655 = vst [vmem:[#allocation33_spill] sm:$0xff] %v11843_v10  ;;  %v11855_v24 = vld [vmem:[#allocation2 + $0x62] sm:$0xff] }
 0x375   : > { %9856 = vmatprep.subr.bf16.mxu1 %v9855_v7  ;;  %12658 = vst [vmem:[#allocation4_spill] sm:$0xff] %v11855_v24 }
 0x377   : > { %9447 = vmatmul.mubr.msk.f32.gmra.mrb[2].mxu1 %vm3737_vm2, %v11834_v18 }
 0x378   : > { %9449 = vmatprep.mubr.msk.f32.mxu1 %vm3737_vm2, %v11838_v20  ;;  %9858 = vmatpush3.bf16.msra.mxu1 %v9855_v7  ;;  %v11859_v7 = vld [vmem:[#allocation2 + $0x6a] sm:$0xff] }
 0x379   : > { %9860 = vmatprep.subr.bf16.mxu1 %v11832_v14  ;;  %12659 = vst [vmem:[#allocation5_spill] sm:$0xff] %v11859_v7  ;;  %v5740_v20 = vld [vmem:[%s12424_s3 + $0xa8] sm:$0xff] }
 0x37b   : > { %9450 = vmatmul.mubr.msk.f32.gmra.mrb[4].mxu1 %vm3737_vm2, %v11843_v10  ;;  %v11863_v10 = vld [vmem:[#allocation2 + $0x7a] sm:$0xff] }
 0x37c   : > { %9452 = vmatprep.mubr.msk.f32.mxu1 %vm3737_vm2, %v11847_v41  ;;  %12660 = vst [vmem:[#allocation6_spill] sm:$0xff] %v11863_v10  ;;  %v11867_v41 = vld [vmem:[#allocation2 + $0x82] sm:$0xff] }
 0x37d   : > { %12661 = vst [vmem:[#allocation7_spill] sm:$0xff] %v11867_v41 }
 0x37f   : > { %9453 = vmatmul.mubr.msk.f32.gmra.mrb[6].mxu1 %vm3737_vm2, %v11851_v3  ;;  %v11871_v3 = vld [vmem:[#allocation2 + $0x92] sm:$0xff] }
 0x380   : > { %9455 = vmatprep.mubr.msk.f32.mxu1 %vm3737_vm2, %v11855_v24  ;;  %12662 = vst [vmem:[#allocation8_spill] sm:$0xff] %v11871_v3  ;;  %v11875_v24 = vld [vmem:[#allocation2 + $0x9a] sm:$0xff] }
 0x381   : > { %12663 = vst [vmem:[#allocation9_spill] sm:$0xff] %v11875_v24 }
 0x383   : > { %9456 = vmatmul.mubr.msk.f32.gmra.mrb[8].mxu1 %vm3737_vm2, %v11859_v7  ;;  %v11879_v7 = vld [vmem:[#allocation2 + $0xaa] sm:$0xff] }
 0x384   : > { %9458 = vmatprep.mubr.msk.f32.mxu1 %vm3737_vm2, %v11863_v10  ;;  %12664 = vst [vmem:[#allocation10_spill] sm:$0xff] %v11879_v7  ;;  %v11883_v10 = vld [vmem:[#allocation2 + $0xb2] sm:$0xff] }
 0x385   : > { %12665 = vst [vmem:[#allocation37_spill] sm:$0xff] %v11883_v10 }
 0x387   : > { %9459 = vmatmul.mubr.msk.f32.gmra.mrb[10].mxu1 %vm3737_vm2, %v11867_v41  ;;  %v11887_v41 = vld [vmem:[#allocation2 + $0xc2] sm:$0xff] }
 0x388   : > { %9461 = vmatprep.mubr.msk.f32.mxu1 %vm3737_vm2, %v11871_v3  ;;  %12666 = vst [vmem:[#allocation38_spill] sm:$0xff] %v11887_v41  ;;  %v11891_v3 = vld [vmem:[#allocation2 + $0xca] sm:$0xff] }
 0x389   : > { %12667 = vst [vmem:[#allocation13_spill] sm:$0xff] %v11891_v3 }
 0x38b   : > { %9462 = vmatmul.mubr.msk.f32.gmra.mrb[12].mxu1 %vm3737_vm2, %v11875_v24  ;;  %v11895_v24 = vld [vmem:[#allocation2 + $0xda] sm:$0xff] }
 0x38c   : > { %9464 = vmatprep.mubr.msk.f32.mxu1 %vm3737_vm2, %v11879_v7  ;;  %12668 = vst [vmem:[#allocation14_spill] sm:$0xff] %v11895_v24  ;;  %v11899_v7 = vld [vmem:[#allocation2 + $0xe2] sm:$0xff] }
 0x38d   : > { %12669 = vst [vmem:[#allocation15_spill] sm:$0xff] %v11899_v7 }
 0x38f   : > { %9465 = vmatmul.mubr.msk.f32.gmra.mrb[14].mxu1 %vm3737_vm2, %v11883_v10  ;;  %v11903_v10 = vld [vmem:[#allocation2 + $0xf2] sm:$0xff] }
 0x390   : > { %9467 = vmatprep.mubr.msk.f32.mxu1 %vm3737_vm2, %v11887_v41  ;;  %12670 = vst [vmem:[#allocation16_spill] sm:$0xff] %v11903_v10  ;;  %v11907_v41 = vld [vmem:[#allocation2 + $0xfa] sm:$0xff] }
 0x391   : > { %12671 = vst [vmem:[#allocation17_spill] sm:$0xff] %v11907_v41 }
 0x393   : > { %9468 = vmatmul.mubr.msk.f32.gmra.mrb[16].mxu1 %vm3737_vm2, %v11891_v3  ;;  %v11911_v3 = vld [vmem:[#allocation2 + $0x10a] sm:$0xff] }
 0x394   : > { %9470 = vmatprep.mubr.msk.f32.mxu1 %vm3737_vm2, %v11895_v24  ;;  %12672 = vst [vmem:[#allocation19_spill] sm:$0xff] %v11911_v3  ;;  %v11915_v24 = vld [vmem:[#allocation2 + $0x112] sm:$0xff] }
 0x395   : > { %12673 = vst [vmem:[#allocation20_spill] sm:$0xff] %v11915_v24 }
 0x397   : > { %9471 = vmatmul.mubr.msk.f32.gmra.mrb[18].mxu1 %vm3737_vm2, %v11899_v7  ;;  %v11919_v7 = vld [vmem:[#allocation2 + $0x122] sm:$0xff] }
 0x398   : > { %9473 = vmatprep.mubr.msk.f32.mxu1 %vm3737_vm2, %v11903_v10  ;;  %12674 = vst [vmem:[#allocation21_spill] sm:$0xff] %v11919_v7  ;;  %v11923_v10 = vld [vmem:[#allocation2 + $0x12a] sm:$0xff] }
 0x399   : > { %12675 = vst [vmem:[#allocation22_spill] sm:$0xff] %v11923_v10 }
 0x39b   : > { %9474 = vmatmul.mubr.msk.f32.gmra.mrb[20].mxu1 %vm3737_vm2, %v11907_v41  ;;  %v11927_v41 = vld [vmem:[#allocation2 + $0x13a] sm:$0xff] }
 0x39c   : > { %9476 = vmatprep.mubr.msk.f32.mxu1 %vm3737_vm2, %v11911_v3  ;;  %12676 = vst [vmem:[#allocation23_spill] sm:$0xff] %v11927_v41  ;;  %v11931_v3 = vld [vmem:[#allocation2 + $0x142] sm:$0xff] }
 0x39d   : > { %12677 = vst [vmem:[#allocation24_spill] sm:$0xff] %v11931_v3 }
 0x39f   : > { %9477 = vmatmul.mubr.msk.f32.gmra.mrb[22].mxu1 %vm3737_vm2, %v11915_v24  ;;  %v11935_v24 = vld [vmem:[#allocation2 + $0x152] sm:$0xff] }
 0x3a0   : > { %9479 = vmatprep.mubr.msk.f32.mxu1 %vm3737_vm2, %v11919_v7  ;;  %12678 = vst [vmem:[#allocation25_spill] sm:$0xff] %v11935_v24  ;;  %v11939_v7 = vld [vmem:[#allocation2 + $0x15a] sm:$0xff] }
 0x3a1   : > { %12679 = vst [vmem:[#allocation26_spill] sm:$0xff] %v11939_v7 }
 0x3a3   : > { %9480 = vmatmul.mubr.msk.f32.gmra.mrb[24].mxu1 %vm3737_vm2, %v11923_v10  ;;  %v11943_v10 = vld [vmem:[#allocation2 + $0x16a] sm:$0xff] }
 0x3a4   : > { %9482 = vmatprep.mubr.msk.f32.mxu1 %vm3737_vm2, %v11927_v41  ;;  %12680 = vst [vmem:[#allocation27_spill] sm:$0xff] %v11943_v10  ;;  %v11947_v41 = vld [vmem:[#allocation2 + $0x172] sm:$0xff] }
 0x3a5   : > { %12681 = vst [vmem:[#allocation29_spill] sm:$0xff] %v11947_v41 }
 0x3a7   : > { %9483 = vmatmul.mubr.msk.f32.gmra.mrb[26].mxu1 %vm3737_vm2, %v11931_v3  ;;  %v5352_v3 = vld [vmem:[%s12424_s3 + $0x90] sm:$0xff] }
 0x3a8   : > { %9485 = vmatprep.mubr.msk.f32.mxu1 %vm3737_vm2, %v11935_v24  ;;  %v5353_v24 = vld [vmem:[%s12424_s3 + $0x98] sm:$0xff] }
 0x3ab   : > { %9486 = vmatmul.mubr.msk.f32.gmra.mrb[28].mxu1 %vm3737_vm2, %v11939_v7  ;;  %v9863_v7 = vpack.c.bf16 %v5353_v24, %v5352_v3  ;;  %v6129_v3 = vld [vmem:[%s12424_s3 + $0xc0] sm:$0xff]  ;;  %v6130_v24 = vld [vmem:[%s12424_s3 + $0xc8] sm:$0xff] }
 0x3ac   : > { %9488 = vmatprep.mubr.msk.f32.mxu1 %vm3737_vm2, %v11943_v10  ;;  %v5739_v10 = vld [vmem:[%s12424_s3 + $0xa0] sm:$0xff] }
 0x3af   : > { %9489 = vmatmul.mubr.msk.f32.gmra.mrb[30].mxu1 %vm3737_vm2, %v11947_v41  ;;  %v9867_v41 = vpack.c.bf16 %v5740_v20, %v5739_v10  ;;  %v5742_v20 = vld [vmem:[%s12424_s3 + $0xb8] sm:$0xff] }
 0x3b0   : > { %9499 = vmatprep.mubr.msk.f32.mxu1 %vm3737_vm2, %v11689_v22  ;;  %v12024_v22 = vld [vmem:[#allocation2 + $0x180] sm:$0xff] }
 0x3b3   : > { %9500 = vmatmul.mubr.msk.f32.vlgmr.msra.gmra.mrb[0].mxu1 %vm3737_vm2, %v11696_v26  ;;  %v12028_v26 = vld [vmem:[#allocation2 + $0x188] sm:$0xff] }
 0x3b4   : > { %9862 = vmatpush3.bf16.msra.mxu1 %v11832_v14  ;;  %9502 = vmatprep.mubr.msk.f32.mxu1 %vm3737_vm2, %v11700_v42  ;;  %v5741_v14 = vld [vmem:[%s12424_s3 + $0xb0] sm:$0xff] }
 0x3b5   : > { %9864 = vmatprep.subr.bf16.mxu1 %v9863_v7  ;;  %v9871_v10 = vpack.c.bf16 %v5742_v20, %v5741_v14  ;;  %v12701_v14 = vld [vmem:[#allocation14_spill] sm:$0xff]  ;;  %v12702_v20 = vld [vmem:[#allocation15_spill] sm:$0xff] }
 0x3b7   : > { %9503 = vmatmul.mubr.msk.f32.gmra.mrb[2].mxu1 %vm3737_vm2, %v11705_v2 }
 0x3b8   : > { %9505 = vmatprep.mubr.msk.f32.mxu1 %vm3737_vm2, %v11709_v43  ;;  %9866 = vmatpush3.bf16.msra.mxu1 %v9863_v7  ;;  %v9875_v7 = vpack.c.bf16 %v6130_v24, %v6129_v3  ;;  %v12704_v3 = vld [vmem:[#allocation17_spill] sm:$0xff]  ;;  %v12705_v24 = vld [vmem:[#allocation19_spill] sm:$0xff] }
 0x3b9   : > { %9868 = vmatprep.subr.bf16.mxu1 %v9867_v41 }
 0x3bb   : > { %9506 = vmatmul.mubr.msk.f32.gmra.mrb[4].mxu1 %vm3737_vm2, %v11713_v45 }
 0x3bc   : > { %9508 = vmatprep.mubr.msk.f32.mxu1 %vm3737_vm2, %v11717_v49 }
 0x3bf   : > { %9509 = vmatmul.mubr.msk.f32.gmra.mrb[6].mxu1 %vm3737_vm2, %v11721_v28 }
 0x3c0   : > { %9511 = vmatprep.mubr.msk.f32.mxu1 %vm3737_vm2, %v11725_v29 }
 0x3c3   : > { %9512 = vmatmul.mubr.msk.f32.gmra.mrb[8].mxu1 %vm3737_vm2, %v11729_v32 }
 0x3c4   : > { %9514 = vmatprep.mubr.msk.f32.mxu1 %vm3737_vm2, %v11733_v50 }
 0x3c7   : > { %9515 = vmatmul.mubr.msk.f32.gmra.mrb[10].mxu1 %vm3737_vm2, %v11737_v30 }
 0x3c8   : > { %9517 = vmatprep.mubr.msk.f32.mxu1 %vm3737_vm2, %v11741_v54 }
 0x3cb   : > { %9518 = vmatmul.mubr.msk.f32.gmra.mrb[12].mxu1 %vm3737_vm2, %v11745_v55 }
 0x3cc   : > { %9520 = vmatprep.mubr.msk.f32.mxu1 %vm3737_vm2, %v11749_v56 }
 0x3cf   : > { %9521 = vmatmul.mubr.msk.f32.gmra.mrb[14].mxu1 %vm3737_vm2, %v11753_v58 }
 0x3d0   : > { %9523 = vmatprep.mubr.msk.f32.mxu1 %vm3737_vm2, %v11757_v60 }
 0x3d3   : > { %9524 = vmatmul.mubr.msk.f32.gmra.mrb[16].mxu1 %vm3737_vm2, %v11761_v62 }
 0x3d4   : > { %9526 = vmatprep.mubr.msk.f32.mxu1 %vm3737_vm2, %v11765_v0 }
 0x3d7   : > { %9527 = vmatmul.mubr.msk.f32.gmra.mrb[18].mxu1 %vm3737_vm2, %v11769_v36 }
 0x3d8   : > { %9529 = vmatprep.mubr.msk.f32.mxu1 %vm3737_vm2, %v11773_v38 }
 0x3db   : > { %9530 = vmatmul.mubr.msk.f32.gmra.mrb[20].mxu1 %vm3737_vm2, %v11777_v35 }
 0x3dc   : > { %9532 = vmatprep.mubr.msk.f32.mxu1 %vm3737_vm2, %v11781_v34 }
 0x3df   : > { %9533 = vmatmul.mubr.msk.f32.gmra.mrb[22].mxu1 %vm3737_vm2, %v11785_v6 }
 0x3e0   : > { %9535 = vmatprep.mubr.msk.f32.mxu1 %vm3737_vm2, %v11789_v39 }
 0x3e3   : > { %9536 = vmatmul.mubr.msk.f32.gmra.mrb[24].mxu1 %vm3737_vm2, %v11793_v40 }
 0x3e4   : > { %9538 = vmatprep.mubr.msk.f32.mxu1 %vm3737_vm2, %v11797_v8 }
 0x3e7   : > { %9539 = vmatmul.mubr.msk.f32.gmra.mrb[26].mxu1 %vm3737_vm2, %v11801_v12 }
 0x3e8   : > { %9541 = vmatprep.mubr.msk.f32.mxu1 %vm3737_vm2, %v11805_v13 }
 0x3eb   : > { %9542 = vmatmul.mubr.msk.f32.gmra.mrb[28].mxu1 %vm3737_vm2, %v11809_v16 }
 0x3ec   : > { %9544 = vmatprep.mubr.msk.f32.mxu1 %vm3737_vm2, %v12024_v22 }
 0x3ef   : > { %9545 = vmatmul.mubr.msk.f32.gmra.mrb[30].mxu1 %vm3737_vm2, %v12028_v26 }
 0x3f0   : > { %9555 = vmatprep.mubr.msk.f32.mxu1 %vm3737_vm2, %v11503_v15  ;;  %v12682_v15 = vld [vmem:[#allocation11_spill] sm:$0xff] }
 0x3f3   : > { %9556 = vmatmul.mubr.msk.f32.vlgmr.msra.gmra.mrb[0].mxu1 %vm3737_vm2, %v11509_v17  ;;  %v12683_v17 = vld [vmem:[#allocation12_spill] sm:$0xff] }
 0x3f4   : > { %9870 = vmatpush3.bf16.msra.mxu1 %v9867_v41  ;;  %9558 = vmatprep.mubr.msk.f32.mxu1 %vm3737_vm2, %v11515_v23  ;;  %v12684_v23 = vld [vmem:[#allocation18_spill] sm:$0xff]  ;;  %v12700_v41 = vld [vmem:[#allocation13_spill] sm:$0xff] }
 0x3f5   : > { %9872 = vmatprep.subr.bf16.mxu1 %v9871_v10 }
 0x3f7   : > { %9559 = vmatmul.mubr.msk.f32.gmra.mrb[2].mxu1 %vm3737_vm2, %v11521_v25  ;;  %v12685_v25 = vld [vmem:[#allocation28_spill] sm:$0xff] }
 0x3f8   : > { %9561 = vmatprep.mubr.msk.f32.mxu1 %vm3737_vm2, %v11527_v46  ;;  %9874 = vmatpush3.bf16.msra.mxu1 %v9871_v10  ;;  %v12686_v46 = vld [vmem:[#allocation30_spill] sm:$0xff]  ;;  %v12703_v10 = vld [vmem:[#allocation16_spill] sm:$0xff] }
 0x3f9   : > { %9876 = vmatprep.subr.bf16.mxu1 %v9875_v7 }
 0x3fb   : > { %9562 = vmatmul.mubr.msk.f32.gmra.mrb[4].mxu1 %vm3737_vm2, %v11533_v48  ;;  %v12104_v48 = vld [vmem:[#allocation2 + $0x181] sm:$0xff] }
 0x3fc   : > { %9564 = vmatprep.mubr.msk.f32.mxu1 %vm3737_vm2, %v11539_v51  ;;  %v12108_v51 = vld [vmem:[#allocation2 + $0x189] sm:$0xff] }
 0x3ff   : > { %9565 = vmatmul.mubr.msk.f32.gmra.mrb[6].mxu1 %vm3737_vm2, %v11545_v53  ;;  %v6131_v53 = vld [vmem:[%s12424_s3 + $0xd0] sm:$0xff] }
 0x400   : > { %9567 = vmatprep.mubr.msk.f32.mxu1 %vm3737_vm2, %v11551_v57  ;;  %v6132_v57 = vld [vmem:[%s12424_s3 + $0xd8] sm:$0xff] }
 0x403   : > { %9568 = vmatmul.mubr.msk.f32.gmra.mrb[8].mxu1 %vm3737_vm2, %v11557_v59  ;;  %v9879_v59 = vpack.c.bf16 %v6132_v57, %v6131_v53  ;;  %v12707_v53 = vld [vmem:[#allocation21_spill] sm:$0xff]  ;;  %v12708_v57 = vld [vmem:[#allocation22_spill] sm:$0xff] }
 0x404   : > { %9570 = vmatprep.mubr.msk.f32.mxu1 %vm3737_vm2, %v11563_v1  ;;  %v6518_v1 = vld [vmem:[%s12424_s3 + $0xe0] sm:$0xff] }
 0x407   : > { %9571 = vmatmul.mubr.msk.f32.gmra.mrb[10].mxu1 %vm3737_vm2, %v11569_v5  ;;  %v6519_v5 = vld [vmem:[%s12424_s3 + $0xe8] sm:$0xff] }
 0x408   : > { %9573 = vmatprep.mubr.msk.f32.mxu1 %vm3737_vm2, %v11575_v33  ;;  %v12687_v33 = vld [vmem:[#allocation31_spill] sm:$0xff] }
 0x40b   : > { %9574 = vmatmul.mubr.msk.f32.gmra.mrb[12].mxu1 %vm3737_vm2, %v11581_v4  ;;  %v9883_v4 = vpack.c.bf16 %v6519_v5, %v6518_v1  ;;  %v12710_v1 = vld [vmem:[#allocation24_spill] sm:$0xff]  ;;  %v12711_v5 = vld [vmem:[#allocation25_spill] sm:$0xff] }
 0x40c   : > { %9576 = vmatprep.mubr.msk.f32.mxu1 %vm3737_vm2, %v11587_v9  ;;  %v12688_v9 = vld [vmem:[#allocation33_spill] sm:$0xff] }
 0x40f   : > { %9577 = vmatmul.mubr.msk.f32.gmra.mrb[14].mxu1 %vm3737_vm2, %v11593_v11  ;;  %v12689_v11 = vld [vmem:[#allocation35_spill] sm:$0xff] }
 0x410   : > { %9579 = vmatprep.mubr.msk.f32.mxu1 %vm3737_vm2, %v11599_v19  ;;  %v12690_v19 = vld [vmem:[#allocation3_spill] sm:$0xff] }
 0x413   : > { %9580 = vmatmul.mubr.msk.f32.gmra.mrb[16].mxu1 %vm3737_vm2, %v11605_v21  ;;  %v12691_v21 = vld [vmem:[#allocation4_spill] sm:$0xff] }
 0x414   : > { %9582 = vmatprep.mubr.msk.f32.mxu1 %vm3737_vm2, %v11611_v44  ;;  %v12692_v44 = vld [vmem:[#allocation5_spill] sm:$0xff] }
 0x417   : > { %9583 = vmatmul.mubr.msk.f32.gmra.mrb[18].mxu1 %vm3737_vm2, %v11617_v47  ;;  %v12693_v47 = vld [vmem:[#allocation6_spill] sm:$0xff] }
 0x418   : > { %9585 = vmatprep.mubr.msk.f32.mxu1 %vm3737_vm2, %v11623_v52  ;;  %v12694_v52 = vld [vmem:[#allocation7_spill] sm:$0xff] }
 0x41b   : > { %9586 = vmatmul.mubr.msk.f32.gmra.mrb[20].mxu1 %vm3737_vm2, %v11629_v27  ;;  %v12695_v27 = vld [vmem:[#allocation8_spill] sm:$0xff] }
 0x41c   : > { %9588 = vmatprep.mubr.msk.f32.mxu1 %vm3737_vm2, %v11635_v61  ;;  %v12696_v61 = vld [vmem:[#allocation9_spill] sm:$0xff] }
 0x41f   : > { %9589 = vmatmul.mubr.msk.f32.gmra.mrb[22].mxu1 %vm3737_vm2, %v11641_v63  ;;  %v12697_v63 = vld [vmem:[#allocation10_spill] sm:$0xff] }
 0x420   : > { %9591 = vmatprep.mubr.msk.f32.mxu1 %vm3737_vm2, %v11647_v37 }
 0x423   : > { %9592 = vmatmul.mubr.msk.f32.gmra.mrb[24].mxu1 %vm3737_vm2, %v12682_v15 }
 0x424   : > { %9594 = vmatprep.mubr.msk.f32.mxu1 %vm3737_vm2, %v12683_v17 }
 0x427   : > { %9595 = vmatmul.mubr.msk.f32.gmra.mrb[26].mxu1 %vm3737_vm2, %v12684_v23 }
 0x428   : > { %9597 = vmatprep.mubr.msk.f32.mxu1 %vm3737_vm2, %v12685_v25 }
 0x42b   : > { %9598 = vmatmul.mubr.msk.f32.gmra.mrb[28].mxu1 %vm3737_vm2, %v12686_v46 }
 0x42c   : > { %9600 = vmatprep.mubr.msk.f32.mxu1 %vm3737_vm2, %v12104_v48 }
 0x42f   : > { %9601 = vmatmul.mubr.msk.f32.gmra.mrb[30].mxu1 %vm3737_vm2, %v12108_v51 }
 0x430   : > { %9611 = vmatprep.mubr.msk.f32.mxu1 %vm3737_vm2, %v11827_v31  ;;  %v12698_v31 = vld [vmem:[#allocation37_spill] sm:$0xff] }
 0x433   : > { %9612 = vmatmul.mubr.msk.f32.vlgmr.msra.gmra.mrb[0].mxu1 %vm3737_vm2, %v11834_v18  ;;  %v12699_v18 = vld [vmem:[#allocation38_spill] sm:$0xff] }
 0x434   : > { %9878 = vmatpush3.bf16.msra.mxu1 %v9875_v7  ;;  %9614 = vmatprep.mubr.msk.f32.mxu1 %vm3737_vm2, %v12687_v33  ;;  %v12706_v7 = vld [vmem:[#allocation20_spill] sm:$0xff] }
 0x435   : > { %9880 = vmatprep.subr.bf16.mxu1 %v9879_v59 }
 0x437   : > { %9615 = vmatmul.mubr.msk.f32.gmra.mrb[2].mxu1 %vm3737_vm2, %v12688_v9 }
 0x438   : > { %9617 = vmatprep.mubr.msk.f32.mxu1 %vm3737_vm2, %v12689_v11  ;;  %9882 = vmatpush3.bf16.msra.mxu1 %v9879_v59  ;;  %v12709_v59 = vld [vmem:[#allocation23_spill] sm:$0xff] }
 0x439   : > { %9884 = vmatprep.subr.bf16.mxu1 %v9883_v4 }
 0x43b   : > { %9618 = vmatmul.mubr.msk.f32.gmra.mrb[4].mxu1 %vm3737_vm2, %v12690_v19 }
 0x43c   : > { %9620 = vmatprep.mubr.msk.f32.mxu1 %vm3737_vm2, %v12691_v21 }
 0x43f   : > { %9621 = vmatmul.mubr.msk.f32.gmra.mrb[6].mxu1 %vm3737_vm2, %v12692_v44 }
 0x440   : > { %9623 = vmatprep.mubr.msk.f32.mxu1 %vm3737_vm2, %v12693_v47 }
 0x443   : > { %9624 = vmatmul.mubr.msk.f32.gmra.mrb[8].mxu1 %vm3737_vm2, %v12694_v52 }
 0x444   : > { %9626 = vmatprep.mubr.msk.f32.mxu1 %vm3737_vm2, %v12695_v27 }
 0x447   : > { %9627 = vmatmul.mubr.msk.f32.gmra.mrb[10].mxu1 %vm3737_vm2, %v12696_v61 }
 0x448   : > { %9629 = vmatprep.mubr.msk.f32.mxu1 %vm3737_vm2, %v12697_v63 }
 0x44b   : > { %9630 = vmatmul.mubr.msk.f32.gmra.mrb[12].mxu1 %vm3737_vm2, %v12698_v31 }
 0x44c   : > { %9632 = vmatprep.mubr.msk.f32.mxu1 %vm3737_vm2, %v12699_v18 }
 0x44f   : > { %9633 = vmatmul.mubr.msk.f32.gmra.mrb[14].mxu1 %vm3737_vm2, %v12700_v41 }
 0x450   : > { %9635 = vmatprep.mubr.msk.f32.mxu1 %vm3737_vm2, %v12701_v14 }
 0x453   : > { %9636 = vmatmul.mubr.msk.f32.gmra.mrb[16].mxu1 %vm3737_vm2, %v12702_v20 }
 0x454   : > { %9638 = vmatprep.mubr.msk.f32.mxu1 %vm3737_vm2, %v12703_v10 }
 0x457   : > { %9639 = vmatmul.mubr.msk.f32.gmra.mrb[18].mxu1 %vm3737_vm2, %v12704_v3  ;;  %v12712_v3 = vld [vmem:[#allocation26_spill] sm:$0xff] }
 0x458   : > { %9641 = vmatprep.mubr.msk.f32.mxu1 %vm3737_vm2, %v12705_v24  ;;  %v12713_v24 = vld [vmem:[#allocation27_spill] sm:$0xff] }
 0x45b   : > { %9642 = vmatmul.mubr.msk.f32.gmra.mrb[20].mxu1 %vm3737_vm2, %v12706_v7  ;;  %v12714_v7 = vld [vmem:[#allocation29_spill] sm:$0xff] }
 0x45c   : > { %9644 = vmatprep.mubr.msk.f32.mxu1 %vm3737_vm2, %v12707_v53  ;;  %v12184_v53 = vld [vmem:[#allocation2 + $0x182] sm:$0xff] }
 0x45d   : > { %12715 = vst [vmem:[#allocation32_spill] sm:$0xff] %v12184_v53 }
 0x45f   : > { %9645 = vmatmul.mubr.msk.f32.gmra.mrb[22].mxu1 %vm3737_vm2, %v12708_v57 }
 0x460   : > { %9647 = vmatprep.mubr.msk.f32.mxu1 %vm3737_vm2, %v12709_v59  ;;  %v12188_v59 = vld [vmem:[#allocation2 + $0x18a] sm:$0xff] }
 0x461   : > { %12716 = vst [vmem:[#allocation34_spill] sm:$0xff] %v12188_v59 }
 0x463   : > { %9648 = vmatmul.mubr.msk.f32.gmra.mrb[24].mxu1 %vm3737_vm2, %v12710_v1 }
 0x464   : > { %9650 = vmatprep.mubr.msk.f32.mxu1 %vm3737_vm2, %v12711_v5  ;;  %v6520_v5 = vld [vmem:[%s12424_s3 + $0xf0] sm:$0xff] }
 0x467   : > { %9651 = vmatmul.mubr.msk.f32.gmra.mrb[26].mxu1 %vm3737_vm2, %v12712_v3  ;;  %v6521_v3 = vld [vmem:[%s12424_s3 + $0xf8] sm:$0xff] }
 0x468   : > { %9653 = vmatprep.mubr.msk.f32.mxu1 %vm3737_vm2, %v12713_v24  ;;  %v6908_v24 = vld [vmem:[%s12424_s3 + $0x108] sm:$0xff] }
 0x46b   : > { %9654 = vmatmul.mubr.msk.f32.gmra.mrb[28].mxu1 %vm3737_vm2, %v12714_v7  ;;  %v9887_v7 = vpack.c.bf16 %v6521_v3, %v6520_v5 }
 0x46c   : > { %9656 = vmatprep.mubr.msk.f32.mxu1 %vm3737_vm2, %v12184_v53  ;;  %v6907_v53 = vld [vmem:[%s12424_s3 + $0x100] sm:$0xff] }
 0x46f   : > { %9657 = vmatmul.mubr.msk.f32.gmra.mrb[30].mxu1 %vm3737_vm2, %v12188_v59  ;;  %v9891_v59 = vpack.c.bf16 %v6908_v24, %v6907_v53 }
 0x470   : > { %9667 = vmatprep.mubr.msk.f32.mxu1 %vm3737_vm2, %v11700_v42  ;;  %v6127_v42 = vld [vmem:[#allocation2 + $0x198] sm:$0xff] }
 0x473   : > { %9668 = vmatmul.mubr.msk.f32.vlgmr.msra.gmra.mrb[0].mxu1 %vm3737_vm2, %v11705_v2  ;;  %v6128_v2 = vld [vmem:[#allocation2 + $0x1a0] sm:$0xff] }
 0x474   : > { %9886 = vmatpush3.bf16.msra.mxu1 %v9883_v4  ;;  %9670 = vmatprep.mubr.msk.f32.mxu1 %vm3737_vm2, %v11709_v43  ;;  %v6909_v43 = vld [vmem:[%s12424_s3 + $0x110] sm:$0xff]  ;;  %v6905_v4 = vld [vmem:[#allocation2 + $0x19a] sm:$0xff] }
 0x475   : > { %9888 = vmatprep.subr.bf16.mxu1 %v9887_v7 }
 0x477   : > { %9671 = vmatmul.mubr.msk.f32.gmra.mrb[2].mxu1 %vm3737_vm2, %v11713_v45  ;;  %v6910_v45 = vld [vmem:[%s12424_s3 + $0x118] sm:$0xff] }
 0x478   : > { %9673 = vmatprep.mubr.msk.f32.mxu1 %vm3737_vm2, %v11717_v49  ;;  %9890 = vmatpush3.bf16.msra.mxu1 %v9887_v7  ;;  %v6486_v49 = vld [vmem:[#allocation2 + $0x31] sm:$0xff] }
 0x479   : > { %9892 = vmatprep.subr.bf16.mxu1 %v9891_v59 }
 0x47b   : > { %9674 = vmatmul.mubr.msk.f32.gmra.mrb[4].mxu1 %vm3737_vm2, %v11721_v28  ;;  %v9895_v28 = vpack.c.bf16 %v6910_v45, %v6909_v43 }
 0x47c   : > { %9676 = vmatprep.mubr.msk.f32.mxu1 %vm3737_vm2, %v11725_v29  ;;  %v6487_v29 = vld [vmem:[#allocation2 + $0x39] sm:$0xff] }
 0x47f   : > { %9677 = vmatmul.mubr.msk.f32.gmra.mrb[6].mxu1 %vm3737_vm2, %v11729_v32  ;;  %v6488_v32 = vld [vmem:[#allocation2 + $0x49] sm:$0xff] }
 0x480   : > { %9679 = vmatprep.mubr.msk.f32.mxu1 %vm3737_vm2, %v11733_v50  ;;  %v6489_v50 = vld [vmem:[#allocation2 + $0x51] sm:$0xff] }
 0x483   : > { %9680 = vmatmul.mubr.msk.f32.gmra.mrb[8].mxu1 %vm3737_vm2, %v11737_v30  ;;  %v6490_v30 = vld [vmem:[#allocation2 + $0x61] sm:$0xff] }
 0x484   : > { %9682 = vmatprep.mubr.msk.f32.mxu1 %vm3737_vm2, %v11741_v54  ;;  %v6491_v54 = vld [vmem:[#allocation2 + $0x69] sm:$0xff] }
 0x487   : > { %9683 = vmatmul.mubr.msk.f32.gmra.mrb[10].mxu1 %vm3737_vm2, %v11745_v55  ;;  %v6492_v55 = vld [vmem:[#allocation2 + $0x79] sm:$0xff] }
 0x488   : > { %9685 = vmatprep.mubr.msk.f32.mxu1 %vm3737_vm2, %v11749_v56  ;;  %v6493_v56 = vld [vmem:[#allocation2 + $0x81] sm:$0xff] }
 0x48b   : > { %9686 = vmatmul.mubr.msk.f32.gmra.mrb[12].mxu1 %vm3737_vm2, %v11753_v58  ;;  %v6494_v58 = vld [vmem:[#allocation2 + $0x91] sm:$0xff] }
 0x48c   : > { %9688 = vmatprep.mubr.msk.f32.mxu1 %vm3737_vm2, %v11757_v60  ;;  %v6495_v60 = vld [vmem:[#allocation2 + $0x99] sm:$0xff] }
 0x48f   : > { %9689 = vmatmul.mubr.msk.f32.gmra.mrb[14].mxu1 %vm3737_vm2, %v11761_v62  ;;  %v6496_v62 = vld [vmem:[#allocation2 + $0xa9] sm:$0xff] }
 0x490   : > { %9691 = vmatprep.mubr.msk.f32.mxu1 %vm3737_vm2, %v11765_v0  ;;  %v6497_v0 = vld [vmem:[#allocation2 + $0xb1] sm:$0xff] }
 0x493   : > { %9692 = vmatmul.mubr.msk.f32.gmra.mrb[16].mxu1 %vm3737_vm2, %v11769_v36  ;;  %v6498_v36 = vld [vmem:[#allocation2 + $0xc1] sm:$0xff] }
 0x494   : > { %9694 = vmatprep.mubr.msk.f32.mxu1 %vm3737_vm2, %v11773_v38  ;;  %v6499_v38 = vld [vmem:[#allocation2 + $0xc9] sm:$0xff] }
 0x497   : > { %9695 = vmatmul.mubr.msk.f32.gmra.mrb[18].mxu1 %vm3737_vm2, %v11777_v35  ;;  %v6500_v35 = vld [vmem:[#allocation2 + $0xd9] sm:$0xff] }
 0x498   : > { %9697 = vmatprep.mubr.msk.f32.mxu1 %vm3737_vm2, %v11781_v34  ;;  %v6501_v34 = vld [vmem:[#allocation2 + $0xe1] sm:$0xff] }
 0x49b   : > { %9698 = vmatmul.mubr.msk.f32.gmra.mrb[20].mxu1 %vm3737_vm2, %v11785_v6  ;;  %v6502_v6 = vld [vmem:[#allocation2 + $0xf1] sm:$0xff] }
 0x49c   : > { %9700 = vmatprep.mubr.msk.f32.mxu1 %vm3737_vm2, %v11789_v39  ;;  %v6503_v39 = vld [vmem:[#allocation2 + $0xf9] sm:$0xff] }
 0x49f   : > { %9701 = vmatmul.mubr.msk.f32.gmra.mrb[22].mxu1 %vm3737_vm2, %v11793_v40  ;;  %v6504_v40 = vld [vmem:[#allocation2 + $0x109] sm:$0xff] }
 0x4a0   : > { %9703 = vmatprep.mubr.msk.f32.mxu1 %vm3737_vm2, %v11797_v8  ;;  %v6505_v8 = vld [vmem:[#allocation2 + $0x111] sm:$0xff] }
 0x4a3   : > { %9704 = vmatmul.mubr.msk.f32.gmra.mrb[24].mxu1 %vm3737_vm2, %v11801_v12  ;;  %v6506_v12 = vld [vmem:[#allocation2 + $0x121] sm:$0xff] }
 0x4a4   : > { %9706 = vmatprep.mubr.msk.f32.mxu1 %vm3737_vm2, %v11805_v13  ;;  %v6507_v13 = vld [vmem:[#allocation2 + $0x129] sm:$0xff] }
 0x4a7   : > { %9707 = vmatmul.mubr.msk.f32.gmra.mrb[26].mxu1 %vm3737_vm2, %v11809_v16  ;;  %v6516_v16 = vld [vmem:[#allocation2 + $0x199] sm:$0xff] }
 0x4a8   : > { %9709 = vmatprep.mubr.msk.f32.mxu1 %vm3737_vm2, %v12024_v22  ;;  %v12717_v22 = vld [vmem:[#allocation17_spill] sm:$0xff] }
 0x4ab   : > { %9710 = vmatmul.mubr.msk.f32.gmra.mrb[28].mxu1 %vm3737_vm2, %v12028_v26  ;;  %v12718_v26 = vld [vmem:[#allocation19_spill] sm:$0xff] }
 0x4ac   : > { %9712 = vmatprep.mubr.msk.f32.mxu1 %vm3737_vm2, %v6127_v42 }
 0x4af   : > { %9713 = vmatmul.mubr.msk.f32.gmra.mrb[30].mxu1 %vm3737_vm2, %v6128_v2 }
 0x4b0   : > { %9723 = vmatprep.mubr.msk.f32.mxu1 %vm3737_vm2, %v6486_v49 }
 0x4b3   : > { %9724 = vmatmul.mubr.msk.f32.vlgmr.msra.gmra.mrb[0].mxu1 %vm3737_vm2, %v6487_v29 }
 0x4b4   : > { %9894 = vmatpush3.bf16.msra.mxu1 %v9891_v59  ;;  %9726 = vmatprep.mubr.msk.f32.mxu1 %vm3737_vm2, %v6488_v32 }
 0x4b5   : > { %9896 = vmatprep.subr.bf16.mxu1 %v9895_v28 }
 0x4b7   : > { %9727 = vmatmul.mubr.msk.f32.gmra.mrb[2].mxu1 %vm3737_vm2, %v6489_v50 }
 0x4b8   : > { %9729 = vmatprep.mubr.msk.f32.mxu1 %vm3737_vm2, %v6490_v30  ;;  %9898 = vmatpush3.bf16.msra.mxu1 %v9895_v28 }
 0x4bb   : > { %9730 = vmatmul.mubr.msk.f32.gmra.mrb[4].mxu1 %vm3737_vm2, %v6491_v54 }
 0x4bc   : > { %9732 = vmatprep.mubr.msk.f32.mxu1 %vm3737_vm2, %v6492_v55 }
 0x4bf   : > { %9733 = vmatmul.mubr.msk.f32.gmra.mrb[6].mxu1 %vm3737_vm2, %v6493_v56 }
 0x4c0   : > { %9735 = vmatprep.mubr.msk.f32.mxu1 %vm3737_vm2, %v6494_v58 }
 0x4c3   : > { %9736 = vmatmul.mubr.msk.f32.gmra.mrb[8].mxu1 %vm3737_vm2, %v6495_v60 }
 0x4c4   : > { %9738 = vmatprep.mubr.msk.f32.mxu1 %vm3737_vm2, %v6496_v62 }
 0x4c7   : > { %9739 = vmatmul.mubr.msk.f32.gmra.mrb[10].mxu1 %vm3737_vm2, %v6497_v0 }
 0x4c8   : > { %9741 = vmatprep.mubr.msk.f32.mxu1 %vm3737_vm2, %v6498_v36 }
 0x4cb   : > { %9742 = vmatmul.mubr.msk.f32.gmra.mrb[12].mxu1 %vm3737_vm2, %v6499_v38 }
 0x4cc   : > { %9744 = vmatprep.mubr.msk.f32.mxu1 %vm3737_vm2, %v6500_v35 }
 0x4cf   : > { %9745 = vmatmul.mubr.msk.f32.gmra.mrb[14].mxu1 %vm3737_vm2, %v6501_v34 }
 0x4d0   : > { %9747 = vmatprep.mubr.msk.f32.mxu1 %vm3737_vm2, %v6502_v6 }
 0x4d3   : > { %9748 = vmatmul.mubr.msk.f32.gmra.mrb[16].mxu1 %vm3737_vm2, %v6503_v39 }
 0x4d4   : > { %9750 = vmatprep.mubr.msk.f32.mxu1 %vm3737_vm2, %v6504_v40 }
 0x4d7   : > { %9751 = vmatmul.mubr.msk.f32.gmra.mrb[18].mxu1 %vm3737_vm2, %v6505_v8 }
 0x4d8   : > { %9753 = vmatprep.mubr.msk.f32.mxu1 %vm3737_vm2, %v6506_v12 }
 0x4db   : > { %9754 = vmatmul.mubr.msk.f32.gmra.mrb[20].mxu1 %vm3737_vm2, %v6507_v13 }
 0x4dc   : > { %9756 = vmatprep.mubr.msk.f32.mxu1 %vm3737_vm2, %v11647_v37  ;;  %v6517_v37 = vld [vmem:[#allocation2 + $0x1a1] sm:$0xff] }
 0x4df   : > { %9757 = vmatmul.mubr.msk.f32.gmra.mrb[22].mxu1 %vm3737_vm2, %v12682_v15  ;;  %v12719_v15 = vld [vmem:[#allocation20_spill] sm:$0xff] }
 0x4e0   : > { %9759 = vmatprep.mubr.msk.f32.mxu1 %vm3737_vm2, %v12683_v17  ;;  %v12720_v17 = vld [vmem:[#allocation21_spill] sm:$0xff] }
 0x4e3   : > { %9760 = vmatmul.mubr.msk.f32.gmra.mrb[24].mxu1 %vm3737_vm2, %v12684_v23  ;;  %v12721_v23 = vld [vmem:[#allocation23_spill] sm:$0xff] }
 0x4e4   : > { %9762 = vmatprep.mubr.msk.f32.mxu1 %vm3737_vm2, %v12685_v25  ;;  %v12722_v25 = vld [vmem:[#allocation25_spill] sm:$0xff] }
 0x4e7   : > { %9763 = vmatmul.mubr.msk.f32.gmra.mrb[26].mxu1 %vm3737_vm2, %v12686_v46  ;;  %v12723_v46 = vld [vmem:[#allocation26_spill] sm:$0xff] }
 0x4e8   : > { %9765 = vmatprep.mubr.msk.f32.mxu1 %vm3737_vm2, %v12104_v48  ;;  %v12724_v48 = vld [vmem:[#allocation27_spill] sm:$0xff] }
 0x4eb   : > { %9766 = vmatmul.mubr.msk.f32.gmra.mrb[28].mxu1 %vm3737_vm2, %v12108_v51  ;;  %v12725_v51 = vld [vmem:[#allocation29_spill] sm:$0xff] }
 0x4ec   : > { %9768 = vmatprep.mubr.msk.f32.mxu1 %vm3737_vm2, %v6516_v16 }
 0x4ef   : > { %9769 = vmatmul.mubr.msk.f32.gmra.mrb[30].mxu1 %vm3737_vm2, %v6517_v37 }
 0x4f0   : > { %9779 = vmatprep.mubr.msk.f32.mxu1 %vm3737_vm2, %v12687_v33  ;;  %v12726_v33 = vld [vmem:[#allocation32_spill] sm:$0xff] }
 0x4f3   : > { %9780 = vmatmul.mubr.msk.f32.vlgmr.msra.gmra.mrb[0].mxu1 %vm3737_vm2, %v12688_v9  ;;  %v12727_v9 = vld [vmem:[#allocation34_spill] sm:$0xff] }
 0x4f4   : > { %9782 = vmatprep.mubr.msk.f32.mxu1 %vm3737_vm2, %v12689_v11  ;;  %v6906_v11 = vld [vmem:[#allocation2 + $0x1a2] sm:$0xff] }
 0x4f7   : > { %9783 = vmatmul.mubr.msk.f32.gmra.mrb[2].mxu1 %vm3737_vm2, %v12690_v19  ;;  %v12377_v19 = vld [vmem:[%s12425_s4] ss:$0 sm:$0xff] }
 0x4f8   : > { %9785 = vmatprep.mubr.msk.f32.mxu1 %vm3737_vm2, %v12691_v21 }
 0x4fb   : > { %9786 = vmatmul.mubr.msk.f32.gmra.mrb[4].mxu1 %vm3737_vm2, %v12692_v44 }
 0x4fc   : > { %9788 = vmatprep.mubr.msk.f32.mxu1 %vm3737_vm2, %v12693_v47 }
 0x4ff   : > { %9789 = vmatmul.mubr.msk.f32.gmra.mrb[6].mxu1 %vm3737_vm2, %v12694_v52 }
 0x500   : > { %9791 = vmatprep.mubr.msk.f32.mxu1 %vm3737_vm2, %v12695_v27 }
 0x503   : > { %9792 = vmatmul.mubr.msk.f32.gmra.mrb[8].mxu1 %vm3737_vm2, %v12696_v61 }
 0x504   : > { %9794 = vmatprep.mubr.msk.f32.mxu1 %vm3737_vm2, %v12697_v63 }
 0x507   : > { %9795 = vmatmul.mubr.msk.f32.gmra.mrb[10].mxu1 %vm3737_vm2, %v12698_v31 }
 0x508   : > { %9797 = vmatprep.mubr.msk.f32.mxu1 %vm3737_vm2, %v12699_v18 }
 0x50b   : > { %9798 = vmatmul.mubr.msk.f32.gmra.mrb[12].mxu1 %vm3737_vm2, %v12700_v41 }
 0x50c   : > { %9800 = vmatprep.mubr.msk.f32.mxu1 %vm3737_vm2, %v12701_v14 }
 0x50f   : > { %9801 = vmatmul.mubr.msk.f32.gmra.mrb[14].mxu1 %vm3737_vm2, %v12702_v20 }
 0x510   : > { %9803 = vmatprep.mubr.msk.f32.mxu1 %vm3737_vm2, %v12703_v10 }
 0x513   : > { %9804 = vmatmul.mubr.msk.f32.gmra.mrb[16].mxu1 %vm3737_vm2, %v12717_v22 }
 0x514   : > { %9806 = vmatprep.mubr.msk.f32.mxu1 %vm3737_vm2, %v12718_v26 }
 0x517   : > { %9807 = vmatmul.mubr.msk.f32.gmra.mrb[18].mxu1 %vm3737_vm2, %v12719_v15 }
 0x518   : > { %9809 = vmatprep.mubr.msk.f32.mxu1 %vm3737_vm2, %v12720_v17 }
 0x51b   : > { %9810 = vmatmul.mubr.msk.f32.gmra.mrb[20].mxu1 %vm3737_vm2, %v12708_v57 }
 0x51c   : > { %9812 = vmatprep.mubr.msk.f32.mxu1 %vm3737_vm2, %v12721_v23 }
 0x51f   : > { %9813 = vmatmul.mubr.msk.f32.gmra.mrb[22].mxu1 %vm3737_vm2, %v12710_v1 }
 0x520   : > { %9815 = vmatprep.mubr.msk.f32.mxu1 %vm3737_vm2, %v12722_v25 }
 0x523   : > { %9816 = vmatmul.mubr.msk.f32.gmra.mrb[24].mxu1 %vm3737_vm2, %v12723_v46 }
 0x524   : > { %9818 = vmatprep.mubr.msk.f32.mxu1 %vm3737_vm2, %v12724_v48 }
 0x527   : > { %9819 = vmatmul.mubr.msk.f32.gmra.mrb[26].mxu1 %vm3737_vm2, %v12725_v51 }
 0x528   : > { %9821 = vmatprep.mubr.msk.f32.mxu1 %vm3737_vm2, %v12726_v33 }
 0x52b   : > { %9822 = vmatmul.mubr.msk.f32.gmra.mrb[28].mxu1 %vm3737_vm2, %v12727_v9 }
 0x52c   : > { %9824 = vmatprep.mubr.msk.f32.mxu1 %vm3737_vm2, %v6905_v4 }
 0x52f   : > { %9825 = vmatmul.mubr.msk.f32.gmra.mrb[30].mxu1 %vm3737_vm2, %v6906_v11 }
 0x5c6   : > { %v9781_v21 = vpop.f32.mrb[0].mxu1 }
 0x5c7   : > { %v7073_v44 = vpop.f32.mrb[1].mxu1  ;;  %v7272_v52 = vadd.f32 %v9781_v21, %v12377_v19 }
 0x5c8   : > { %v7271_v47 = vadd.f32 %v12377_v19, %v7073_v44 }
 0x5c9   : > { %v7304_v31 = vmax.f32 %v7272_v52, 0.0 }
 0x5ca   : > { %v9784_v27 = vpop.f32.mrb[2].mxu1  ;;  %v7303_v61 = vmax.f32 %v7271_v47, 0.0 }
 0x5cb   : > { %v7083_v63 = vpop.f32.mrb[3].mxu1  ;;  %v7274_v20 = vadd.f32 %v9784_v27, %v12377_v19 }
 0x5cc   : > { %7335 = vxpose.xlu0.b32.start [1/16] (narrow) %v7303_v61, 32  ;;  %v7273_v18 = vadd.f32 %v12377_v19, %v7083_v63 }
 0x5cd   : > { %v7306_v7 = vmax.f32 %v7274_v20, 0.0 }
 0x5ce   : > { %v9787_v41 = vpop.f32.mrb[4].mxu1  ;;  %v7305_v10 = vmax.f32 %v7273_v18, 0.0 }
 0x5cf   : > { %v7093_v14 = vpop.f32.mrb[5].mxu1  ;;  %v7276_v1 = vadd.f32 %v9787_v41, %v12377_v19 }
 0x5d0   : > { %7336 = vxpose.xlu0.b32.cont [2/16] (narrow) %v7304_v31, 32  ;;  %v7275_v53 = vadd.f32 %v12377_v19, %v7093_v14 }
 0x5d1   : > { %v7308_v43 = vmax.f32 %v7276_v1, 0.0 }
 0x5d2   : > { %v9790_v3 = vpop.f32.mrb[6].mxu1  ;;  %v7307_v5 = vmax.f32 %v7275_v53, 0.0 }
 0x5d3   : > { %v7103_v24 = vpop.f32.mrb[7].mxu1  ;;  %v7278_v29 = vadd.f32 %v9790_v3, %v12377_v19 }
 0x5d4   : > { %7337 = vxpose.xlu0.b32.cont [3/16] (narrow) %v7305_v10, 32  ;;  %v7277_v45 = vadd.f32 %v12377_v19, %v7103_v24 }
 0x5d5   : > { %v7310_v54 = vmax.f32 %v7278_v29, 0.0 }
 0x5d6   : > { %v9793_v57 = vpop.f32.mrb[8].mxu1  ;;  %v7309_v32 = vmax.f32 %v7277_v45, 0.0 }
 0x5d7   : > { %v7113_v59 = vpop.f32.mrb[9].mxu1  ;;  %v7280_v62 = vadd.f32 %v9793_v57, %v12377_v19 }
 0x5d8   : > { %7338 = vxpose.xlu0.b32.cont [4/16] (narrow) %v7306_v7, 32  ;;  %v7279_v55 = vadd.f32 %v12377_v19, %v7113_v59 }
 0x5d9   : > { %v7312_v6 = vmax.f32 %v7280_v62, 0.0 }
 0x5da   : > { %v9796_v42 = vpop.f32.mrb[10].mxu1  ;;  %v7311_v0 = vmax.f32 %v7279_v55, 0.0 }
 0x5db   : > { %v7123_v2 = vpop.f32.mrb[11].mxu1  ;;  %v7282_v16 = vadd.f32 %v9796_v42, %v12377_v19 }
 0x5dc   : > { %7339 = vxpose.xlu0.b32.cont [5/16] (narrow) %v7307_v5, 32  ;;  %v7281_v39 = vadd.f32 %v12377_v19, %v7123_v2 }
 0x5dd   : > { %v7314_v23 = vmax.f32 %v7282_v16, 0.0 }
 0x5de   : > { %v9799_v49 = vpop.f32.mrb[12].mxu1  ;;  %v7313_v37 = vmax.f32 %v7281_v39, 0.0 }
 0x5df   : > { %v7133_v28 = vpop.f32.mrb[13].mxu1  ;;  %v7284_v11 = vadd.f32 %v9799_v49, %v12377_v19 }
 0x5e0   : > { %7340 = vxpose.xlu0.b32.cont [6/16] (narrow) %v7308_v43, 32  ;;  %v7283_v25 = vadd.f32 %v12377_v19, %v7133_v28 }
 0x5e1   : > { %v7316_v31 = vmax.f32 %v7284_v11, 0.0 }
 0x5e2   : > { %v12387_v50 = vpop.f32.mrb[14].mxu1  ;;  %v7315_v21 = vmax.f32 %v7283_v25, 0.0 }
 0x5e3   : > { %v7143_v30 = vpop.f32.mrb[15].mxu1  ;;  %v7286_v7 = vadd.f32 %v12387_v50, %v12377_v19 }
 0x5e4   : > { %7341 = vxpose.xlu0.b32.cont [7/16] (narrow) %v7309_v32, 32  ;;  %v7285_v18 = vadd.f32 %v12377_v19, %v7143_v30 }
 0x5e5   : > { %v7318_v43 = vmax.f32 %v7286_v7, 0.0 }
 0x5e6   : > { %v9805_v56 = vpop.f32.mrb[16].mxu1  ;;  %v7317_v53 = vmax.f32 %v7285_v18, 0.0 }
 0x5e7   : > { %v7153_v58 = vpop.f32.mrb[17].mxu1  ;;  %v7288_v36 = vadd.f32 %v9805_v56, %v12377_v19 }
 0x5e8   : > { %7342 = vxpose.xlu0.b32.cont [8/16] (narrow) %v7310_v54, 32  ;;  %v7287_v60 = vadd.f32 %v12377_v19, %v7153_v58 }
 0x5e9   : > { %v7320_v40 = vmax.f32 %v7288_v36, 0.0 }
 0x5ea   : > { %v9808_v38 = vpop.f32.mrb[18].mxu1  ;;  %v7319_v35 = vmax.f32 %v7287_v60, 0.0 }
 0x5eb   : > { %v7163_v34 = vpop.f32.mrb[19].mxu1  ;;  %v7290_v22 = vadd.f32 %v9808_v38, %v12377_v19 }
 0x5ec   : > { %7343 = vxpose.xlu0.b32.cont [9/16] (narrow) %v7311_v0, 32  ;;  %7367 = vxpose.xlu1.b32.start [1/16] (narrow) %v7319_v35, 32  ;;  %v7289_v8 = vadd.f32 %v12377_v19, %v7163_v34 }
 0x5ed   : > { %v7322_v46 = vmax.f32 %v7290_v22, 0.0 }
 0x5ee   : > { %v9811_v12 = vpop.f32.mrb[20].mxu1  ;;  %v7321_v26 = vmax.f32 %v7289_v8, 0.0 }
 0x5ef   : > { %v7173_v13 = vpop.f32.mrb[21].mxu1  ;;  %v7292_v44 = vadd.f32 %v9811_v12, %v12377_v19 }
 0x5f0   : > { %7344 = vxpose.xlu0.b32.cont [10/16] (narrow) %v7312_v6, 32  ;;  %7368 = vxpose.xlu1.b32.cont [2/16] (narrow) %v7320_v40, 32  ;;  %v7291_v48 = vadd.f32 %v12377_v19, %v7173_v13 }
 0x5f1   : > { %v7324_v41 = vmax.f32 %v7292_v44, 0.0 }
 0x5f2   : > { %v9814_v15 = vpop.f32.mrb[22].mxu1  ;;  %v7323_v47 = vmax.f32 %v7291_v48, 0.0 }
 0x5f3   : > { %v7183_v17 = vpop.f32.mrb[23].mxu1  ;;  %v7294_v57 = vadd.f32 %v9814_v15, %v12377_v19 }
 0x5f4   : > { %7345 = vxpose.xlu0.b32.cont [11/16] (narrow) %v7313_v37, 32  ;;  %7369 = vxpose.xlu1.b32.cont [3/16] (narrow) %v7321_v26, 32  ;;  %v7293_v14 = vadd.f32 %v12377_v19, %v7183_v17 }
 0x5f5   : > { %v7326_v45 = vmax.f32 %v7294_v57, 0.0 }
 0x5f6   : > { %v9817_v51 = vpop.f32.mrb[24].mxu1  ;;  %v7325_v59 = vmax.f32 %v7293_v14, 0.0 }
 0x5f7   : > { %v7296_v33 = vadd.f32 %v9817_v51, %v12377_v19  ;;  %v7193_v4 = vpop.f32.mrb[25].mxu1 }
 0x5f8   : > { %v7295_v9 = vadd.f32 %v12377_v19, %v7193_v4  ;;  %7346 = vxpose.xlu0.b32.cont [12/16] (narrow) %v7314_v23, 32  ;;  %7370 = vxpose.xlu1.b32.cont [4/16] (narrow) %v7322_v46, 32 }
 0x5f9   : > { %v7328_v28 = vmax.f32 %v7296_v33, 0.0 }
 0x5fa   : > { %v9820_v52 = vpop.f32.mrb[26].mxu1  ;;  %v7327_v49 = vmax.f32 %v7295_v9, 0.0 }
 0x5fb   : > { %v7298_v27 = vadd.f32 %v9820_v52, %v12377_v19  ;;  %v7203_v61 = vpop.f32.mrb[27].mxu1 }
 0x5fc   : > { %v7297_v63 = vadd.f32 %v12377_v19, %v7203_v61  ;;  %7347 = vxpose.xlu0.b32.cont [13/16] (narrow) %v7315_v21, 32  ;;  %7371 = vxpose.xlu1.b32.cont [5/16] (narrow) %v7323_v47, 32 }
 0x5fd   : > { %v7330_v32 = vmax.f32 %v7298_v27, 0.0 }
 0x5fe   : > { %v9823_v20 = vpop.f32.mrb[28].mxu1  ;;  %v7329_v29 = vmax.f32 %v7297_v63, 0.0 }
 0x5ff   : > { %v7300_v10 = vadd.f32 %v9823_v20, %v12377_v19  ;;  %v7213_v3 = vpop.f32.mrb[29].mxu1 }
 0x600   : > { %v7299_v24 = vadd.f32 %v12377_v19, %v7213_v3  ;;  %7348 = vxpose.xlu0.b32.cont [14/16] (narrow) %v7316_v31, 32  ;;  %7372 = vxpose.xlu1.b32.cont [6/16] (narrow) %v7324_v41, 32 }
 0x601   : > { %v7332_v30 = vmax.f32 %v7300_v10, 0.0 }
 0x602   : > { %v9826_v1 = vpop.f32.mrb[30].mxu1  ;;  %v7331_v50 = vmax.f32 %v7299_v24, 0.0 }
 0x603   : > { %v7302_v5 = vadd.f32 %v9826_v1, %v12377_v19  ;;  %v7223_v42 = vpop.f32.mrb[31].mxu1 }
 0x604   : > { %v7301_v2 = vadd.f32 %v12377_v19, %v7223_v42  ;;  %7349 = vxpose.xlu0.b32.cont [15/16] (narrow) %v7317_v53, 32  ;;  %7373 = vxpose.xlu1.b32.cont [7/16] (narrow) %v7325_v59, 32 }
 0x605   : > { %v7334_v54 = vmax.f32 %v7302_v5, 0.0 }
 0x606   : > { %v7333_v19 = vmax.f32 %v7301_v2, 0.0 }
 0x608   : > { %7350 = vxpose.xlu0.b32.end [16/16] (narrow) %v7318_v43, 32  ;;  %7374 = vxpose.xlu1.b32.cont [8/16] (narrow) %v7326_v45, 32 }
 0x60c   : > { %7375 = vxpose.xlu1.b32.cont [9/16] (narrow) %v7327_v49, 32 }
 0x610   : > { %7376 = vxpose.xlu1.b32.cont [10/16] (narrow) %v7328_v28, 32 }
 0x614   : > { %7377 = vxpose.xlu1.b32.cont [11/16] (narrow) %v7329_v29, 32 }
 0x618   : > { %7378 = vxpose.xlu1.b32.cont [12/16] (narrow) %v7330_v32, 32 }
 0x61c   : > { %7379 = vxpose.xlu1.b32.cont [13/16] (narrow) %v7331_v50, 32 }
 0x620   : > { %7380 = vxpose.xlu1.b32.cont [14/16] (narrow) %v7332_v30, 32 }
 0x624   : > { %7381 = vxpose.xlu1.b32.cont [15/16] (narrow) %v7333_v19, 32 }
 0x628   : > { %7382 = vxpose.xlu1.b32.end [16/16] (narrow) %v7334_v54, 32 }
 0x64c   : > { %v7351_v55 = vpop.trf.xlu0 }
 0x64d   : > { %7399 = vst [vmem:[%s224_s29] sm:$0xff] %v7351_v55 }
 0x650   : > { %v7352_v56 = vpop.trf.xlu0 }
 0x651   : > { %7401 = vst [vmem:[%s224_s29 + $0x10] sm:$0xff] %v7352_v56 }
 0x654   : > { %v7353_v58 = vpop.trf.xlu0 }
 0x655   : > { %7403 = vst [vmem:[%s224_s29 + $0x20] sm:$0xff] %v7353_v58 }
 0x658   : > { %v7354_v60 = vpop.trf.xlu0 }
 0x659   : > { %7405 = vst [vmem:[%s224_s29 + $0x30] sm:$0xff] %v7354_v60 }
 0x66c   : > { %v7383_v62 = vpop.trf.xlu1 }
 0x66d   : > { %7400 = vst [vmem:[%s224_s29 + $0x8] sm:$0xff] %v7383_v62 }
 0x670   : > { %v7384_v0 = vpop.trf.xlu1 }
 0x671   : > { %7402 = vst [vmem:[%s224_s29 + $0x18] sm:$0xff] %v7384_v0 }
 0x674   : > { %v7385_v36 = vpop.trf.xlu1 }
 0x675   : > { %7404 = vst [vmem:[%s224_s29 + $0x28] sm:$0xff] %v7385_v36 }
 0x678   : > { %v7386_v38 = vpop.trf.xlu1 }
 0x679   : > { %7406 = vst [vmem:[%s224_s29 + $0x38] sm:$0xff] %v7386_v38 }
 0x67a PF: > { %s15_s18 = sadd.s32 1, %s10427_s18  }
 0x67b   : > { %p12_p4 = scmp.ge.s32.totalorder %s15_s18, 4  }
 0x67d   :  { %14 = sbr.rel (!%p12_p4) target bundleno = 1 (0x1), region = 74 }

</bundles_post_ra>
